<compile_context>
chip_gen: v7x
topology: tpu7x:2x2x1
jax: 0.10.0
libtpu: 0.0.40
codegen_flags: <defaults>
</compile_context>

<pallas_src>
import functools

import jax
import jax.numpy as jnp
from jax.experimental import pallas as pl
from jax.experimental.pallas import tpu as pltpu


# ---------------------------------------------------------------------------
# Fused Pallas kernel: conv1+ReLU+maxpool -> conv2+ReLU+GAP -> fc1+ReLU -> fc2
# ---------------------------------------------------------------------------
def _fused_forward_kernel(x_ref, pool_ref, w1_ref, b1_ref, w2_ref, b2_ref,
                          fc1w_ref, fc1b_ref, fc2w_ref, fc2b_ref,
                          out_ref, pad_ref, *, H, W, C_in, C1, C2, TB):
    """One grid step == TB images.  All intermediates stay in VMEM/vregs.

    x_ref:    (TB, 4, H/2+1, W/2+1, C_in) 2x2 spatial-parity planes of the
              padded NHWC images (plane index = 2*row_parity + col_parity).
    pool_ref: (TB, TB*H2*W2) block-diagonal 1/(H2*W2) averaging matrix (GAP
              expressed as a matmul).
    pad_ref:  VMEM scratch (TB, H2+2, W2+2, C1) holding the zero-padded pooled
              map for conv2; only its 1-px border is zeroed each step.
    """
    H2, W2 = H // 2, W // 2
    M2 = H2 * W2
    M = TB * M2

    # ---- conv1 3x3 (pad=1) + ReLU + maxpool 2x2: ONE im2col matmul -----------
    # For each output parity (p, q) the 9 taps are static window loads from the
    # parity planes, concatenated along channels into a (M, 9*C_in) patch
    # matrix.  The 4 parities are stacked along M so conv1 is a single MXU
    # push; the 2x2 maxpool is then an elementwise max over the 4 row blocks
    # (ReLU is monotone, so max/ReLU commute; bias is parity-independent).
    parity_patches = []
    for p in (0, 1):
        for q in (0, 1):
            taps = []
            for dh in range(3):
                for dw in range(3):
                    a, b = p + dh, q + dw
                    pidx = (a % 2) * 2 + (b % 2)
                    taps.append(x_ref[:, pidx,
                                      a // 2:a // 2 + H2,
                                      b // 2:b // 2 + W2, :])   # (TB,H2,W2,Cin)
            parity_patches.append(
                jnp.concatenate(taps, axis=-1).reshape(M, 9 * C_in))
    patches1 = jnp.concatenate(parity_patches, axis=0)          # (4*M, 9*Cin)
    acc1 = jnp.dot(patches1, w1_ref[...],
                   preferred_element_type=jnp.float32)          # (4*M, C1)
    pooled_pre = jnp.maximum(
        jnp.maximum(acc1[0:M], acc1[M:2 * M]),
        jnp.maximum(acc1[2 * M:3 * M], acc1[3 * M:4 * M]))
    pooled = jnp.maximum(pooled_pre + b1_ref[...], 0.0)         # (M, C1)

    # ---- zero-pad (pad=1) the pooled map for conv2 ----------------------------
    # Only the border strips are zeroed (interior is fully overwritten below),
    # removing the previous full-buffer zero store every step.
    zr = jnp.zeros((TB, 1, W2 + 2, C1), jnp.float32)
    zc = jnp.zeros((TB, H2 + 2, 1, C1), jnp.float32)
    pad_ref[:, 0:1, :, :] = zr
    pad_ref[:, H2 + 1:H2 + 2, :, :] = zr
    pad_ref[:, :, 0:1, :] = zc
    pad_ref[:, :, W2 + 1:W2 + 2, :] = zc
    pad_ref[:, 1:H2 + 1, 1:W2 + 1, :] = pooled.reshape(TB, H2, W2, C1)

    # ---- conv2 3x3 (pad=1) + ReLU: ONE im2col matmul --------------------------
    taps2 = [pad_ref[:, dh:dh + H2, dw:dw + W2, :]
             for dh in range(3) for dw in range(3)]
    patches2 = jnp.concatenate(taps2, axis=-1).reshape(M, 9 * C1)
    h2 = jnp.maximum(
        jnp.dot(patches2, w2_ref[...],
                preferred_element_type=jnp.float32) + b2_ref[...], 0.0)  # (M,C2)

    # ---- global average pool as a matmul (MXU, not cross-sublane XLU reduce) --
    feat = jnp.dot(pool_ref[...], h2,
                   preferred_element_type=jnp.float32)          # (TB, C2)

    # ---- MLP classifier head (mlp=True branch) --------------------------------
    z = jnp.maximum(jnp.dot(feat, fc1w_ref[...],
                            preferred_element_type=jnp.float32) + fc1b_ref[...],
                    0.0)                                        # (TB, hidden)
    logits = jnp.dot(z, fc2w_ref[...],
                     preferred_element_type=jnp.float32) + fc2b_ref[...]
    out_ref[...] = logits.astype(out_ref.dtype)                 # (TB, NC_pad)


# ---------------------------------------------------------------------------
# Wrapper
# ---------------------------------------------------------------------------
def simsiam_classifier_forward(x_nchw, params, batch_tile=8):
    # NCHW (PyTorch) -> NHWC (kernel layout)
    x = jnp.transpose(x_nchw, (0, 2, 3, 1)).astype(jnp.float32)
    N, H, W, C_in = x.shape
    assert H % 2 == 0 and W % 2 == 0

    C1 = params["w1"].shape[1]
    C2 = params["w2"].shape[1]
    hidden = params["fc1_w"].shape[1]
    num_cls = params["fc2_w"].shape[1]
    NC_pad = ((num_cls + 127) // 128) * 128            # lane-dense output width

    H2, W2 = H // 2, W // 2
    M2 = H2 * W2

    # Batch tile: multiple of 8 when possible (sublane-dense output rows).
    # On v7x (64 MiB VMEM, 2 TCs) use a TB about half the v5e/v6e choice and
    # keep the grid length >= 2.
    TB = max(1, min(batch_tile, N))
    Np = ((N + TB - 1) // TB) * TB                      # pad batch to TB multiple

    # Zero-pad spatially (pad=1) once, pad the batch, and split into the four
    # 2x2 spatial-parity planes so conv1+maxpool is expressible with static
    # window loads + one elementwise max (no strided VMEM access, no HBM
    # im2col blow-up).
    xp = jnp.pad(x, ((0, Np - N), (1, 1), (1, 1), (0, 0)))   # (Np, H+2, W+2, C)
    HP, WP = (H + 2) // 2, (W + 2) // 2
    planes = jnp.stack([xp[:, p::2, q::2, :] for p in (0, 1) for q in (0, 1)],
                       axis=1)                               # (Np, 4, HP, WP, C)

    # Global-average-pool as a matmul: block-diagonal (TB, TB*M2) matrix of 1/M2.
    pool_mat = jnp.repeat(jnp.eye(TB, dtype=jnp.float32), M2, axis=1) / float(M2)

    # Pad fc2 to NC_pad output columns so the per-step output store is a full
    # unmasked (TB, 128*k) block; sliced back to num_cls below.
    fc2w_pad = jnp.zeros((hidden, NC_pad), jnp.float32).at[:, :num_cls].set(
        params["fc2_w"])
    fc2b_pad = jnp.zeros((1, NC_pad), jnp.float32).at[:, :num_cls].set(
        params["fc2_b"].reshape(1, -1))

    kernel = functools.partial(_fused_forward_kernel, H=H, W=W,
                               C_in=C_in, C1=C1, C2=C2, TB=TB)

    out = pl.pallas_call(
        kernel,
        out_shape=jax.ShapeDtypeStruct((Np, NC_pad), jnp.float32),
        grid=(Np // TB,),
        in_specs=[
            pl.BlockSpec((TB, 4, HP, WP, C_in), lambda n: (n, 0, 0, 0, 0)),
            pl.BlockSpec((TB, TB * M2), lambda n: (0, 0)),
            pl.BlockSpec((9 * C_in, C1), lambda n: (0, 0)),
            pl.BlockSpec((1, C1), lambda n: (0, 0)),
            pl.BlockSpec((9 * C1, C2), lambda n: (0, 0)),
            pl.BlockSpec((1, C2), lambda n: (0, 0)),
            pl.BlockSpec((C2, hidden), lambda n: (0, 0)),
            pl.BlockSpec((1, hidden), lambda n: (0, 0)),
            pl.BlockSpec((hidden, NC_pad), lambda n: (0, 0)),
            pl.BlockSpec((1, NC_pad), lambda n: (0, 0)),
        ],
        out_specs=pl.BlockSpec((TB, NC_pad), lambda n: (n, 0)),
        scratch_shapes=[pltpu.VMEM((TB, H2 + 2, W2 + 2, C1), jnp.float32)],
        compiler_params=pltpu.CompilerParams(
            dimension_semantics=("parallel",)),
    )(planes, pool_mat,
      params["w1"], params["b1"].reshape(1, -1),
      params["w2"], params["b2"].reshape(1, -1),
      params["fc1_w"], params["fc1_b"].reshape(1, -1),
      fc2w_pad, fc2b_pad)

    return out[:N, :num_cls]


# ---------------------------------------------------------------------------
# Plain-JAX reference (same math, no Pallas) for verification
# ---------------------------------------------------------------------------
def reference_forward(x_nchw, params):
    x = jnp.transpose(x_nchw, (0, 2, 3, 1)).astype(jnp.float32)

    def conv3x3_relu(inp, w, b):
        N, H, W, C = inp.shape
        xp = jnp.pad(inp, ((0, 0), (1, 1), (1, 1), (0, 0)))
        cols = [xp[:, dh:dh + H, dw:dw + W, :]
                for dh in range(3) for dw in range(3)]
        patches = jnp.concatenate(cols, axis=-1).reshape(N * H * W, 9 * C)
        out = patches @ w + b
        return jnp.maximum(out, 0.0).reshape(N, H, W, -1)

    h1 = conv3x3_relu(x, params["w1"], params["b1"])
    N, H, W, C1 = h1.shape
    h1 = h1.reshape(N, H // 2, 2, W // 2, 2, C1).max(axis=(2, 4))
    h2 = conv3x3_relu(h1, params["w2"], params["b2"])
    feat = h2.mean(axis=(1, 2))
    z = jnp.maximum(feat @ params["fc1_w"] + params["fc1_b"], 0.0)
    return z @ params["fc2_w"] + params["fc2_b"]


# ---------------------------------------------------------------------------
# Parameter init (synthetic, deterministic)
# ---------------------------------------------------------------------------
def init_params(key, in_ch=4, c1=8, c2=16, hidden=32, num_cls=10):
    ks = jax.random.split(key, 8)

    def dense(k, fan_in, fan_out):
        return jax.random.normal(k, (fan_in, fan_out), jnp.float32) / jnp.sqrt(fan_in)

    return {
        # conv weights stored as im2col matrices: (9*cin, cout), row order (kh, kw, cin)
        "w1": dense(ks[0], 9 * in_ch, c1),
        "b1": jax.random.normal(ks[1], (c1,), jnp.float32) * 0.01,
        "w2": dense(ks[2], 9 * c1, c2),
        "b2": jax.random.normal(ks[3], (c2,), jnp.float32) * 0.01,
        "fc1_w": dense(ks[4], c2, hidden),
        "fc1_b": jax.random.normal(ks[5], (hidden,), jnp.float32) * 0.01,
        "fc2_w": dense(ks[6], hidden, num_cls),
        "fc2_b": jax.random.normal(ks[7], (num_cls,), jnp.float32) * 0.01,
    }


if __name__ == "__main__":
    key = jax.random.PRNGKey(0)
    k_x, k_p = jax.random.split(key)

    # small shapes consistent with the classifier forward: batch=2, C=4, 16x16
    x = jax.random.normal(k_x, (2, 4, 16, 16), jnp.float32)
    params = init_params(k_p, in_ch=4, c1=8, c2=16, hidden=32, num_cls=10)

    forward = jax.jit(simsiam_classifier_forward)
    logits = jax.block_until_ready(forward(x, params))

    assert logits.shape == (2, 10), logits.shape
    assert bool(jnp.all(jnp.isfinite(logits)))

    ref = reference_forward(x, params)
    max_err = float(jnp.max(jnp.abs(logits - ref)))
    assert max_err < 5e-2, f"kernel/reference mismatch: max|err|={max_err}"

    print("KERNEL_OK")
</pallas_src>

<mosaic_0001>
module attributes {stable_mosaic.version = 11 : i64} {
  func.func @_fused_forward_kernel(%arg0: i32, %arg1: memref<2x4x9x9x4xf32, #tpu.memory_space<vmem>>, %arg2: memref<2x128xf32, #tpu.memory_space<vmem>>, %arg3: memref<36x8xf32, #tpu.memory_space<vmem>>, %arg4: memref<1x8xf32, #tpu.memory_space<vmem>>, %arg5: memref<72x16xf32, #tpu.memory_space<vmem>>, %arg6: memref<1x16xf32, #tpu.memory_space<vmem>>, %arg7: memref<16x32xf32, #tpu.memory_space<vmem>>, %arg8: memref<1x32xf32, #tpu.memory_space<vmem>>, %arg9: memref<32x128xf32, #tpu.memory_space<vmem>>, %arg10: memref<1x128xf32, #tpu.memory_space<vmem>>, %arg11: memref<2x128xf32, #tpu.memory_space<vmem>>, %arg12: memref<2x10x10x8xf32, #tpu.memory_space<vmem>>) attributes {dimension_semantics = [#tpu.dimension_semantics<parallel>], iteration_bounds = array<i64: 1>, scalar_prefetch = 0 : i64, scratch_operands = 1 : i64, tpu.core_type = #tpu.core_type<tc>, window_params = [{transform_indices = @transform_0, window_bounds = array<i64: 2, 4, 9, 9, 4>}, {pipeline_mode = #tpu.pipeline_mode<synchronous>, transform_indices = @transform_1, window_bounds = array<i64: 2, 128>}, {pipeline_mode = #tpu.pipeline_mode<synchronous>, transform_indices = @transform_2, window_bounds = array<i64: 36, 8>}, {pipeline_mode = #tpu.pipeline_mode<synchronous>, transform_indices = @transform_3, window_bounds = array<i64: 1, 8>}, {pipeline_mode = #tpu.pipeline_mode<synchronous>, transform_indices = @transform_4, window_bounds = array<i64: 72, 16>}, {pipeline_mode = #tpu.pipeline_mode<synchronous>, transform_indices = @transform_5, window_bounds = array<i64: 1, 16>}, {pipeline_mode = #tpu.pipeline_mode<synchronous>, transform_indices = @transform_6, window_bounds = array<i64: 16, 32>}, {pipeline_mode = #tpu.pipeline_mode<synchronous>, transform_indices = @transform_7, window_bounds = array<i64: 1, 32>}, {pipeline_mode = #tpu.pipeline_mode<synchronous>, transform_indices = @transform_8, window_bounds = array<i64: 32, 128>}, {pipeline_mode = #tpu.pipeline_mode<synchronous>, transform_indices = @transform_9, window_bounds = array<i64: 1, 128>}, {transform_indices = @transform_10, window_bounds = array<i64: 2, 128>}]} {
    %c0 = arith.constant 0 : index
    %c0_0 = arith.constant 0 : index
    %c0_1 = arith.constant 0 : index
    %c0_2 = arith.constant 0 : index
    %c0_3 = arith.constant 0 : index
    %0 = vector.load %arg1[%c0, %c0_0, %c0_1, %c0_2, %c0_3] : memref<2x4x9x9x4xf32, #tpu.memory_space<vmem>>, vector<2x1x8x8x4xf32>
    %1 = vector.shape_cast %0 : vector<2x1x8x8x4xf32> to vector<2x8x8x4xf32>
    %c0_4 = arith.constant 0 : index
    %c1 = arith.constant 1 : index
    %c0_5 = arith.constant 0 : index
    %c0_6 = arith.constant 0 : index
    %c0_7 = arith.constant 0 : index
    %2 = vector.load %arg1[%c0_4, %c1, %c0_5, %c0_6, %c0_7] : memref<2x4x9x9x4xf32, #tpu.memory_space<vmem>>, vector<2x1x8x8x4xf32>
    %3 = vector.shape_cast %2 : vector<2x1x8x8x4xf32> to vector<2x8x8x4xf32>
    %c0_8 = arith.constant 0 : index
    %c0_9 = arith.constant 0 : index
    %c0_10 = arith.constant 0 : index
    %c1_11 = arith.constant 1 : index
    %c0_12 = arith.constant 0 : index
    %4 = vector.load %arg1[%c0_8, %c0_9, %c0_10, %c1_11, %c0_12] : memref<2x4x9x9x4xf32, #tpu.memory_space<vmem>>, vector<2x1x8x8x4xf32>
    %5 = vector.shape_cast %4 : vector<2x1x8x8x4xf32> to vector<2x8x8x4xf32>
    %c0_13 = arith.constant 0 : index
    %c2 = arith.constant 2 : index
    %c0_14 = arith.constant 0 : index
    %c0_15 = arith.constant 0 : index
    %c0_16 = arith.constant 0 : index
    %6 = vector.load %arg1[%c0_13, %c2, %c0_14, %c0_15, %c0_16] : memref<2x4x9x9x4xf32, #tpu.memory_space<vmem>>, vector<2x1x8x8x4xf32>
    %7 = vector.shape_cast %6 : vector<2x1x8x8x4xf32> to vector<2x8x8x4xf32>
    %c0_17 = arith.constant 0 : index
    %c3 = arith.constant 3 : index
    %c0_18 = arith.constant 0 : index
    %c0_19 = arith.constant 0 : index
    %c0_20 = arith.constant 0 : index
    %8 = vector.load %arg1[%c0_17, %c3, %c0_18, %c0_19, %c0_20] : memref<2x4x9x9x4xf32, #tpu.memory_space<vmem>>, vector<2x1x8x8x4xf32>
    %9 = vector.shape_cast %8 : vector<2x1x8x8x4xf32> to vector<2x8x8x4xf32>
    %c0_21 = arith.constant 0 : index
    %c2_22 = arith.constant 2 : index
    %c0_23 = arith.constant 0 : index
    %c1_24 = arith.constant 1 : index
    %c0_25 = arith.constant 0 : index
    %10 = vector.load %arg1[%c0_21, %c2_22, %c0_23, %c1_24, %c0_25] : memref<2x4x9x9x4xf32, #tpu.memory_space<vmem>>, vector<2x1x8x8x4xf32>
    %11 = vector.shape_cast %10 : vector<2x1x8x8x4xf32> to vector<2x8x8x4xf32>
    %c0_26 = arith.constant 0 : index
    %c0_27 = arith.constant 0 : index
    %c1_28 = arith.constant 1 : index
    %c0_29 = arith.constant 0 : index
    %c0_30 = arith.constant 0 : index
    %12 = vector.load %arg1[%c0_26, %c0_27, %c1_28, %c0_29, %c0_30] : memref<2x4x9x9x4xf32, #tpu.memory_space<vmem>>, vector<2x1x8x8x4xf32>
    %13 = vector.shape_cast %12 : vector<2x1x8x8x4xf32> to vector<2x8x8x4xf32>
    %c0_31 = arith.constant 0 : index
    %c1_32 = arith.constant 1 : index
    %c1_33 = arith.constant 1 : index
    %c0_34 = arith.constant 0 : index
    %c0_35 = arith.constant 0 : index
    %14 = vector.load %arg1[%c0_31, %c1_32, %c1_33, %c0_34, %c0_35] : memref<2x4x9x9x4xf32, #tpu.memory_space<vmem>>, vector<2x1x8x8x4xf32>
    %15 = vector.shape_cast %14 : vector<2x1x8x8x4xf32> to vector<2x8x8x4xf32>
    %c0_36 = arith.constant 0 : index
    %c0_37 = arith.constant 0 : index
    %c1_38 = arith.constant 1 : index
    %c1_39 = arith.constant 1 : index
    %c0_40 = arith.constant 0 : index
    %16 = vector.load %arg1[%c0_36, %c0_37, %c1_38, %c1_39, %c0_40] : memref<2x4x9x9x4xf32, #tpu.memory_space<vmem>>, vector<2x1x8x8x4xf32>
    %17 = vector.shape_cast %16 : vector<2x1x8x8x4xf32> to vector<2x8x8x4xf32>
    %18 = tpu.concatenate %1, %3, %5, %7, %9, %11, %13, %15, %17 in 3 : vector<2x8x8x4xf32>, vector<2x8x8x4xf32>, vector<2x8x8x4xf32>, vector<2x8x8x4xf32>, vector<2x8x8x4xf32>, vector<2x8x8x4xf32>, vector<2x8x8x4xf32>, vector<2x8x8x4xf32>, vector<2x8x8x4xf32> -> vector<2x8x8x36xf32>
    %19 = vector.shape_cast %18 : vector<2x8x8x36xf32> to vector<128x36xf32>
    %c0_41 = arith.constant 0 : index
    %c1_42 = arith.constant 1 : index
    %c0_43 = arith.constant 0 : index
    %c0_44 = arith.constant 0 : index
    %c0_45 = arith.constant 0 : index
    %20 = vector.load %arg1[%c0_41, %c1_42, %c0_43, %c0_44, %c0_45] : memref<2x4x9x9x4xf32, #tpu.memory_space<vmem>>, vector<2x1x8x8x4xf32>
    %21 = vector.shape_cast %20 : vector<2x1x8x8x4xf32> to vector<2x8x8x4xf32>
    %c0_46 = arith.constant 0 : index
    %c0_47 = arith.constant 0 : index
    %c0_48 = arith.constant 0 : index
    %c1_49 = arith.constant 1 : index
    %c0_50 = arith.constant 0 : index
    %22 = vector.load %arg1[%c0_46, %c0_47, %c0_48, %c1_49, %c0_50] : memref<2x4x9x9x4xf32, #tpu.memory_space<vmem>>, vector<2x1x8x8x4xf32>
    %23 = vector.shape_cast %22 : vector<2x1x8x8x4xf32> to vector<2x8x8x4xf32>
    %c0_51 = arith.constant 0 : index
    %c1_52 = arith.constant 1 : index
    %c0_53 = arith.constant 0 : index
    %c1_54 = arith.constant 1 : index
    %c0_55 = arith.constant 0 : index
    %24 = vector.load %arg1[%c0_51, %c1_52, %c0_53, %c1_54, %c0_55] : memref<2x4x9x9x4xf32, #tpu.memory_space<vmem>>, vector<2x1x8x8x4xf32>
    %25 = vector.shape_cast %24 : vector<2x1x8x8x4xf32> to vector<2x8x8x4xf32>
    %c0_56 = arith.constant 0 : index
    %c3_57 = arith.constant 3 : index
    %c0_58 = arith.constant 0 : index
    %c0_59 = arith.constant 0 : index
    %c0_60 = arith.constant 0 : index
    %26 = vector.load %arg1[%c0_56, %c3_57, %c0_58, %c0_59, %c0_60] : memref<2x4x9x9x4xf32, #tpu.memory_space<vmem>>, vector<2x1x8x8x4xf32>
    %27 = vector.shape_cast %26 : vector<2x1x8x8x4xf32> to vector<2x8x8x4xf32>
    %c0_61 = arith.constant 0 : index
    %c2_62 = arith.constant 2 : index
    %c0_63 = arith.constant 0 : index
    %c1_64 = arith.constant 1 : index
    %c0_65 = arith.constant 0 : index
    %28 = vector.load %arg1[%c0_61, %c2_62, %c0_63, %c1_64, %c0_65] : memref<2x4x9x9x4xf32, #tpu.memory_space<vmem>>, vector<2x1x8x8x4xf32>
    %29 = vector.shape_cast %28 : vector<2x1x8x8x4xf32> to vector<2x8x8x4xf32>
    %c0_66 = arith.constant 0 : index
    %c3_67 = arith.constant 3 : index
    %c0_68 = arith.constant 0 : index
    %c1_69 = arith.constant 1 : index
    %c0_70 = arith.constant 0 : index
    %30 = vector.load %arg1[%c0_66, %c3_67, %c0_68, %c1_69, %c0_70] : memref<2x4x9x9x4xf32, #tpu.memory_space<vmem>>, vector<2x1x8x8x4xf32>
    %31 = vector.shape_cast %30 : vector<2x1x8x8x4xf32> to vector<2x8x8x4xf32>
    %c0_71 = arith.constant 0 : index
    %c1_72 = arith.constant 1 : index
    %c1_73 = arith.constant 1 : index
    %c0_74 = arith.constant 0 : index
    %c0_75 = arith.constant 0 : index
    %32 = vector.load %arg1[%c0_71, %c1_72, %c1_73, %c0_74, %c0_75] : memref<2x4x9x9x4xf32, #tpu.memory_space<vmem>>, vector<2x1x8x8x4xf32>
    %33 = vector.shape_cast %32 : vector<2x1x8x8x4xf32> to vector<2x8x8x4xf32>
    %c0_76 = arith.constant 0 : index
    %c0_77 = arith.constant 0 : index
    %c1_78 = arith.constant 1 : index
    %c1_79 = arith.constant 1 : index
    %c0_80 = arith.constant 0 : index
    %34 = vector.load %arg1[%c0_76, %c0_77, %c1_78, %c1_79, %c0_80] : memref<2x4x9x9x4xf32, #tpu.memory_space<vmem>>, vector<2x1x8x8x4xf32>
    %35 = vector.shape_cast %34 : vector<2x1x8x8x4xf32> to vector<2x8x8x4xf32>
    %c0_81 = arith.constant 0 : index
    %c1_82 = arith.constant 1 : index
    %c1_83 = arith.constant 1 : index
    %c1_84 = arith.constant 1 : index
    %c0_85 = arith.constant 0 : index
    %36 = vector.load %arg1[%c0_81, %c1_82, %c1_83, %c1_84, %c0_85] : memref<2x4x9x9x4xf32, #tpu.memory_space<vmem>>, vector<2x1x8x8x4xf32>
    %37 = vector.shape_cast %36 : vector<2x1x8x8x4xf32> to vector<2x8x8x4xf32>
    %38 = tpu.concatenate %21, %23, %25, %27, %29, %31, %33, %35, %37 in 3 : vector<2x8x8x4xf32>, vector<2x8x8x4xf32>, vector<2x8x8x4xf32>, vector<2x8x8x4xf32>, vector<2x8x8x4xf32>, vector<2x8x8x4xf32>, vector<2x8x8x4xf32>, vector<2x8x8x4xf32>, vector<2x8x8x4xf32> -> vector<2x8x8x36xf32>
    %39 = vector.shape_cast %38 : vector<2x8x8x36xf32> to vector<128x36xf32>
    %c0_86 = arith.constant 0 : index
    %c2_87 = arith.constant 2 : index
    %c0_88 = arith.constant 0 : index
    %c0_89 = arith.constant 0 : index
    %c0_90 = arith.constant 0 : index
    %40 = vector.load %arg1[%c0_86, %c2_87, %c0_88, %c0_89, %c0_90] : memref<2x4x9x9x4xf32, #tpu.memory_space<vmem>>, vector<2x1x8x8x4xf32>
    %41 = vector.shape_cast %40 : vector<2x1x8x8x4xf32> to vector<2x8x8x4xf32>
    %c0_91 = arith.constant 0 : index
    %c3_92 = arith.constant 3 : index
    %c0_93 = arith.constant 0 : index
    %c0_94 = arith.constant 0 : index
    %c0_95 = arith.constant 0 : index
    %42 = vector.load %arg1[%c0_91, %c3_92, %c0_93, %c0_94, %c0_95] : memref<2x4x9x9x4xf32, #tpu.memory_space<vmem>>, vector<2x1x8x8x4xf32>
    %43 = vector.shape_cast %42 : vector<2x1x8x8x4xf32> to vector<2x8x8x4xf32>
    %c0_96 = arith.constant 0 : index
    %c2_97 = arith.constant 2 : index
    %c0_98 = arith.constant 0 : index
    %c1_99 = arith.constant 1 : index
    %c0_100 = arith.constant 0 : index
    %44 = vector.load %arg1[%c0_96, %c2_97, %c0_98, %c1_99, %c0_100] : memref<2x4x9x9x4xf32, #tpu.memory_space<vmem>>, vector<2x1x8x8x4xf32>
    %45 = vector.shape_cast %44 : vector<2x1x8x8x4xf32> to vector<2x8x8x4xf32>
    %c0_101 = arith.constant 0 : index
    %c0_102 = arith.constant 0 : index
    %c1_103 = arith.constant 1 : index
    %c0_104 = arith.constant 0 : index
    %c0_105 = arith.constant 0 : index
    %46 = vector.load %arg1[%c0_101, %c0_102, %c1_103, %c0_104, %c0_105] : memref<2x4x9x9x4xf32, #tpu.memory_space<vmem>>, vector<2x1x8x8x4xf32>
    %47 = vector.shape_cast %46 : vector<2x1x8x8x4xf32> to vector<2x8x8x4xf32>
    %c0_106 = arith.constant 0 : index
    %c1_107 = arith.constant 1 : index
    %c1_108 = arith.constant 1 : index
    %c0_109 = arith.constant 0 : index
    %c0_110 = arith.constant 0 : index
    %48 = vector.load %arg1[%c0_106, %c1_107, %c1_108, %c0_109, %c0_110] : memref<2x4x9x9x4xf32, #tpu.memory_space<vmem>>, vector<2x1x8x8x4xf32>
    %49 = vector.shape_cast %48 : vector<2x1x8x8x4xf32> to vector<2x8x8x4xf32>
    %c0_111 = arith.constant 0 : index
    %c0_112 = arith.constant 0 : index
    %c1_113 = arith.constant 1 : index
    %c1_114 = arith.constant 1 : index
    %c0_115 = arith.constant 0 : index
    %50 = vector.load %arg1[%c0_111, %c0_112, %c1_113, %c1_114, %c0_115] : memref<2x4x9x9x4xf32, #tpu.memory_space<vmem>>, vector<2x1x8x8x4xf32>
    %51 = vector.shape_cast %50 : vector<2x1x8x8x4xf32> to vector<2x8x8x4xf32>
    %c0_116 = arith.constant 0 : index
    %c2_117 = arith.constant 2 : index
    %c1_118 = arith.constant 1 : index
    %c0_119 = arith.constant 0 : index
    %c0_120 = arith.constant 0 : index
    %52 = vector.load %arg1[%c0_116, %c2_117, %c1_118, %c0_119, %c0_120] : memref<2x4x9x9x4xf32, #tpu.memory_space<vmem>>, vector<2x1x8x8x4xf32>
    %53 = vector.shape_cast %52 : vector<2x1x8x8x4xf32> to vector<2x8x8x4xf32>
    %c0_121 = arith.constant 0 : index
    %c3_122 = arith.constant 3 : index
    %c1_123 = arith.constant 1 : index
    %c0_124 = arith.constant 0 : index
    %c0_125 = arith.constant 0 : index
    %54 = vector.load %arg1[%c0_121, %c3_122, %c1_123, %c0_124, %c0_125] : memref<2x4x9x9x4xf32, #tpu.memory_space<vmem>>, vector<2x1x8x8x4xf32>
    %55 = vector.shape_cast %54 : vector<2x1x8x8x4xf32> to vector<2x8x8x4xf32>
    %c0_126 = arith.constant 0 : index
    %c2_127 = arith.constant 2 : index
    %c1_128 = arith.constant 1 : index
    %c1_129 = arith.constant 1 : index
    %c0_130 = arith.constant 0 : index
    %56 = vector.load %arg1[%c0_126, %c2_127, %c1_128, %c1_129, %c0_130] : memref<2x4x9x9x4xf32, #tpu.memory_space<vmem>>, vector<2x1x8x8x4xf32>
    %57 = vector.shape_cast %56 : vector<2x1x8x8x4xf32> to vector<2x8x8x4xf32>
    %58 = tpu.concatenate %41, %43, %45, %47, %49, %51, %53, %55, %57 in 3 : vector<2x8x8x4xf32>, vector<2x8x8x4xf32>, vector<2x8x8x4xf32>, vector<2x8x8x4xf32>, vector<2x8x8x4xf32>, vector<2x8x8x4xf32>, vector<2x8x8x4xf32>, vector<2x8x8x4xf32>, vector<2x8x8x4xf32> -> vector<2x8x8x36xf32>
    %59 = vector.shape_cast %58 : vector<2x8x8x36xf32> to vector<128x36xf32>
    %c0_131 = arith.constant 0 : index
    %c3_132 = arith.constant 3 : index
    %c0_133 = arith.constant 0 : index
    %c0_134 = arith.constant 0 : index
    %c0_135 = arith.constant 0 : index
    %60 = vector.load %arg1[%c0_131, %c3_132, %c0_133, %c0_134, %c0_135] : memref<2x4x9x9x4xf32, #tpu.memory_space<vmem>>, vector<2x1x8x8x4xf32>
    %61 = vector.shape_cast %60 : vector<2x1x8x8x4xf32> to vector<2x8x8x4xf32>
    %c0_136 = arith.constant 0 : index
    %c2_137 = arith.constant 2 : index
    %c0_138 = arith.constant 0 : index
    %c1_139 = arith.constant 1 : index
    %c0_140 = arith.constant 0 : index
    %62 = vector.load %arg1[%c0_136, %c2_137, %c0_138, %c1_139, %c0_140] : memref<2x4x9x9x4xf32, #tpu.memory_space<vmem>>, vector<2x1x8x8x4xf32>
    %63 = vector.shape_cast %62 : vector<2x1x8x8x4xf32> to vector<2x8x8x4xf32>
    %c0_141 = arith.constant 0 : index
    %c3_142 = arith.constant 3 : index
    %c0_143 = arith.constant 0 : index
    %c1_144 = arith.constant 1 : index
    %c0_145 = arith.constant 0 : index
    %64 = vector.load %arg1[%c0_141, %c3_142, %c0_143, %c1_144, %c0_145] : memref<2x4x9x9x4xf32, #tpu.memory_space<vmem>>, vector<2x1x8x8x4xf32>
    %65 = vector.shape_cast %64 : vector<2x1x8x8x4xf32> to vector<2x8x8x4xf32>
    %c0_146 = arith.constant 0 : index
    %c1_147 = arith.constant 1 : index
    %c1_148 = arith.constant 1 : index
    %c0_149 = arith.constant 0 : index
    %c0_150 = arith.constant 0 : index
    %66 = vector.load %arg1[%c0_146, %c1_147, %c1_148, %c0_149, %c0_150] : memref<2x4x9x9x4xf32, #tpu.memory_space<vmem>>, vector<2x1x8x8x4xf32>
    %67 = vector.shape_cast %66 : vector<2x1x8x8x4xf32> to vector<2x8x8x4xf32>
    %c0_151 = arith.constant 0 : index
    %c0_152 = arith.constant 0 : index
    %c1_153 = arith.constant 1 : index
    %c1_154 = arith.constant 1 : index
    %c0_155 = arith.constant 0 : index
    %68 = vector.load %arg1[%c0_151, %c0_152, %c1_153, %c1_154, %c0_155] : memref<2x4x9x9x4xf32, #tpu.memory_space<vmem>>, vector<2x1x8x8x4xf32>
    %69 = vector.shape_cast %68 : vector<2x1x8x8x4xf32> to vector<2x8x8x4xf32>
    %c0_156 = arith.constant 0 : index
    %c1_157 = arith.constant 1 : index
    %c1_158 = arith.constant 1 : index
    %c1_159 = arith.constant 1 : index
    %c0_160 = arith.constant 0 : index
    %70 = vector.load %arg1[%c0_156, %c1_157, %c1_158, %c1_159, %c0_160] : memref<2x4x9x9x4xf32, #tpu.memory_space<vmem>>, vector<2x1x8x8x4xf32>
    %71 = vector.shape_cast %70 : vector<2x1x8x8x4xf32> to vector<2x8x8x4xf32>
    %c0_161 = arith.constant 0 : index
    %c3_162 = arith.constant 3 : index
    %c1_163 = arith.constant 1 : index
    %c0_164 = arith.constant 0 : index
    %c0_165 = arith.constant 0 : index
    %72 = vector.load %arg1[%c0_161, %c3_162, %c1_163, %c0_164, %c0_165] : memref<2x4x9x9x4xf32, #tpu.memory_space<vmem>>, vector<2x1x8x8x4xf32>
    %73 = vector.shape_cast %72 : vector<2x1x8x8x4xf32> to vector<2x8x8x4xf32>
    %c0_166 = arith.constant 0 : index
    %c2_167 = arith.constant 2 : index
    %c1_168 = arith.constant 1 : index
    %c1_169 = arith.constant 1 : index
    %c0_170 = arith.constant 0 : index
    %74 = vector.load %arg1[%c0_166, %c2_167, %c1_168, %c1_169, %c0_170] : memref<2x4x9x9x4xf32, #tpu.memory_space<vmem>>, vector<2x1x8x8x4xf32>
    %75 = vector.shape_cast %74 : vector<2x1x8x8x4xf32> to vector<2x8x8x4xf32>
    %c0_171 = arith.constant 0 : index
    %c3_172 = arith.constant 3 : index
    %c1_173 = arith.constant 1 : index
    %c1_174 = arith.constant 1 : index
    %c0_175 = arith.constant 0 : index
    %76 = vector.load %arg1[%c0_171, %c3_172, %c1_173, %c1_174, %c0_175] : memref<2x4x9x9x4xf32, #tpu.memory_space<vmem>>, vector<2x1x8x8x4xf32>
    %77 = vector.shape_cast %76 : vector<2x1x8x8x4xf32> to vector<2x8x8x4xf32>
    %78 = tpu.concatenate %61, %63, %65, %67, %69, %71, %73, %75, %77 in 3 : vector<2x8x8x4xf32>, vector<2x8x8x4xf32>, vector<2x8x8x4xf32>, vector<2x8x8x4xf32>, vector<2x8x8x4xf32>, vector<2x8x8x4xf32>, vector<2x8x8x4xf32>, vector<2x8x8x4xf32>, vector<2x8x8x4xf32> -> vector<2x8x8x36xf32>
    %79 = vector.shape_cast %78 : vector<2x8x8x36xf32> to vector<128x36xf32>
    %80 = tpu.concatenate %19, %39, %59, %79 in 0 : vector<128x36xf32>, vector<128x36xf32>, vector<128x36xf32>, vector<128x36xf32> -> vector<512x36xf32>
    %c0_176 = arith.constant 0 : index
    %c0_177 = arith.constant 0 : index
    %81 = vector.load %arg3[%c0_176, %c0_177] : memref<36x8xf32, #tpu.memory_space<vmem>>, vector<36x8xf32>
    %cst = arith.constant dense<0.000000e+00> : vector<512x8xf32>
    %82 = tpu.matmul %80, %81, %cst {dimension_numbers = #tpu.dot_dimension_numbers<[1], [0], [0], [1], [0, 0, 1, 1], [], []>} : vector<512x36xf32>, vector<36x8xf32>, vector<512x8xf32> -> vector<512x8xf32>
    %83 = vector.extract_strided_slice %82 {offsets = [0, 0], sizes = [128, 8], strides = [1, 1]} : vector<512x8xf32> to vector<128x8xf32>
    %84 = vector.extract_strided_slice %82 {offsets = [128, 0], sizes = [128, 8], strides = [1, 1]} : vector<512x8xf32> to vector<128x8xf32>
    %85 = arith.maximumf %83, %84 : vector<128x8xf32>
    %86 = vector.extract_strided_slice %82 {offsets = [256, 0], sizes = [128, 8], strides = [1, 1]} : vector<512x8xf32> to vector<128x8xf32>
    %87 = vector.extract_strided_slice %82 {offsets = [384, 0], sizes = [128, 8], strides = [1, 1]} : vector<512x8xf32> to vector<128x8xf32>
    %88 = arith.maximumf %86, %87 : vector<128x8xf32>
    %89 = arith.maximumf %85, %88 : vector<128x8xf32>
    %c0_178 = arith.constant 0 : index
    %c0_179 = arith.constant 0 : index
    %90 = vector.load %arg4[%c0_178, %c0_179] : memref<1x8xf32, #tpu.memory_space<vmem>>, vector<1x8xf32>
    %91 = vector.broadcast %90 : vector<1x8xf32> to vector<128x8xf32>
    %92 = arith.addf %89, %91 : vector<128x8xf32>
    %cst_180 = arith.constant 0.000000e+00 : f32
    %93 = vector.broadcast %cst_180 : f32 to vector<128x8xf32>
    %94 = arith.maximumf %92, %93 : vector<128x8xf32>
    %cst_181 = arith.constant 0.000000e+00 : f32
    %95 = vector.broadcast %cst_181 : f32 to vector<2x1x10x8xf32>
    %cst_182 = arith.constant 0.000000e+00 : f32
    %96 = vector.broadcast %cst_182 : f32 to vector<2x10x1x8xf32>
    %c0_183 = arith.constant 0 : index
    %c0_184 = arith.constant 0 : index
    %c0_185 = arith.constant 0 : index
    %c0_186 = arith.constant 0 : index
    %97 = vector.load %arg12[%c0_183, %c0_184, %c0_185, %c0_186] : memref<2x10x10x8xf32, #tpu.memory_space<vmem>>, vector<2x1x10x8xf32>
    tpu.vector_store %arg12[%c0_183, %c0_184, %c0_185, %c0_186], %95 {strides = array<i32>} : memref<2x10x10x8xf32, #tpu.memory_space<vmem>>, vector<2x1x10x8xf32>,
    %c0_187 = arith.constant 0 : index
    %c9 = arith.constant 9 : index
    %c0_188 = arith.constant 0 : index
    %c0_189 = arith.constant 0 : index
    %98 = vector.load %arg12[%c0_187, %c9, %c0_188, %c0_189] : memref<2x10x10x8xf32, #tpu.memory_space<vmem>>, vector<2x1x10x8xf32>
    tpu.vector_store %arg12[%c0_187, %c9, %c0_188, %c0_189], %95 {strides = array<i32>} : memref<2x10x10x8xf32, #tpu.memory_space<vmem>>, vector<2x1x10x8xf32>,
    %c0_190 = arith.constant 0 : index
    %c0_191 = arith.constant 0 : index
    %c0_192 = arith.constant 0 : index
    %c0_193 = arith.constant 0 : index
    %99 = vector.load %arg12[%c0_190, %c0_191, %c0_192, %c0_193] : memref<2x10x10x8xf32, #tpu.memory_space<vmem>>, vector<2x10x1x8xf32>
    tpu.vector_store %arg12[%c0_190, %c0_191, %c0_192, %c0_193], %96 {strides = array<i32>} : memref<2x10x10x8xf32, #tpu.memory_space<vmem>>, vector<2x10x1x8xf32>,
    %c0_194 = arith.constant 0 : index
    %c0_195 = arith.constant 0 : index
    %c9_196 = arith.constant 9 : index
    %c0_197 = arith.constant 0 : index
    %100 = vector.load %arg12[%c0_194, %c0_195, %c9_196, %c0_197] : memref<2x10x10x8xf32, #tpu.memory_space<vmem>>, vector<2x10x1x8xf32>
    tpu.vector_store %arg12[%c0_194, %c0_195, %c9_196, %c0_197], %96 {strides = array<i32>} : memref<2x10x10x8xf32, #tpu.memory_space<vmem>>, vector<2x10x1x8xf32>,
    %101 = vector.shape_cast %94 : vector<128x8xf32> to vector<2x8x8x8xf32>
    %c0_198 = arith.constant 0 : index
    %c1_199 = arith.constant 1 : index
    %c1_200 = arith.constant 1 : index
    %c0_201 = arith.constant 0 : index
    %102 = vector.load %arg12[%c0_198, %c1_199, %c1_200, %c0_201] : memref<2x10x10x8xf32, #tpu.memory_space<vmem>>, vector<2x8x8x8xf32>
    tpu.vector_store %arg12[%c0_198, %c1_199, %c1_200, %c0_201], %101 {strides = array<i32>} : memref<2x10x10x8xf32, #tpu.memory_space<vmem>>, vector<2x8x8x8xf32>,
    %c0_202 = arith.constant 0 : index
    %c0_203 = arith.constant 0 : index
    %c0_204 = arith.constant 0 : index
    %c0_205 = arith.constant 0 : index
    %103 = vector.load %arg12[%c0_202, %c0_203, %c0_204, %c0_205] : memref<2x10x10x8xf32, #tpu.memory_space<vmem>>, vector<2x8x8x8xf32>
    %c0_206 = arith.constant 0 : index
    %c0_207 = arith.constant 0 : index
    %c1_208 = arith.constant 1 : index
    %c0_209 = arith.constant 0 : index
    %104 = vector.load %arg12[%c0_206, %c0_207, %c1_208, %c0_209] : memref<2x10x10x8xf32, #tpu.memory_space<vmem>>, vector<2x8x8x8xf32>
    %c0_210 = arith.constant 0 : index
    %c0_211 = arith.constant 0 : index
    %c2_212 = arith.constant 2 : index
    %c0_213 = arith.constant 0 : index
    %105 = vector.load %arg12[%c0_210, %c0_211, %c2_212, %c0_213] : memref<2x10x10x8xf32, #tpu.memory_space<vmem>>, vector<2x8x8x8xf32>
    %c0_214 = arith.constant 0 : index
    %c1_215 = arith.constant 1 : index
    %c0_216 = arith.constant 0 : index
    %c0_217 = arith.constant 0 : index
    %106 = vector.load %arg12[%c0_214, %c1_215, %c0_216, %c0_217] : memref<2x10x10x8xf32, #tpu.memory_space<vmem>>, vector<2x8x8x8xf32>
    %c0_218 = arith.constant 0 : index
    %c1_219 = arith.constant 1 : index
    %c1_220 = arith.constant 1 : index
    %c0_221 = arith.constant 0 : index
    %107 = vector.load %arg12[%c0_218, %c1_219, %c1_220, %c0_221] : memref<2x10x10x8xf32, #tpu.memory_space<vmem>>, vector<2x8x8x8xf32>
    %c0_222 = arith.constant 0 : index
    %c1_223 = arith.constant 1 : index
    %c2_224 = arith.constant 2 : index
    %c0_225 = arith.constant 0 : index
    %108 = vector.load %arg12[%c0_222, %c1_223, %c2_224, %c0_225] : memref<2x10x10x8xf32, #tpu.memory_space<vmem>>, vector<2x8x8x8xf32>
    %c0_226 = arith.constant 0 : index
    %c2_227 = arith.constant 2 : index
    %c0_228 = arith.constant 0 : index
    %c0_229 = arith.constant 0 : index
    %109 = vector.load %arg12[%c0_226, %c2_227, %c0_228, %c0_229] : memref<2x10x10x8xf32, #tpu.memory_space<vmem>>, vector<2x8x8x8xf32>
    %c0_230 = arith.constant 0 : index
    %c2_231 = arith.constant 2 : index
    %c1_232 = arith.constant 1 : index
    %c0_233 = arith.constant 0 : index
    %110 = vector.load %arg12[%c0_230, %c2_231, %c1_232, %c0_233] : memref<2x10x10x8xf32, #tpu.memory_space<vmem>>, vector<2x8x8x8xf32>
    %c0_234 = arith.constant 0 : index
    %c2_235 = arith.constant 2 : index
    %c2_236 = arith.constant 2 : index
    %c0_237 = arith.constant 0 : index
    %111 = vector.load %arg12[%c0_234, %c2_235, %c2_236, %c0_237] : memref<2x10x10x8xf32, #tpu.memory_space<vmem>>, vector<2x8x8x8xf32>
    %112 = tpu.concatenate %103, %104, %105, %106, %107, %108, %109, %110, %111 in 3 : vector<2x8x8x8xf32>, vector<2x8x8x8xf32>, vector<2x8x8x8xf32>, vector<2x8x8x8xf32>, vector<2x8x8x8xf32>, vector<2x8x8x8xf32>, vector<2x8x8x8xf32>, vector<2x8x8x8xf32>, vector<2x8x8x8xf32> -> vector<2x8x8x72xf32>
    %113 = vector.shape_cast %112 : vector<2x8x8x72xf32> to vector<128x72xf32>
    %c0_238 = arith.constant 0 : index
    %c0_239 = arith.constant 0 : index
    %114 = vector.load %arg5[%c0_238, %c0_239] : memref<72x16xf32, #tpu.memory_space<vmem>>, vector<72x16xf32>
    %cst_240 = arith.constant dense<0.000000e+00> : vector<128x16xf32>
    %115 = tpu.matmul %113, %114, %cst_240 {dimension_numbers = #tpu.dot_dimension_numbers<[1], [0], [0], [1], [0, 0, 1, 1], [], []>} : vector<128x72xf32>, vector<72x16xf32>, vector<128x16xf32> -> vector<128x16xf32>
    %c0_241 = arith.constant 0 : index
    %c0_242 = arith.constant 0 : index
    %116 = vector.load %arg6[%c0_241, %c0_242] : memref<1x16xf32, #tpu.memory_space<vmem>>, vector<1x16xf32>
    %117 = vector.broadcast %116 : vector<1x16xf32> to vector<128x16xf32>
    %118 = arith.addf %115, %117 : vector<128x16xf32>
    %cst_243 = arith.constant 0.000000e+00 : f32
    %119 = vector.broadcast %cst_243 : f32 to vector<128x16xf32>
    %120 = arith.maximumf %118, %119 : vector<128x16xf32>
    %c0_244 = arith.constant 0 : index
    %c0_245 = arith.constant 0 : index
    %121 = vector.load %arg2[%c0_244, %c0_245] : memref<2x128xf32, #tpu.memory_space<vmem>>, vector<2x128xf32>
    %cst_246 = arith.constant dense<0.000000e+00> : vector<2x16xf32>
    %122 = tpu.matmul %121, %120, %cst_246 {dimension_numbers = #tpu.dot_dimension_numbers<[1], [0], [0], [1], [0, 0, 1, 1], [], []>} : vector<2x128xf32>, vector<128x16xf32>, vector<2x16xf32> -> vector<2x16xf32>
    %c0_247 = arith.constant 0 : index
    %c0_248 = arith.constant 0 : index
    %123 = vector.load %arg7[%c0_247, %c0_248] : memref<16x32xf32, #tpu.memory_space<vmem>>, vector<16x32xf32>
    %cst_249 = arith.constant dense<0.000000e+00> : vector<2x32xf32>
    %124 = tpu.matmul %122, %123, %cst_249 {dimension_numbers = #tpu.dot_dimension_numbers<[1], [0], [0], [1], [0, 0, 1, 1], [], []>} : vector<2x16xf32>, vector<16x32xf32>, vector<2x32xf32> -> vector<2x32xf32>
    %c0_250 = arith.constant 0 : index
    %c0_251 = arith.constant 0 : index
    %125 = vector.load %arg8[%c0_250, %c0_251] : memref<1x32xf32, #tpu.memory_space<vmem>>, vector<1x32xf32>
    %126 = vector.broadcast %125 : vector<1x32xf32> to vector<2x32xf32>
    %127 = arith.addf %124, %126 : vector<2x32xf32>
    %cst_252 = arith.constant 0.000000e+00 : f32
    %128 = vector.broadcast %cst_252 : f32 to vector<2x32xf32>
    %129 = arith.maximumf %127, %128 : vector<2x32xf32>
    %c0_253 = arith.constant 0 : index
    %c0_254 = arith.constant 0 : index
    %130 = vector.load %arg9[%c0_253, %c0_254] : memref<32x128xf32, #tpu.memory_space<vmem>>, vector<32x128xf32>
    %cst_255 = arith.constant dense<0.000000e+00> : vector<2x128xf32>
    %131 = tpu.matmul %129, %130, %cst_255 {dimension_numbers = #tpu.dot_dimension_numbers<[1], [0], [0], [1], [0, 0, 1, 1], [], []>} : vector<2x32xf32>, vector<32x128xf32>, vector<2x128xf32> -> vector<2x128xf32>
    %c0_256 = arith.constant 0 : index
    %c0_257 = arith.constant 0 : index
    %132 = vector.load %arg10[%c0_256, %c0_257] : memref<1x128xf32, #tpu.memory_space<vmem>>, vector<1x128xf32>
    %133 = vector.broadcast %132 : vector<1x128xf32> to vector<2x128xf32>
    %134 = arith.addf %131, %133 : vector<2x128xf32>
    %c0_258 = arith.constant 0 : index
    %c0_259 = arith.constant 0 : index
    %135 = vector.load %arg11[%c0_258, %c0_259] : memref<2x128xf32, #tpu.memory_space<vmem>>, vector<2x128xf32>
    tpu.vector_store %arg11[%c0_258, %c0_259], %134 {strides = array<i32>} : memref<2x128xf32, #tpu.memory_space<vmem>>, vector<2x128xf32>,
    return
  }
  func.func @transform_0(%arg0: i32) -> (i32, i32, i32, i32, i32) {
    %c0_i32 = arith.constant 0 : i32
    %c0_i32_0 = arith.constant 0 : i32
    %c0_i32_1 = arith.constant 0 : i32
    %c0_i32_2 = arith.constant 0 : i32
    %c0_i32_3 = arith.constant 0 : i32
    return %arg0, %c0_i32, %c0_i32_0, %c0_i32_1, %c0_i32_2 : i32, i32, i32, i32, i32
  }
  func.func @transform_1(%arg0: i32) -> (i32, i32) {
    %c0_i32 = arith.constant 0 : i32
    %c0_i32_0 = arith.constant 0 : i32
    %c0_i32_1 = arith.constant 0 : i32
    return %c0_i32, %c0_i32_0 : i32, i32
  }
  func.func @transform_2(%arg0: i32) -> (i32, i32) {
    %c0_i32 = arith.constant 0 : i32
    %c0_i32_0 = arith.constant 0 : i32
    %c0_i32_1 = arith.constant 0 : i32
    return %c0_i32, %c0_i32_0 : i32, i32
  }
  func.func @transform_3(%arg0: i32) -> (i32, i32) {
    %c0_i32 = arith.constant 0 : i32
    %c0_i32_0 = arith.constant 0 : i32
    %c0_i32_1 = arith.constant 0 : i32
    return %c0_i32, %c0_i32_0 : i32, i32
  }
  func.func @transform_4(%arg0: i32) -> (i32, i32) {
    %c0_i32 = arith.constant 0 : i32
    %c0_i32_0 = arith.constant 0 : i32
    %c0_i32_1 = arith.constant 0 : i32
    return %c0_i32, %c0_i32_0 : i32, i32
  }
  func.func @transform_5(%arg0: i32) -> (i32, i32) {
    %c0_i32 = arith.constant 0 : i32
    %c0_i32_0 = arith.constant 0 : i32
    %c0_i32_1 = arith.constant 0 : i32
    return %c0_i32, %c0_i32_0 : i32, i32
  }
  func.func @transform_6(%arg0: i32) -> (i32, i32) {
    %c0_i32 = arith.constant 0 : i32
    %c0_i32_0 = arith.constant 0 : i32
    %c0_i32_1 = arith.constant 0 : i32
    return %c0_i32, %c0_i32_0 : i32, i32
  }
  func.func @transform_7(%arg0: i32) -> (i32, i32) {
    %c0_i32 = arith.constant 0 : i32
    %c0_i32_0 = arith.constant 0 : i32
    %c0_i32_1 = arith.constant 0 : i32
    return %c0_i32, %c0_i32_0 : i32, i32
  }
  func.func @transform_8(%arg0: i32) -> (i32, i32) {
    %c0_i32 = arith.constant 0 : i32
    %c0_i32_0 = arith.constant 0 : i32
    %c0_i32_1 = arith.constant 0 : i32
    return %c0_i32, %c0_i32_0 : i32, i32
  }
  func.func @transform_9(%arg0: i32) -> (i32, i32) {
    %c0_i32 = arith.constant 0 : i32
    %c0_i32_0 = arith.constant 0 : i32
    %c0_i32_1 = arith.constant 0 : i32
    return %c0_i32, %c0_i32_0 : i32, i32
  }
  func.func @transform_10(%arg0: i32) -> (i32, i32) {
    %c0_i32 = arith.constant 0 : i32
    %c0_i32_0 = arith.constant 0 : i32
    return %arg0, %c0_i32 : i32, i32
  }
}

</mosaic_0001>

<bundles_post_ra>
// kernel: simsiam_classifier_forward.1
= control target key start
LH: loop header
LB: loop body
LE: loop exit
PB: predicated region body
PF: predicated region fallthrough
CT: control target
= control target key end

     0   :  { %s5490_s17 = smov 8   ;;  %s5491_s18 = smov 4   ;;  %s9924_s0 = inlined_call_operand.vmem [shape: f32[2,4,9,9,4], index: 0, kind: input, shape index: {}]   ;;  %s9925_s1 = inlined_call_operand.vmem [shape: f32[2,128], index: 1, kind: input, shape index: {}]   ;;  %s9926_s2 = inlined_call_operand.vmem [shape: f32[36,8], index: 2, kind: input, shape index: {}]   ;;  %s9927_s3 = inlined_call_operand.vmem [shape: f32[1,8], index: 3, kind: input, shape index: {}]   ;;  %s9928_s4 = inlined_call_operand.vmem [shape: f32[72,16], index: 4, kind: input, shape index: {}]   ;;  %s9929_s5 = inlined_call_operand.vmem [shape: f32[1,16], index: 5, kind: input, shape index: {}]   ;;  %s9930_s6 = inlined_call_operand.vmem [shape: f32[16,32], index: 6, kind: input, shape index: {}]   ;;  %s9931_s7 = inlined_call_operand.vmem [shape: f32[1,32], index: 7, kind: input, shape index: {}]   ;;  %s9932_s8 = inlined_call_operand.vmem [shape: f32[32,128], index: 8, kind: input, shape index: {}]   ;;  %s9933_s9 = inlined_call_operand.vmem [shape: f32[1,128], index: 9, kind: input, shape index: {}]   ;;  %s9934_s10 = inlined_call_operand.hbm [shape: f32[2,128], index: 10, kind: output, shape index: {}]  }
   0x1   :  { %v5564_v0 = vld [vmem:[%s9924_s0 + $0x1] sm:$0xff]  ;;  %v4605_v1 = vld [vmem:[%s9924_s0 + $0x90] sm:$0xff]  ;;  %s5492_s27 = smov 12   ;;  %s5493_s12 = smov 16  }
   0x2   :  { %265 = vrot.lane.b32.xlu1 %v5564_v0, %s5490_s17  ;;  %201 = vrot.lane.b32.xlu0 %v4605_v1, %s5491_s18  ;;  %v5575_v2 = vld [vmem:[%s9924_s0 + $0x11] sm:$0xff]  ;;  %v5580_v3 = vld [vmem:[%s9924_s0 + $0xa0] sm:$0xff]  ;;  %s5494_s19 = smov 20  }
   0x3   :  { %v4622_v4 = vld [vmem:[%s9924_s0 + $0x130] sm:$0xff]  ;;  %v4621_v5 = vld [vmem:[%s9924_s0 + $0x120] sm:$0xff] }
   0x4   :  { %v5597_v6 = vld [vmem:[%s9924_s0 + $0xb0] sm:$0xff]  ;;  %v5611_v8 = vld [vmem:[%s9924_s0 + $0x121] sm:$0xff] }
   0x5   :  { %v5602_v7 = vld [vmem:[%s9924_s0 + $0x1b0] sm:$0xff]  ;;  %v5616_v9 = vld [vmem:[%s9924_s0 + $0x1c0] sm:$0xff] }
   0x6   :  { %267 = vrot.lane.b32.xlu1 %v5575_v2, %s5490_s17  ;;  %203 = vrot.lane.b32.xlu0 %v5580_v3, %s5491_s18  ;;  %v5625_v10 = vld [vmem:[%s9924_s0 + $0x21] sm:$0xff]  ;;  %v5639_v12 = vld [vmem:[%s9924_s0 + $0x10] sm:$0xff] }
   0x7   :  { %v5630_v11 = vld [vmem:[%s9924_s0 + $0xc0] sm:$0xff]  ;;  %v5644_v13 = vld [vmem:[%s9924_s0 + $0x131] sm:$0xff] }
   0xa   :  { %331 = vrot.lane.b32.xlu1 %v4622_v4, %s5492_s27  ;;  %329 = vrot.lane.b32.xlu0 %v4621_v5, %s5492_s27 }
   0xe   :  { %205 = vrot.lane.b32.xlu1 %v5597_v6, %s5491_s18  ;;  %393 = vrot.lane.b32.xlu0 %v5602_v7, %s5493_s12 }
  0x12   :  { %457 = vrot.lane.b32.xlu1 %v5611_v8, %s5494_s19  ;;  %395 = vrot.lane.b32.xlu0 %v5616_v9, %s5493_s12 }
  0x16   :  { %269 = vrot.lane.b32.xlu1 %v5625_v10, %s5490_s17  ;;  %207 = vrot.lane.b32.xlu0 %v5630_v11, %s5491_s18 }
  0x17   :  { %15 = vsyncpa [#allocation4], 0  ;;  %v2595_v14 = vld [vmem:[%s9926_s2] sm:$0xff]  ;;  %s5495_s11 = smov 24   ;;  %v2596_v15 = vld [vmem:[%s9926_s2 + $0x8] sm:$0xff]  ;;  %s5496_s29 = smov 28  }
  0x18   :  { %v4623_v16 = vld [vmem:[%s9924_s0 + $0x140] sm:$0xff]  ;;  %v5662_v17 = vld [vmem:[%s9924_s0 + $0x31] sm:$0xff]  ;;  %v5236_v18 = vpack.c.bf16 %v2596_v15, %v2595_v14  ;;  %vm2793_vm0 = vcmask 1043456   ;;  %vm697_vm1 = vcmask 31744   ;;  %vm714_vm2 = vcmask 64512   ;;  %s5499_s13 = smov 40  }
  0x19   :  { %v2597_v19 = vld [vmem:[%s9926_s2 + $0x10] sm:$0xff]  ;;  %v2598_v20 = vld [vmem:[%s9926_s2 + $0x18] sm:$0xff]  ;;  %v5676_v21 = vld [vmem:[%s9924_s0 + $0x20] sm:$0xff]  ;;  %vm731_vm3 = vcmask 97280   ;;  %vm748_vm4 = vcmask 130048   ;;  %vm765_vm5 = vcmask 162816  }
  0x1a   :  { %521 = vrot.lane.b32.xlu1 %v5639_v12, %s5495_s11  ;;  %459 = vrot.lane.b32.xlu0 %v5644_v13, %s5494_s19  ;;  %v5240_v22 = vpack.c.bf16 %v2598_v20, %v2597_v19  ;;  %v2599_v23 = vld [vmem:[%s9926_s2 + $0x20] sm:$0xf]  ;;  %v5688_v24 = vld [vmem:[%s9924_s0 + $0x1d0] sm:$0xff]  ;;  %s5497_s2 = smov 32   ;;  %vm782_vm6 = vcmask 195584   ;;  %vm799_vm7 = vcmask 228352  }
  0x1b   :  { %5237 = vmatprep.subr.bf16.mxu0 %v5236_v18  ;;  %5293 = vmatprep.subr.bf16.mxu1 %v5236_v18  ;;  %v4624_v25 = vld [vmem:[%s9924_s0 + $0x150] sm:$0xff]  ;;  %v5703_v26 = vld [vmem:[%s9924_s0 + $0x1e0] sm:$0xff]  ;;  %vm816_vm8 = vcmask 261120   ;;  %vm2600_vm9 = vcmask 293888   ;;  %vm3279_vm10 = vcmask 57344   ;;  %vm3270_vm11 = vcmask 58368  }
  0x1c   :  { %5239 = vmatpush3.bf16.msra.mxu0 %v5236_v18  ;;  %5296 = vmatpush3.bf16.msra.mxu1 %v5236_v18  ;;  %v5708_v27 = vld [vmem:[%s9924_s0 + $0xd0] sm:$0xff]  ;;  %v5717_v28 = vld [vmem:[%s9924_s0 + $0x141] sm:$0xff]  ;;  %s5500_s14 = smov 48   ;;  %s5502_s23 = smov 64   ;;  %vm4058_vm12 = vcmask 326656   ;;  %vm4075_vm13 = vcmask 392192  }
  0x1d   :  { %5241 = vmatprep.subr.bf16.mxu0 %v5240_v22  ;;  %5294 = vmatprep.subr.bf16.mxu1 %v5240_v22  ;;  %v5726_v29 = vld [vmem:[%s9924_s0 + $0x41] sm:$0xff]  ;;  %v5740_v31 = vld [vmem:[%s9924_s0 + $0x30] sm:$0xff]  ;;  %vm4092_vm14 = vcmask 457728   ;;  %vm4109_vm15 = vcmask 523264   ;;  %s5505_s26 = smov [#allocation3]  }
  0x1e   :  { %333 = vrot.lane.b32.xlu1 %v4623_v16, %s5492_s27  ;;  %271 = vrot.lane.b32.xlu0 %v5662_v17, %s5490_s17  ;;  %v5731_v30 = vld [vmem:[%s9924_s0 + $0xe0] sm:$0xff]  ;;  %v5745_v32 = vld [vmem:[%s9924_s0 + $0x151] sm:$0xff]  ;;  %s4597_s28 = sshll.u32 %s5505_s26, 4  ;;  %s4598_s28 = int_to_ptr.vmem [resolvable:$true] %s4597_s28 }
  0x1f   :  { %v4625_v33 = vld [vmem:[%s9924_s0 + $0x160] sm:$0xff]  ;;  %v5757_v34 = vld [vmem:[%s9924_s0 + $0x51] sm:$0xff]  ;;  %p5471_p1 = scmp.lt.s32.totalorder %s4598_s28, %s4598_s28 }
  0x20   :  { %5243 = vmatpush3.bf16.msra.mxu0 %v5240_v22  ;;  %5297 = vmatpush3.bf16.msra.mxu1 %v5240_v22  ;;  %v5765_v35 = vld [vmem:[%s9924_s0 + $0x40] sm:$0xff]  ;;  %v5774_v36 = vld [vmem:[%s9924_s0 + $0x1f0] sm:$0xff] }
  0x21   :  { %5043 = vmatprep.subr.msk.mxu0 %vm2793_vm0, %v2599_v23  ;;  %5295 = vmatprep.subr.msk.mxu1 %vm2793_vm0, %v2599_v23  ;;  %v4626_v37 = vld [vmem:[%s9924_s0 + $0x170] sm:$0xff]  ;;  %v5789_v38 = vld [vmem:[%s9924_s0 + $0x200] sm:$0xff] }
  0x22   :  { %585 = vrot.lane.b32.xlu1 %v5580_v3, %s5496_s29  ;;  %523 = vrot.lane.b32.xlu0 %v5676_v21, %s5495_s11  ;;  %v5794_v39 = vld [vmem:[%s9924_s0 + $0xf0] sm:$0xff]  ;;  %v5803_v40 = vld [vmem:[%s9924_s0 + $0x161] sm:$0xff] }
  0x23   :  { %v5812_v41 = vld [vmem:[%s9924_s0 + $0x61] sm:$0xff]  ;;  %v5826_v43 = vld [vmem:[%s9924_s0 + $0x50] sm:$0xff] }
  0x24   :  { %5044 = vmatpush3.msk.msra.mxu0 %vm2793_vm0, %v2599_v23  ;;  %5298 = vmatpush3.msk.msra.mxu1 %vm2793_vm0, %v2599_v23  ;;  %v5817_v42 = vld [vmem:[%s9924_s0 + $0x100] sm:$0xff]  ;;  %v5831_v44 = vld [vmem:[%s9924_s0 + $0x171] sm:$0xff]  ;;  %vm4142_vm0 = vcmask 588800  }
  0x25   :  { %10001 = vst [vmem:[#allocation6_spill] sm:$0xff] %v5817_v42  ;;  %v4627_v45 = vld [vmem:[%s9924_s0 + $0x180] sm:$0xff]  ;;  %v5843_v46 = vld [vmem:[%s9924_s0 + $0x71] sm:$0xff] }
  0x26   :  { %397 = vrot.lane.b32.xlu1 %v5688_v24, %s5493_s12  ;;  %335 = vrot.lane.b32.xlu0 %v4624_v25, %s5492_s27  ;;  %v5851_v47 = vld [vmem:[%s9924_s0 + $0x60] sm:$0xff]  ;;  %v5860_v48 = vld [vmem:[%s9924_s0 + $0x210] sm:$0xff] }
  0x27   :  { %v4628_v49 = vld [vmem:[%s9924_s0 + $0x190] sm:$0xff]  ;;  %v5875_v50 = vld [vmem:[%s9924_s0 + $0x220] sm:$0xff] }
  0x28   :  { %10002 = vst [vmem:[#allocation7_spill] sm:$0xff] %v5875_v50  ;;  %v4613_v51 = vld [vmem:[%s9924_s0 + $0x2d0] sm:$0xff]  ;;  %v5886_v52 = vld [vmem:[%s9924_s0 + $0x181] sm:$0xff] }
  0x29   :  { %10003 = vst [vmem:[#allocation8_spill] sm:$0xff] %v5886_v52  ;;  %v5895_v53 = vld [vmem:[%s9924_s0 + $0x241] sm:$0xff]  ;;  %v5909_v57 = vld [vmem:[%s9924_s0 + $0x70] sm:$0xff] }
  0x2a   :  { %649 = vrot.lane.b32.xlu1 %v5575_v2, %s5497_s2  ;;  %587 = vrot.lane.b32.xlu0 %v5597_v6, %s5496_s29  ;;  %10004 = vst [vmem:[#allocation9_spill] sm:$0xff] %v5895_v53  ;;  %v5900_v54 = vld [vmem:[%s9924_s0 + $0x2e0] sm:$0xff]  ;;  %v5914_v58 = vld [vmem:[%s9924_s0 + $0x191] sm:$0xff] }
  0x2b   :  { %10005 = vst [vmem:[#allocation10_spill] sm:$0xff] %v5914_v58  ;;  %v4629_v61 = vld [vmem:[%s9924_s0 + $0x360] sm:$0xff]  ;;  %v5930_v62 = vld [vmem:[%s9924_s0 + $0x251] sm:$0xff] }
  0x2c   :  { %10006 = vst [vmem:[#allocation11_spill] sm:$0xff] %v5930_v62  ;;  %v4676_v4 = vld [vmem:[%s9924_s0 + $0x80] sm:$0xff]  ;;  %v5948_v15 = vld [vmem:[%s9924_s0 + $0x3f0] sm:$0xff] }
  0x2d   :  { %10007 = vst [vmem:[#allocation12_spill] sm:$0xff] %v5948_v15  ;;  %v4630_v16 = vld [vmem:[%s9924_s0 + $0x370] sm:$0xff]  ;;  %v5974_v25 = vld [vmem:[%s9924_s0 + $0x400] sm:$0xff] }
  0x2e   :  { %399 = vrot.lane.b32.xlu1 %v5703_v26, %s5493_s12  ;;  %209 = vrot.lane.b32.xlu0 %v5708_v27, %s5491_s18  ;;  %v5961_v20 = vld [vmem:[%s9924_s0 + $0x110] sm:$0xff]  ;;  %10009 = vst [vmem:[#allocation14_spill] sm:$0xff] %v5974_v25 }
  0x2f   :  { %10008 = vst [vmem:[#allocation13_spill] sm:$0xff] %v5961_v20 }
  0x32   :  { %651 = vrot.lane.b32.xlu1 %v5625_v10, %s5497_s2  ;;  %461 = vrot.lane.b32.xlu0 %v5717_v28, %s5494_s19 }
  0x36   :  { %273 = vrot.lane.b32.xlu1 %v5726_v29, %s5490_s17  ;;  %211 = vrot.lane.b32.xlu0 %v5731_v30, %s5491_s18 }
  0x3a   :  { %525 = vrot.lane.b32.xlu1 %v5740_v31, %s5495_s11  ;;  %463 = vrot.lane.b32.xlu0 %v5745_v32, %s5494_s19 }
  0x3e   :  { %337 = vrot.lane.b32.xlu1 %v4625_v33, %s5492_s27  ;;  %275 = vrot.lane.b32.xlu0 %v5757_v34, %s5490_s17  ;;  %v5979_v33 = vld [vmem:[%s9924_s0 + $0x2f0] sm:$0xff] }
  0x42   :  { %589 = vrot.lane.b32.xlu1 %v5630_v11, %s5496_s29  ;;  %527 = vrot.lane.b32.xlu0 %v5765_v35, %s5495_s11 }
  0x46   :  { %401 = vrot.lane.b32.xlu1 %v5774_v36, %s5493_s12  ;;  %339 = vrot.lane.b32.xlu0 %v4626_v37, %s5492_s27 }
  0x4a   :  { %653 = vrot.lane.b32.xlu1 %v5662_v17, %s5497_s2  ;;  %591 = vrot.lane.b32.xlu0 %v5708_v27, %s5496_s29 }
  0x4e   :  { %403 = vrot.lane.b32.xlu1 %v5789_v38, %s5493_s12  ;;  %213 = vrot.lane.b32.xlu0 %v5794_v39, %s5491_s18 }
  0x52   :  { %655 = vrot.lane.b32.xlu1 %v5726_v29, %s5497_s2  ;;  %465 = vrot.lane.b32.xlu0 %v5803_v40, %s5494_s19 }
  0x56   :  { %277 = vrot.lane.b32.xlu1 %v5812_v41, %s5490_s17  ;;  %215 = vrot.lane.b32.xlu0 %v5817_v42, %s5491_s18 }
  0x5a   :  { %529 = vrot.lane.b32.xlu1 %v5826_v43, %s5495_s11  ;;  %467 = vrot.lane.b32.xlu0 %v5831_v44, %s5494_s19 }
  0x5e   :  { %341 = vrot.lane.b32.xlu1 %v4627_v45, %s5492_s27  ;;  %279 = vrot.lane.b32.xlu0 %v5843_v46, %s5490_s17 }
  0x62   :  { %593 = vrot.lane.b32.xlu1 %v5731_v30, %s5496_s29  ;;  %531 = vrot.lane.b32.xlu0 %v5851_v47, %s5495_s11 }
  0x66   :  { %405 = vrot.lane.b32.xlu1 %v5860_v48, %s5493_s12  ;;  %343 = vrot.lane.b32.xlu0 %v4628_v49, %s5492_s27  ;;  %v5988_v49 = vld [vmem:[%s9924_s0 + $0x81] sm:$0xff] }
  0x67   :  { %10010 = vst [vmem:[#allocation15_spill] sm:$0xff] %v5988_v49 }
  0x6a   :  { %657 = vrot.lane.b32.xlu1 %v5757_v34, %s5497_s2  ;;  %595 = vrot.lane.b32.xlu0 %v5794_v39, %s5496_s29 }
  0x6e   :  { %407 = vrot.lane.b32.xlu1 %v5875_v50, %s5493_s12  ;;  %217 = vrot.lane.b32.xlu0 %v4613_v51, %s5491_s18  ;;  %v5993_v51 = vld [vmem:[%s9924_s0 + $0x361] sm:$0xff] }
  0x6f   :  { %10011 = vst [vmem:[#allocation16_spill] sm:$0xff] %v5993_v51 }
  0x72   :  { %659 = vrot.lane.b32.xlu1 %v5812_v41, %s5497_s2  ;;  %469 = vrot.lane.b32.xlu0 %v5886_v52, %s5494_s19 }
  0x74   :  { %v266_v55 = vpop.permute.xlu1 %265  ;;  %v202_v56 = vpop.permute.xlu0 %201 }
  0x76   :  { %281 = vrot.lane.b32.xlu1 %v5895_v53, %s5490_s17  ;;  %219 = vrot.lane.b32.xlu0 %v5900_v54, %s5491_s18 }
  0x78   :  { %v5916_v59 = vpop.permute.xlu1 %267  ;;  %v5918_v60 = vpop.permute.xlu0 %203 }
  0x7a   :  { %533 = vrot.lane.b32.xlu1 %v5909_v57, %s5495_s11  ;;  %471 = vrot.lane.b32.xlu0 %v5914_v58, %s5494_s19 }
  0x7c   :  { %v5932_v63 = vpop.permute.xlu1 %331  ;;  %v330_v1 = vpop.permute.xlu0 %329 }
  0x7e   :  { %345 = vrot.lane.b32.xlu1 %v4629_v61, %s5492_s27  ;;  %283 = vrot.lane.b32.xlu0 %v5930_v62, %s5490_s17 }
  0x80   :  { %v5940_v5 = vpop.permute.xlu1 %205  ;;  %v394_v14 = vpop.permute.xlu0 %393 }
  0x82   :  { %597 = vrot.lane.b32.xlu1 %v5817_v42, %s5496_s29  ;;  %535 = vrot.lane.b32.xlu0 %v4676_v4, %s5495_s11 }
  0x84   :  { %v458_v18 = vpop.permute.xlu1 %457  ;;  %v5953_v19 = vpop.permute.xlu0 %395 }
  0x86   :  { %409 = vrot.lane.b32.xlu1 %v5948_v15, %s5493_s12  ;;  %347 = vrot.lane.b32.xlu0 %v4630_v16, %s5492_s27  ;;  %v36_v16 = vld [vmem:[%s9924_s0] sm:$0xff] }
  0x87   :  { %v698_v15 = vsel %vm697_vm1, %v36_v16, %v202_v56  ;;  %v6030_v56 = vld [vmem:[%s9924_s0 + $0x371] sm:$0xff] }
  0x88   :  { %v5963_v22 = vpop.permute.xlu1 %269  ;;  %v5965_v23 = vpop.permute.xlu0 %207  ;;  %10013 = vst [vmem:[#allocation18_spill] sm:$0xff] %v6030_v56 }
  0x8a   :  { %661 = vrot.lane.b32.xlu1 %v5843_v46, %s5497_s2  ;;  %599 = vrot.lane.b32.xlu0 %v5961_v20, %s5496_s29  ;;  %v6014_v20 = vld [vmem:[%s9924_s0 + $0x300] sm:$0xff] }
  0x8c   :  { %v522_v37 = vpop.permute.xlu1 %521  ;;  %v460_v45 = vpop.permute.xlu0 %459 }
  0x8e   :  { %411 = vrot.lane.b32.xlu1 %v5974_v25, %s5493_s12  ;;  %221 = vrot.lane.b32.xlu0 %v5979_v33, %s5491_s18  ;;  %v6009_v25 = vld [vmem:[%s9924_s0 + $0x261] sm:$0xff] }
  0x8f   :  { %10012 = vst [vmem:[#allocation17_spill] sm:$0xff] %v6009_v25 }
  0x90   :  { %v5995_v61 = vpop.permute.xlu1 %333  ;;  %v5997_v4 = vpop.permute.xlu0 %271 }
  0x92   :  { %663 = vrot.lane.b32.xlu1 %v5988_v49, %s5497_s2  ;;  %473 = vrot.lane.b32.xlu0 %v5993_v51, %s5494_s19  ;;  %v715_v49 = vsel %vm714_vm2, %v698_v15, %v266_v55  ;;  %v6025_v51 = vld [vmem:[%s9924_s0 + $0x250] sm:$0xff] }
  0x93   :  { %v732_v16 = vsel %vm731_vm3, %v715_v49, %v330_v1  ;;  %v4631_v1 = vld [vmem:[%s9924_s0 + $0x380] sm:$0xff] }
  0x94   :  { %v586_v42 = vpop.permute.xlu1 %585  ;;  %v524_v53 = vpop.permute.xlu0 %523  ;;  %v749_v55 = vsel %vm748_vm4, %v732_v16, %v394_v14  ;;  %v6050_v14 = vld [vmem:[%s9924_s0 + $0x271] sm:$0xff] }
  0x95   :  { %v766_v15 = vsel %vm765_vm5, %v749_v55, %v458_v18  ;;  %10014 = vst [vmem:[#allocation19_spill] sm:$0xff] %v6050_v14  ;;  %v699_v18 = vsel %vm697_vm1, %v5639_v12, %v5918_v60  ;;  %v6066_v12 = vld [vmem:[%s9924_s0 + $0x260] sm:$0xff] }
  0x96   :  { %285 = vrot.lane.b32.xlu1 %v6009_v25, %s5490_s17  ;;  %223 = vrot.lane.b32.xlu0 %v6014_v20, %s5491_s18  ;;  %v783_v52 = vsel %vm782_vm6, %v766_v15, %v522_v37  ;;  %v716_v15 = vsel %vm714_vm2, %v699_v18, %v5916_v59  ;;  %v4632_v18 = vld [vmem:[%s9924_s0 + $0x390] sm:$0xff] }
  0x97   :  { %v800_v49 = vsel %vm799_vm7, %v783_v52, %v586_v42  ;;  %v733_v42 = vsel %vm731_vm3, %v716_v15, %v5932_v63  ;;  %v6085_v63 = vld [vmem:[%s9924_s0 + $0x410] sm:$0xff] }
  0x98   :  { %v6033_v58 = vpop.permute.xlu1 %397  ;;  %v6035_v50 = vpop.permute.xlu0 %335  ;;  %10015 = vst [vmem:[#allocation20_spill] sm:$0xff] %v6085_v63  ;;  %v6112_v15 = vld [vmem:[%s9924_s0 + $0x310] sm:$0xff] }
  0x99   :  { %10017 = vst [vmem:[#allocation22_spill] sm:$0xff] %v6112_v15 }
  0x9a   :  { %537 = vrot.lane.b32.xlu1 %v6025_v51, %s5495_s11  ;;  %475 = vrot.lane.b32.xlu0 %v6030_v56, %s5494_s19 }
  0x9c   :  { %v650_v16 = vpop.permute.xlu1 %649  ;;  %v588_v55 = vpop.permute.xlu0 %587 }
  0x9d   :  { %v817_v37 = vsel %vm816_vm8, %v800_v49, %v650_v16 }
  0x9e   :  { %349 = vrot.lane.b32.xlu1 %v4631_v1, %s5492_s27  ;;  %287 = vrot.lane.b32.xlu0 %v6050_v14, %s5490_s17  ;;  %v750_v1 = vsel %vm748_vm4, %v733_v42, %v5953_v19 }
  0x9f   :  { %5045 = vmatprep.mubr.msk.f32.mxu0 %vm2600_vm9, %v817_v37  ;;  %v767_v49 = vsel %vm765_vm5, %v750_v1, %v460_v45 }
  0xa0   :  { %v6070_v52 = vpop.permute.xlu1 %399  ;;  %v6072_v60 = vpop.permute.xlu0 %209  ;;  %v784_v59 = vsel %vm782_vm6, %v767_v49, %v524_v53 }
  0xa1   :  { %v801_v19 = vsel %vm799_vm7, %v784_v59, %v588_v55  ;;  %v6107_v55 = vld [vmem:[%s9924_s0 + $0x420] sm:$0xff] }
  0xa2   :  { %601 = vrot.lane.b32.xlu1 %v5900_v54, %s5496_s29  ;;  %539 = vrot.lane.b32.xlu0 %v6066_v12, %s5495_s11  ;;  %10016 = vst [vmem:[#allocation21_spill] sm:$0xff] %v6107_v55 }
  0xa4   :  { %v652_v45 = vpop.permute.xlu1 %651  ;;  %v462_v16 = vpop.permute.xlu0 %461 }
  0xa5   :  { %v818_v54 = vsel %vm816_vm8, %v801_v19, %v652_v45  ;;  %v6139_v19 = vld [vmem:[%s9924_s0 + $0x320] sm:$0xff] }
  0xa6   :  { %413 = vrot.lane.b32.xlu1 %v6085_v63, %s5493_s12  ;;  %351 = vrot.lane.b32.xlu0 %v4632_v18, %s5492_s27  ;;  %v6134_v18 = vld [vmem:[%s9924_s0 + $0x281] sm:$0xff]  ;;  %v6153_v63 = vld [vmem:[%s9924_s0 + $0x270] sm:$0xff] }
  0xa7   :  { %5046 = vmatmul.mubr.msk.f32.vlgmr.msra.gmra.mrb[0].mxu0 %vm2600_vm9, %v818_v54  ;;  %10019 = vst [vmem:[#allocation24_spill] sm:$0xff] %v6134_v18 }
  0xa8   :  { %v6096_v53 = vpop.permute.xlu1 %273  ;;  %v6098_v37 = vpop.permute.xlu0 %211 }
  0xaa   :  { %665 = vrot.lane.b32.xlu1 %v5930_v62, %s5497_s2  ;;  %603 = vrot.lane.b32.xlu0 %v5979_v33, %s5496_s29  ;;  %v6121_v33 = vld [vmem:[%s9924_s0 + $0x381] sm:$0xff] }
  0xab   :  { %10018 = vst [vmem:[#allocation23_spill] sm:$0xff] %v6121_v33 }
  0xac   :  { %v526_v42 = vpop.permute.xlu1 %525  ;;  %v464_v1 = vpop.permute.xlu0 %463 }
  0xae   :  { %415 = vrot.lane.b32.xlu1 %v6107_v55, %s5493_s12  ;;  %225 = vrot.lane.b32.xlu0 %v6112_v15, %s5491_s18  ;;  %v700_v55 = vsel %vm697_vm1, %v5676_v21, %v5940_v5 }
  0xb0   :  { %v6123_v49 = vpop.permute.xlu1 %337  ;;  %v6125_v59 = vpop.permute.xlu0 %275 }
  0xb2   :  { %667 = vrot.lane.b32.xlu1 %v6009_v25, %s5497_s2  ;;  %477 = vrot.lane.b32.xlu0 %v6121_v33, %s5494_s19  ;;  %v717_v33 = vsel %vm714_vm2, %v700_v55, %v5963_v22  ;;  %v6158_v25 = vld [vmem:[%s9924_s0 + $0x391] sm:$0xff] }
  0xb3   :  { %10020 = vst [vmem:[#allocation25_spill] sm:$0xff] %v6158_v25  ;;  %v734_v21 = vsel %vm731_vm3, %v717_v33, %v5995_v61  ;;  %v4633_v61 = vld [vmem:[%s9924_s0 + $0x3a0] sm:$0xff]  ;;  %v6180_v33 = vld [vmem:[%s9924_s0 + $0x291] sm:$0xff] }
  0xb4   :  { %v590_v45 = vpop.permute.xlu1 %589  ;;  %v528_v54 = vpop.permute.xlu0 %527  ;;  %v751_v22 = vsel %vm748_vm4, %v734_v21, %v6033_v58 }
  0xb5   :  { %v768_v55 = vsel %vm765_vm5, %v751_v22, %v462_v16 }
  0xb6   :  { %289 = vrot.lane.b32.xlu1 %v6134_v18, %s5490_s17  ;;  %227 = vrot.lane.b32.xlu0 %v6139_v19, %s5491_s18  ;;  %v785_v62 = vsel %vm782_vm6, %v768_v55, %v526_v42 }
  0xb7   :  { %v802_v58 = vsel %vm799_vm7, %v785_v62, %v590_v45  ;;  %v6196_v62 = vld [vmem:[%s9924_s0 + $0x280] sm:$0xff] }
  0xb8   :  { %v6162_v5 = vpop.permute.xlu1 %401  ;;  %v6164_v56 = vpop.permute.xlu0 %339 }
  0xba   :  { %541 = vrot.lane.b32.xlu1 %v6153_v63, %s5495_s11  ;;  %479 = vrot.lane.b32.xlu0 %v6158_v25, %s5494_s19  ;;  %v701_v25 = vsel %vm697_vm1, %v5740_v31, %v5965_v23 }
  0xbb   :  { %v718_v42 = vsel %vm714_vm2, %v701_v25, %v5997_v4  ;;  %v4634_v4 = vld [vmem:[%s9924_s0 + $0x3b0] sm:$0xff] }
  0xbc   :  { %v654_v16 = vpop.permute.xlu1 %653  ;;  %v592_v21 = vpop.permute.xlu0 %591  ;;  %v735_v45 = vsel %vm731_vm3, %v718_v42, %v6035_v50  ;;  %v6215_v50 = vld [vmem:[%s9924_s0 + $0x430] sm:$0xff] }
  0xbd   :  { %v819_v22 = vsel %vm816_vm8, %v802_v58, %v654_v16  ;;  %v752_v23 = vsel %vm748_vm4, %v735_v45, %v6070_v52  ;;  %10021 = vst [vmem:[#allocation26_spill] sm:$0xff] %v6215_v50 }
  0xbe   :  { %353 = vrot.lane.b32.xlu1 %v4633_v61, %s5492_s27  ;;  %291 = vrot.lane.b32.xlu0 %v6180_v33, %s5490_s17  ;;  %v769_v61 = vsel %vm765_vm5, %v752_v23, %v464_v1  ;;  %v6251_v23 = vld [vmem:[%s9924_s0 + $0x3a1] sm:$0xff] }
  0xbf   :  { %5048 = vmatprep.mubr.msk.f32.mxu0 %vm2600_vm9, %v819_v22  ;;  %v786_v25 = vsel %vm782_vm6, %v769_v61, %v528_v54  ;;  %v6242_v22 = vld [vmem:[%s9924_s0 + $0x330] sm:$0xff]  ;;  %10024 = vst [vmem:[#allocation29_spill] sm:$0xff] %v6251_v23 }
  0xc0   :  { %v6200_v55 = vpop.permute.xlu1 %403  ;;  %v6202_v31 = vpop.permute.xlu0 %213  ;;  %v803_v52 = vsel %vm799_vm7, %v786_v25, %v592_v21  ;;  %v6237_v21 = vld [vmem:[%s9924_s0 + $0x440] sm:$0xff]  ;;  %10023 = vst [vmem:[#allocation28_spill] sm:$0xff] %v6242_v22 }
  0xc1   :  { %10022 = vst [vmem:[#allocation27_spill] sm:$0xff] %v6237_v21 }
  0xc2   :  { %605 = vrot.lane.b32.xlu1 %v6014_v20, %s5496_s29  ;;  %543 = vrot.lane.b32.xlu0 %v6196_v62, %s5495_s11 }
  0xc4   :  { %v656_v1 = vpop.permute.xlu1 %655  ;;  %v466_v58 = vpop.permute.xlu0 %465 }
  0xc5   :  { %v820_v20 = vsel %vm816_vm8, %v803_v52, %v656_v1  ;;  %v6269_v52 = vld [vmem:[%s9924_s0 + $0x340] sm:$0xff] }
  0xc6   :  { %417 = vrot.lane.b32.xlu1 %v6215_v50, %s5493_s12  ;;  %355 = vrot.lane.b32.xlu0 %v4634_v4, %s5492_s27  ;;  %v6264_v4 = vld [vmem:[%s9924_s0 + $0x2a1] sm:$0xff]  ;;  %v6288_v50 = vld [vmem:[%s9924_s0 + $0x3b1] sm:$0xff] }
  0xc7   :  { %5049 = vmatmul.mubr.msk.f32.gmra.mrb[2].mxu0 %vm2600_vm9, %v820_v20  ;;  %10025 = vst [vmem:[#allocation30_spill] sm:$0xff] %v6288_v50 }
  0xc8   :  { %v6226_v54 = vpop.permute.xlu1 %277  ;;  %v6228_v16 = vpop.permute.xlu0 %215 }
  0xca   :  { %669 = vrot.lane.b32.xlu1 %v6050_v14, %s5497_s2  ;;  %607 = vrot.lane.b32.xlu0 %v6112_v15, %s5496_s29  ;;  %v702_v15 = vsel %vm697_vm1, %v5765_v35, %v6072_v60 }
  0xcc   :  { %v530_v42 = vpop.permute.xlu1 %529  ;;  %v468_v45 = vpop.permute.xlu0 %467 }
  0xce   :  { %419 = vrot.lane.b32.xlu1 %v6237_v21, %s5493_s12  ;;  %229 = vrot.lane.b32.xlu0 %v6242_v22, %s5491_s18  ;;  %v6283_v21 = vld [vmem:[%s9924_s0 + $0x290] sm:$0xff] }
  0xd0   :  { %v6253_v61 = vpop.permute.xlu1 %341  ;;  %v6255_v25 = vpop.permute.xlu0 %279 }
  0xd2   :  { %671 = vrot.lane.b32.xlu1 %v6134_v18, %s5497_s2  ;;  %481 = vrot.lane.b32.xlu0 %v6251_v23, %s5494_s19  ;;  %v719_v23 = vsel %vm714_vm2, %v702_v15, %v6096_v53 }
  0xd3   :  { %v736_v35 = vsel %vm731_vm3, %v719_v23, %v6123_v49  ;;  %v4635_v49 = vld [vmem:[%s9924_s0 + $0x3c0] sm:$0xff]  ;;  %v6310_v23 = vld [vmem:[%s9924_s0 + $0x2b1] sm:$0xff] }
  0xd4   :  { %v594_v1 = vpop.permute.xlu1 %593  ;;  %v532_v20 = vpop.permute.xlu0 %531  ;;  %v753_v53 = vsel %vm748_vm4, %v736_v35, %v6162_v5 }
  0xd5   :  { %v770_v15 = vsel %vm765_vm5, %v753_v53, %v466_v58 }
  0xd6   :  { %293 = vrot.lane.b32.xlu1 %v6264_v4, %s5490_s17  ;;  %231 = vrot.lane.b32.xlu0 %v6269_v52, %s5491_s18  ;;  %v787_v14 = vsel %vm782_vm6, %v770_v15, %v530_v42 }
  0xd7   :  { %v804_v5 = vsel %vm799_vm7, %v787_v14, %v594_v1  ;;  %v6326_v14 = vld [vmem:[%s9924_s0 + $0x2a0] sm:$0xff] }
  0xd8   :  { %v6292_v60 = vpop.permute.xlu1 %405  ;;  %v6294_v18 = vpop.permute.xlu0 %343 }
  0xda   :  { %545 = vrot.lane.b32.xlu1 %v6283_v21, %s5495_s11  ;;  %483 = vrot.lane.b32.xlu0 %v6288_v50, %s5494_s19  ;;  %v703_v50 = vsel %vm697_vm1, %v5826_v43, %v6098_v37 }
  0xdb   :  { %v720_v42 = vsel %vm714_vm2, %v703_v50, %v6125_v59  ;;  %v4636_v50 = vld [vmem:[%s9924_s0 + $0x3d0] sm:$0xff] }
  0xdc   :  { %v658_v58 = vpop.permute.xlu1 %657  ;;  %v596_v35 = vpop.permute.xlu0 %595  ;;  %v737_v1 = vsel %vm731_vm3, %v720_v42, %v6164_v56  ;;  %v6343_v56 = vld [vmem:[%s9924_s0 + $0x450] sm:$0xff] }
  0xdd   :  { %v821_v53 = vsel %vm816_vm8, %v804_v5, %v658_v58  ;;  %v754_v37 = vsel %vm748_vm4, %v737_v1, %v6200_v55  ;;  %10026 = vst [vmem:[#allocation31_spill] sm:$0xff] %v6343_v56 }
  0xde   :  { %357 = vrot.lane.b32.xlu1 %v4635_v49, %s5492_s27  ;;  %295 = vrot.lane.b32.xlu0 %v6310_v23, %s5490_s17  ;;  %v771_v49 = vsel %vm765_vm5, %v754_v37, %v468_v45 }
  0xdf   :  { %5051 = vmatprep.mubr.msk.f32.mxu0 %vm2600_vm9, %v821_v53  ;;  %v788_v59 = vsel %vm782_vm6, %v771_v49, %v532_v20  ;;  %v6370_v53 = vld [vmem:[%s9924_s0 + $0x460] sm:$0xff] }
  0xe0   :  { %v408_v15 = vpop.permute.xlu1 %407  ;;  %v6330_v43 = vpop.permute.xlu0 %217  ;;  %v805_v55 = vsel %vm799_vm7, %v788_v59, %v596_v35  ;;  %v6365_v35 = vld [vmem:[%s9924_s0 + $0x3c1] sm:$0xff]  ;;  %10028 = vst [vmem:[#allocation33_spill] sm:$0xff] %v6370_v53  ;;  %v6387_v59 = vld [vmem:[%s9924_s0 + $0x2b0] sm:$0xff] }
  0xe1   :  { %10027 = vst [vmem:[#allocation32_spill] sm:$0xff] %v6365_v35 }
  0xe2   :  { %609 = vrot.lane.b32.xlu1 %v6139_v19, %s5496_s29  ;;  %547 = vrot.lane.b32.xlu0 %v6326_v14, %s5495_s11 }
  0xe4   :  { %v660_v45 = vpop.permute.xlu1 %659  ;;  %v470_v5 = vpop.permute.xlu0 %469 }
  0xe5   :  { %v822_v19 = vsel %vm816_vm8, %v805_v55, %v660_v45 }
  0xe6   :  { %421 = vrot.lane.b32.xlu1 %v6343_v56, %s5493_s12  ;;  %359 = vrot.lane.b32.xlu0 %v4636_v50, %s5492_s27  ;;  %v6392_v50 = vld [vmem:[%s9924_s0 + $0x3d1] sm:$0xff] }
  0xe7   :  { %5052 = vmatmul.mubr.msk.f32.gmra.mrb[4].mxu0 %vm2600_vm9, %v822_v19  ;;  %10029 = vst [vmem:[#allocation34_spill] sm:$0xff] %v6392_v50  ;;  %v704_v19 = vsel %vm697_vm1, %v5851_v47, %v6202_v31 }
  0xe8   :  { %v6354_v20 = vpop.permute.xlu1 %281  ;;  %v6356_v58 = vpop.permute.xlu0 %219 }
  0xea   :  { %673 = vrot.lane.b32.xlu1 %v6180_v33, %s5497_s2  ;;  %611 = vrot.lane.b32.xlu0 %v6242_v22, %s5496_s29 }
  0xec   :  { %v534_v42 = vpop.permute.xlu1 %533  ;;  %v472_v1 = vpop.permute.xlu0 %471 }
  0xee   :  { %485 = vrot.lane.b32.xlu1 %v6365_v35, %s5494_s19  ;;  %423 = vrot.lane.b32.xlu0 %v6370_v53, %s5493_s12  ;;  %v4717_v53 = vld [vmem:[%s9924_s0 + $0x91] sm:$0xff] }
  0xf0   :  { %v6376_v37 = vpop.permute.xlu1 %345  ;;  %v6378_v49 = vpop.permute.xlu0 %283 }
  0xf2   :  { %881 = vrot.lane.b32.xlu1 %v5564_v0, %s5491_s18  ;;  %675 = vrot.lane.b32.xlu0 %v6264_v4, %s5497_s2  ;;  %v721_v0 = vsel %vm714_vm2, %v704_v19, %v6226_v54  ;;  %v6420_v19 = vld [vmem:[%s9924_s0 + $0x2c0] sm:$0xff] }
  0xf3   :  { %v738_v35 = vsel %vm731_vm3, %v721_v0, %v6253_v61 }
  0xf4   :  { %v598_v55 = vpop.permute.xlu1 %597  ;;  %v536_v45 = vpop.permute.xlu0 %535  ;;  %v755_v47 = vsel %vm748_vm4, %v738_v35, %v6292_v60 }
  0xf5   :  { %v772_v31 = vsel %vm765_vm5, %v755_v47, %v470_v5  ;;  %v705_v5 = vsel %vm697_vm1, %v5909_v57, %v6228_v16  ;;  %v6453_v47 = vld [vmem:[%s9924_s0 + $0x350] sm:$0xff] }
  0xf6   :  { %549 = vrot.lane.b32.xlu1 %v6387_v59, %s5495_s11  ;;  %487 = vrot.lane.b32.xlu0 %v6392_v50, %s5494_s19  ;;  %v789_v54 = vsel %vm782_vm6, %v772_v31, %v534_v42  ;;  %v722_v35 = vsel %vm714_vm2, %v705_v5, %v6255_v25  ;;  %v4719_v5 = vld [vmem:[%s9924_s0 + $0xb1] sm:$0xff] }
  0xf7   :  { %v806_v61 = vsel %vm799_vm7, %v789_v54, %v598_v55  ;;  %v739_v42 = vsel %vm731_vm3, %v722_v35, %v6294_v18 }
  0xf8   :  { %v410_v22 = vpop.permute.xlu1 %409  ;;  %v6408_v56 = vpop.permute.xlu0 %347 }
  0xfa   :  { %945 = vrot.lane.b32.xlu1 %v4717_v53, %s5490_s17  ;;  %883 = vrot.lane.b32.xlu0 %v5575_v2, %s5491_s18  ;;  %v6437_v53 = vld [vmem:[%s9924_s0 + $0xa1] sm:$0xff] }
  0xfc   :  { %v662_v0 = vpop.permute.xlu1 %661  ;;  %v600_v50 = vpop.permute.xlu0 %599 }
  0xfd   :  { %v823_v60 = vsel %vm816_vm8, %v806_v61, %v662_v0 }
  0xfe   :  { %613 = vrot.lane.b32.xlu1 %v6269_v52, %s5496_s29  ;;  %551 = vrot.lane.b32.xlu0 %v6420_v19, %s5495_s11  ;;  %v756_v52 = vsel %vm748_vm4, %v739_v42, %v408_v15 }
  0xff   :  { %5054 = vmatprep.mubr.msk.f32.mxu0 %vm2600_vm9, %v823_v60  ;;  %v773_v55 = vsel %vm765_vm5, %v756_v52, %v472_v1  ;;  %v44_v60 = vld [vmem:[%s9924_s0 + $0x240] sm:$0xff] }
 0x100   :  { %v412_v57 = vpop.permute.xlu1 %411  ;;  %v6441_v16 = vpop.permute.xlu0 %221  ;;  %v790_v25 = vsel %vm782_vm6, %v773_v55, %v536_v45  ;;  %v706_v52 = vsel %vm697_vm1, %v44_v60, %v6330_v43  ;;  %v4734_v55 = vld [vmem:[%s9924_s0 + $0x1c1] sm:$0xff] }
 0x101   :  { %v807_v18 = vsel %vm799_vm7, %v790_v25, %v600_v50  ;;  %v6473_v50 = vld [vmem:[%s9924_s0 + $0x2c1] sm:$0xff] }
 0x102   :  { %993 = vrot.lane.b32.xlu1 %v5602_v7, %s5492_s27  ;;  %947 = vrot.lane.b32.xlu0 %v6437_v53, %s5490_s17  ;;  %v6521_v60 = vld [vmem:[%s9924_s0 + $0xc1] sm:$0xff] }
 0x104   :  { %v664_v31 = vpop.permute.xlu1 %663  ;;  %v474_v54 = vpop.permute.xlu0 %473 }
 0x105   :  { %v824_v15 = vsel %vm816_vm8, %v807_v18, %v664_v31 }
 0x106   :  { %677 = vrot.lane.b32.xlu1 %v6310_v23, %s5497_s2  ;;  %615 = vrot.lane.b32.xlu0 %v6453_v47, %s5496_s29 }
 0x107   :  { %5055 = vmatmul.mubr.msk.f32.gmra.mrb[6].mxu0 %vm2600_vm9, %v824_v15 }
 0x108   :  { %v6462_v7 = vpop.permute.xlu1 %285  ;;  %v6464_v1 = vpop.permute.xlu0 %223 }
 0x10a   :  { %1041 = vrot.lane.b32.xlu1 %v5611_v8, %s5493_s12  ;;  %995 = vrot.lane.b32.xlu0 %v5616_v9, %s5492_s27  ;;  %v6482_v8 = vld [vmem:[%s9924_s0 + $0x1b1] sm:$0xff] }
 0x10c   :  { %v538_v45 = vpop.permute.xlu1 %537  ;;  %v476_v61 = vpop.permute.xlu0 %475 }
 0x10e   :  { %885 = vrot.lane.b32.xlu1 %v5625_v10, %s5491_s18  ;;  %679 = vrot.lane.b32.xlu0 %v6473_v50, %s5497_s2 }
 0x110   :  { %v6484_v0 = vpop.permute.xlu1 %349  ;;  %v6486_v9 = vpop.permute.xlu0 %287 }
 0x112   :  { %1105 = vrot.lane.b32.xlu1 %v6482_v8, %s5494_s19  ;;  %1043 = vrot.lane.b32.xlu0 %v5644_v13, %s5493_s12  ;;  %v723_v13 = vsel %vm714_vm2, %v706_v52, %v6354_v20 }
 0x113   :  { %v740_v25 = vsel %vm731_vm3, %v723_v13, %v6376_v37 }
 0x114   :  { %v602_v35 = vpop.permute.xlu1 %601  ;;  %v540_v42 = vpop.permute.xlu0 %539  ;;  %v757_v43 = vsel %vm748_vm4, %v740_v25, %v410_v22 }
 0x115   :  { %v774_v15 = vsel %vm765_vm5, %v757_v43, %v474_v54  ;;  %v707_v54 = vsel %vm697_vm1, %v6025_v51, %v6356_v58 }
 0x116   :  { %949 = vrot.lane.b32.xlu1 %v4719_v5, %s5490_s17  ;;  %887 = vrot.lane.b32.xlu0 %v5662_v17, %s5491_s18  ;;  %v791_v20 = vsel %vm782_vm6, %v774_v15, %v538_v45  ;;  %v708_v15 = vsel %vm697_vm1, %v6066_v12, %v6441_v16 }
 0x117   :  { %v808_v37 = vsel %vm799_vm7, %v791_v20, %v602_v35  ;;  %v4736_v20 = vld [vmem:[%s9924_s0 + $0x1e1] sm:$0xff] }
 0x118   :  { %v414_v18 = vpop.permute.xlu1 %413  ;;  %v6510_v31 = vpop.permute.xlu0 %351 }
 0x11a   :  { %1153 = vrot.lane.b32.xlu1 %v5580_v3, %s5495_s11  ;;  %1107 = vrot.lane.b32.xlu0 %v4734_v55, %s5494_s19  ;;  %v724_v3 = vsel %vm714_vm2, %v707_v54, %v6378_v49 }
 0x11b   :  { %v741_v45 = vsel %vm731_vm3, %v724_v3, %v6408_v56 }
 0x11c   :  { %v666_v52 = vpop.permute.xlu1 %665  ;;  %v604_v13 = vpop.permute.xlu0 %603  ;;  %v758_v25 = vsel %vm748_vm4, %v741_v45, %v412_v57  ;;  %v709_v45 = vsel %vm697_vm1, %v6153_v63, %v6464_v1 }
 0x11d   :  { %v825_v22 = vsel %vm816_vm8, %v808_v37, %v666_v52  ;;  %v775_v51 = vsel %vm765_vm5, %v758_v25, %v476_v61 }
 0x11e   :  { %997 = vrot.lane.b32.xlu1 %v5688_v24, %s5492_s27  ;;  %951 = vrot.lane.b32.xlu0 %v6521_v60, %s5490_s17  ;;  %v792_v24 = vsel %vm782_vm6, %v775_v51, %v540_v42 }
 0x11f   :  { %5057 = vmatprep.mubr.msk.f32.mxu0 %vm2600_vm9, %v825_v22  ;;  %v809_v58 = vsel %vm799_vm7, %v792_v24, %v604_v13  ;;  %v6601_v22 = vld [vmem:[%s9924_s0 + $0xe1] sm:$0xff] }
 0x120   :  { %v416_v35 = vpop.permute.xlu1 %415  ;;  %v6537_v55 = vpop.permute.xlu0 %225 }
 0x122   :  { %1201 = vrot.lane.b32.xlu1 %v5575_v2, %s5496_s29  ;;  %1155 = vrot.lane.b32.xlu0 %v5597_v6, %s5495_s11 }
 0x124   :  { %v668_v49 = vpop.permute.xlu1 %667  ;;  %v478_v43 = vpop.permute.xlu0 %477 }
 0x125   :  { %v826_v56 = vsel %vm816_vm8, %v809_v58, %v668_v49 }
 0x126   :  { %1045 = vrot.lane.b32.xlu1 %v5717_v28, %s5493_s12  ;;  %999 = vrot.lane.b32.xlu0 %v5703_v26, %s5492_s27  ;;  %v4735_v26 = vld [vmem:[%s9924_s0 + $0x1d1] sm:$0xff] }
 0x127   :  { %5058 = vmatmul.mubr.msk.f32.gmra.mrb[8].mxu0 %vm2600_vm9, %v826_v56 }
 0x128   :  { %v6553_v2 = vpop.permute.xlu1 %289  ;;  %v6555_v57 = vpop.permute.xlu0 %227 }
 0x12a   :  { %1265 = vrot.lane.b32.xlu1 %v6437_v53, %s5497_s2  ;;  %1203 = vrot.lane.b32.xlu0 %v5625_v10, %s5496_s29  ;;  %v4721_v10 = vld [vmem:[%s9924_s0 + $0xd1] sm:$0xff] }
 0x12c   :  { %v542_v6 = vpop.permute.xlu1 %541  ;;  %v480_v61 = vpop.permute.xlu0 %479 }
 0x12e   :  { %1047 = vrot.lane.b32.xlu1 %v5745_v32, %s5493_s12  ;;  %889 = vrot.lane.b32.xlu0 %v5726_v29, %s5491_s18 }
 0x130   :  { %v6568_v28 = vpop.permute.xlu1 %353  ;;  %v6570_v42 = vpop.permute.xlu0 %291 }
 0x132   :  { %1267 = vrot.lane.b32.xlu1 %v4719_v5, %s5497_s2  ;;  %1109 = vrot.lane.b32.xlu0 %v4735_v26, %s5494_s19  ;;  %v725_v5 = vsel %vm714_vm2, %v708_v15, %v6462_v7  ;;  %v4738_v26 = vld [vmem:[%s9924_s0 + $0x201] sm:$0xff] }
 0x133   :  { %v742_v37 = vsel %vm731_vm3, %v725_v5, %v6484_v0 }
 0x134   :  { %v606_v32 = vpop.permute.xlu1 %605  ;;  %v544_v53 = vpop.permute.xlu0 %543  ;;  %v759_v12 = vsel %vm748_vm4, %v742_v37, %v414_v18  ;;  %v711_v37 = vsel %vm697_vm1, %v6283_v21, %v6555_v57 }
 0x135   :  { %v776_v16 = vsel %vm765_vm5, %v759_v12, %v478_v43 }
 0x136   :  { %953 = vrot.lane.b32.xlu1 %v4721_v10, %s5490_s17  ;;  %891 = vrot.lane.b32.xlu0 %v5757_v34, %s5491_s18  ;;  %v793_v7 = vsel %vm782_vm6, %v776_v16, %v542_v6  ;;  %v710_v6 = vsel %vm697_vm1, %v6196_v62, %v6537_v55 }
 0x137   :  { %v810_v0 = vsel %vm799_vm7, %v793_v7, %v606_v32 }
 0x138   :  { %v418_v52 = vpop.permute.xlu1 %417  ;;  %v6590_v13 = vpop.permute.xlu0 %355 }
 0x13a   :  { %1157 = vrot.lane.b32.xlu1 %v5630_v11, %s5495_s11  ;;  %1111 = vrot.lane.b32.xlu0 %v4736_v20, %s5494_s19  ;;  %v726_v11 = vsel %vm714_vm2, %v709_v45, %v6486_v9 }
 0x13b   :  { %v743_v25 = vsel %vm731_vm3, %v726_v11, %v6510_v31 }
 0x13c   :  { %v670_v54 = vpop.permute.xlu1 %669  ;;  %v608_v3 = vpop.permute.xlu0 %607  ;;  %v760_v58 = vsel %vm748_vm4, %v743_v25, %v416_v35  ;;  %v10032_v25 = vld [vmem:[#allocation10_spill] sm:$0xff] }
 0x13d   :  { %v827_v18 = vsel %vm816_vm8, %v810_v0, %v670_v54  ;;  %v777_v63 = vsel %vm765_vm5, %v760_v58, %v480_v61  ;;  %v727_v61 = vsel %vm714_vm2, %v710_v6, %v6553_v2  ;;  %v6679_v2 = vld [vmem:[%s9924_s0 + $0x101] sm:$0xff]  ;;  %v4739_v58 = vld [vmem:[%s9924_s0 + $0x211] sm:$0xff] }
 0x13e   :  { %1001 = vrot.lane.b32.xlu1 %v5774_v36, %s5492_s27  ;;  %955 = vrot.lane.b32.xlu0 %v6601_v22, %s5490_s17  ;;  %v794_v36 = vsel %vm782_vm6, %v777_v63, %v544_v53 }
 0x13f   :  { %5060 = vmatprep.mubr.msk.f32.mxu0 %vm2600_vm9, %v827_v18  ;;  %v811_v1 = vsel %vm799_vm7, %v794_v36, %v608_v3  ;;  %v10030_v3 = vld [vmem:[#allocation8_spill] sm:$0xff]  ;;  %v10031_v18 = vld [vmem:[#allocation7_spill] sm:$0xff] }
 0x140   :  { %v420_v51 = vpop.permute.xlu1 %419  ;;  %v6617_v24 = vpop.permute.xlu0 %229 }
 0x142   :  { %1205 = vrot.lane.b32.xlu1 %v5662_v17, %s5496_s29  ;;  %1159 = vrot.lane.b32.xlu0 %v5708_v27, %s5495_s11 }
 0x144   :  { %v672_v9 = vpop.permute.xlu1 %671  ;;  %v482_v49 = vpop.permute.xlu0 %481 }
 0x145   :  { %v828_v31 = vsel %vm816_vm8, %v811_v1, %v672_v9  ;;  %v4725_v1 = vld [vmem:[%s9924_s0 + $0x2d1] sm:$0xff] }
 0x146   :  { %1049 = vrot.lane.b32.xlu1 %v5803_v40, %s5493_s12  ;;  %1003 = vrot.lane.b32.xlu0 %v5789_v38, %s5492_s27  ;;  %v4737_v38 = vld [vmem:[%s9924_s0 + $0x1f1] sm:$0xff] }
 0x147   :  { %5061 = vmatmul.mubr.msk.f32.gmra.mrb[10].mxu0 %vm2600_vm9, %v828_v31 }
 0x148   :  { %v6633_v17 = vpop.permute.xlu1 %293  ;;  %v6635_v35 = vpop.permute.xlu0 %231 }
 0x149   :  { %v713_v6 = vsel %vm697_vm1, %v6387_v59, %v6635_v35 }
 0x14a   :  { %1269 = vrot.lane.b32.xlu1 %v6521_v60, %s5497_s2  ;;  %1207 = vrot.lane.b32.xlu0 %v5726_v29, %s5496_s29  ;;  %v4723_v29 = vld [vmem:[%s9924_s0 + $0xf1] sm:$0xff] }
 0x14c   :  { %v546_v27 = vpop.permute.xlu1 %545  ;;  %v484_v43 = vpop.permute.xlu0 %483 }
 0x14e   :  { %1051 = vrot.lane.b32.xlu1 %v5831_v44, %s5493_s12  ;;  %893 = vrot.lane.b32.xlu0 %v5812_v41, %s5491_s18 }
 0x150   :  { %v358_v40 = vpop.permute.xlu1 %357  ;;  %v6648_v56 = vpop.permute.xlu0 %295 }
 0x152   :  { %1271 = vrot.lane.b32.xlu1 %v4721_v10, %s5497_s2  ;;  %1113 = vrot.lane.b32.xlu0 %v4737_v38, %s5494_s19  ;;  %v744_v10 = vsel %vm731_vm3, %v727_v61, %v6568_v28  ;;  %v4740_v38 = vld [vmem:[%s9924_s0 + $0x221] sm:$0xff] }
 0x153   :  { %v761_v62 = vsel %vm748_vm4, %v744_v10, %v418_v52  ;;  %v730_v10 = vsel %vm714_vm2, %v713_v6, %v6648_v56  ;;  %v10037_v56 = vld [vmem:[#allocation12_spill] sm:$0xff] }
 0x154   :  { %v610_v60 = vpop.permute.xlu1 %609  ;;  %v548_v44 = vpop.permute.xlu0 %547  ;;  %v778_v55 = vsel %vm765_vm5, %v761_v62, %v482_v49  ;;  %v6768_v62 = vld [vmem:[%s9924_s0 + $0x2e1] sm:$0xff] }
 0x156   :  { %957 = vrot.lane.b32.xlu1 %v4723_v29, %s5490_s17  ;;  %895 = vrot.lane.b32.xlu0 %v5843_v46, %s5491_s18  ;;  %v795_v46 = vsel %vm782_vm6, %v778_v55, %v546_v27 }
 0x157   :  { %v812_v28 = vsel %vm799_vm7, %v795_v46, %v610_v60 }
 0x158   :  { %v422_v32 = vpop.permute.xlu1 %421  ;;  %v6668_v53 = vpop.permute.xlu0 %359 }
 0x159   :  { %v747_v35 = vsel %vm731_vm3, %v730_v10, %v6668_v53 }
 0x15a   :  { %1161 = vrot.lane.b32.xlu1 %v5731_v30, %s5495_s11  ;;  %1115 = vrot.lane.b32.xlu0 %v4738_v26, %s5494_s19  ;;  %v728_v30 = vsel %vm714_vm2, %v711_v37, %v6570_v42  ;;  %v10035_v26 = vld [vmem:[#allocation6_spill] sm:$0xff] }
 0x15b   :  { %v745_v52 = vsel %vm731_vm3, %v728_v30, %v6590_v13 }
 0x15c   :  { %v674_v15 = vpop.permute.xlu1 %673  ;;  %v612_v5 = vpop.permute.xlu0 %611  ;;  %v762_v7 = vsel %vm748_vm4, %v745_v52, %v420_v51  ;;  %v10033_v51 = vld [vmem:[#allocation9_spill] sm:$0xff]  ;;  %v5315_v52 = vld [vmem:[%s9924_s0 + $0x71] sm:$0xff] }
 0x15d   :  { %v829_v20 = vsel %vm816_vm8, %v812_v28, %v674_v15  ;;  %v779_v57 = vsel %vm765_vm5, %v762_v7, %v484_v43  ;;  %v10034_v43 = vld [vmem:[#allocation11_spill] sm:$0xff] }
 0x15e   :  { %1005 = vrot.lane.b32.xlu1 %v5860_v48, %s5492_s27  ;;  %959 = vrot.lane.b32.xlu0 %v6679_v2, %s5490_s17  ;;  %v796_v48 = vsel %vm782_vm6, %v779_v57, %v548_v44  ;;  %v10039_v57 = vld [vmem:[#allocation16_spill] sm:$0xff] }
 0x15f   :  { %5063 = vmatprep.mubr.msk.f32.mxu0 %vm2600_vm9, %v829_v20  ;;  %v813_v42 = vsel %vm799_vm7, %v796_v48, %v612_v5  ;;  %v10040_v48 = vld [vmem:[#allocation14_spill] sm:$0xff] }
 0x160   :  { %v486_v12 = vpop.permute.xlu1 %485  ;;  %v424_v16 = vpop.permute.xlu0 %423 }
 0x161   :  { %v764_v28 = vsel %vm748_vm4, %v747_v35, %v424_v16 }
 0x162   :  { %1209 = vrot.lane.b32.xlu1 %v5757_v34, %s5496_s29  ;;  %1163 = vrot.lane.b32.xlu0 %v5794_v39, %s5495_s11 }
 0x164   :  { %v6703_v0 = vpop.permute.xlu1 %881  ;;  %v676_v54 = vpop.permute.xlu0 %675 }
 0x165   :  { %v830_v13 = vsel %vm816_vm8, %v813_v42, %v676_v54 }
 0x166   :  { %1053 = vrot.lane.b32.xlu1 %v10030_v3, %s5493_s12  ;;  %1007 = vrot.lane.b32.xlu0 %v10031_v18, %s5492_s27 }
 0x167   :  { %5064 = vmatmul.mubr.msk.f32.gmra.mrb[12].mxu0 %vm2600_vm9, %v830_v13  ;;  %v10041_v13 = vld [vmem:[#allocation15_spill] sm:$0xff] }
 0x168   :  { %v550_v34 = vpop.permute.xlu1 %549  ;;  %v488_v45 = vpop.permute.xlu0 %487 }
 0x169   :  { %v781_v15 = vsel %vm765_vm5, %v764_v28, %v488_v45  ;;  %v10043_v45 = vld [vmem:[#allocation17_spill] sm:$0xff] }
 0x16a   :  { %1273 = vrot.lane.b32.xlu1 %v6601_v22, %s5497_s2  ;;  %1211 = vrot.lane.b32.xlu0 %v5812_v41, %s5496_s29  ;;  %v712_v41 = vsel %vm697_vm1, %v6326_v14, %v6617_v24 }
 0x16b   :  { %v729_v22 = vsel %vm714_vm2, %v712_v41, %v6633_v17 }
 0x16c   :  { %v6715_v39 = vpop.permute.xlu1 %945  ;;  %v6717_v11 = vpop.permute.xlu0 %883  ;;  %v746_v9 = vsel %vm731_vm3, %v729_v22, %v358_v40  ;;  %v5316_v22 = vld [vmem:[%s9924_s0 + $0x90] sm:$0xff] }
 0x16d   :  { %v763_v27 = vsel %vm748_vm4, %v746_v9, %v422_v32  ;;  %v10044_v9 = vld [vmem:[#allocation19_spill] sm:$0xff] }
 0x16e   :  { %1055 = vrot.lane.b32.xlu1 %v10032_v25, %s5493_s12  ;;  %897 = vrot.lane.b32.xlu0 %v10033_v51, %s5491_s18  ;;  %v780_v24 = vsel %vm765_vm5, %v763_v27, %v486_v12  ;;  %v10038_v12 = vld [vmem:[#allocation13_spill] sm:$0xff]  ;;  %v4756_v25 = vld [vmem:[%s9924_s0 + $0x111] sm:$0xff] }
 0x16f   :  { %v797_v17 = vsel %vm782_vm6, %v780_v24, %v550_v34  ;;  %v10042_v34 = vld [vmem:[#allocation18_spill] sm:$0xff]  ;;  %v4741_v51 = vld [vmem:[%s9924_s0 + $0x3f1] sm:$0xff] }
 0x170   :  { %v614_v63 = vpop.permute.xlu1 %613  ;;  %v552_v36 = vpop.permute.xlu0 %551  ;;  %v4742_v24 = vld [vmem:[%s9924_s0 + $0x401] sm:$0xff] }
 0x171   :  { %v814_v40 = vsel %vm799_vm7, %v797_v17, %v614_v63  ;;  %v798_v5 = vsel %vm782_vm6, %v781_v15, %v552_v36  ;;  %v4727_v63 = vld [vmem:[%s9924_s0 + $0x2f1] sm:$0xff] }
 0x172   :  { %1275 = vrot.lane.b32.xlu1 %v4723_v29, %s5497_s2  ;;  %1117 = vrot.lane.b32.xlu0 %v4739_v58, %s5494_s19  ;;  %v10045_v15 = vld [vmem:[#allocation20_spill] sm:$0xff] }
 0x174   :  { %v6737_v49 = vpop.permute.xlu1 %993  ;;  %v6739_v31 = vpop.permute.xlu0 %947 }
 0x176   :  { %961 = vrot.lane.b32.xlu1 %v4725_v1, %s5490_s17  ;;  %899 = vrot.lane.b32.xlu0 %v10034_v43, %s5491_s18  ;;  %v1313_v1 = vsel %vm697_vm1, %v5316_v22, %v6703_v0 }
 0x177   :  { %v1329_v27 = vsel %vm714_vm2, %v1313_v1, %v6715_v39  ;;  %v6849_v39 = vld [vmem:[%s9924_s0 + $0x2e0] sm:$0xff] }
 0x178   :  { %v678_v29 = vpop.permute.xlu1 %677  ;;  %v616_v60 = vpop.permute.xlu0 %615  ;;  %v1345_v43 = vsel %vm731_vm3, %v1329_v27, %v6737_v49  ;;  %v6932_v27 = vld [vmem:[%s9924_s0 + $0xb0] sm:$0xff] }
 0x179   :  { %v831_v44 = vsel %vm816_vm8, %v814_v40, %v678_v29  ;;  %v815_v20 = vsel %vm799_vm7, %v798_v5, %v616_v60 }
 0x17a   :  { %v6755_v61 = vpop.f32.mrb[0].mxu0  ;;  %1165 = vrot.lane.b32.xlu1 %v10035_v26, %s5495_s11  ;;  %1119 = vrot.lane.b32.xlu0 %v4740_v38, %s5494_s19 }
 0x17b   :  { %v6762_v32 = vpop.f32.mrb[1].mxu0  ;;  %5066 = vmatprep.mubr.msk.f32.mxu0 %vm2600_vm9, %v831_v44  ;;  %v6860_v44 = vld [vmem:[%s9924_s0 + $0x301] sm:$0xff] }
 0x17c   :  { %10036 = vst [vmem:[#allocation8_spill] sm:$0xff] %v6762_v32  ;;  %v1042_v55 = vpop.permute.xlu1 %1041  ;;  %v6772_v46 = vpop.permute.xlu0 %995  ;;  %v5358_v32 = vld [vmem:[%s9924_s0 + $0x3a0] sm:$0xff] }
 0x17d   :  { %v1361_v0 = vsel %vm748_vm4, %v1345_v43, %v1042_v55  ;;  %v6867_v55 = vld [vmem:[%s9924_s0 + $0xa0] sm:$0xff] }
 0x17e   :  { %1009 = vrot.lane.b32.xlu1 %v10037_v56, %s5492_s27  ;;  %963 = vrot.lane.b32.xlu0 %v6768_v62, %s5490_s17  ;;  %v1314_v28 = vsel %vm697_vm1, %v6867_v55, %v6717_v11  ;;  %v10050_v43 = vld [vmem:[#allocation26_spill] sm:$0xff] }
 0x17f   :  { %v1330_v56 = vsel %vm714_vm2, %v1314_v28, %v6739_v31  ;;  %v6894_v31 = vld [vmem:[%s9924_s0 + $0x2f0] sm:$0xff] }
 0x180   :  { %v6782_v37 = vpop.permute.xlu1 %885  ;;  %v680_v53 = vpop.permute.xlu0 %679  ;;  %v1346_v5 = vsel %vm731_vm3, %v1330_v56, %v6772_v46 }
 0x181   :  { %v832_v30 = vsel %vm816_vm8, %v815_v20, %v680_v53 }
 0x182   :  { %1213 = vrot.lane.b32.xlu1 %v5315_v52, %s5496_s29  ;;  %1167 = vrot.lane.b32.xlu0 %v10038_v12, %s5495_s11  ;;  %v5319_v52 = vld [vmem:[%s9924_s0 + $0x251] sm:$0xff] }
 0x183   :  { %5067 = vmatmul.mubr.msk.f32.gmra.mrb[14].mxu0 %vm2600_vm9, %v832_v30 }
 0x184   :  { %v1106_v16 = vpop.permute.xlu1 %1105  ;;  %v1044_v7 = vpop.permute.xlu0 %1043 }
 0x185   :  { %v1377_v40 = vsel %vm765_vm5, %v1361_v0, %v1106_v16  ;;  %v1362_v11 = vsel %vm748_vm4, %v1346_v5, %v1044_v7  ;;  %v4744_v0 = vld [vmem:[%s9924_s0 + $0x421] sm:$0xff] }
 0x186   :  { %1057 = vrot.lane.b32.xlu1 %v10039_v57, %s5493_s12  ;;  %1011 = vrot.lane.b32.xlu0 %v10040_v48, %s5492_s27  ;;  %v10046_v48 = vld [vmem:[#allocation23_spill] sm:$0xff] }
 0x188   :  { %v6796_v42 = vpop.permute.xlu1 %949  ;;  %v6798_v54 = vpop.permute.xlu0 %887 }
 0x18a   :  { %1277 = vrot.lane.b32.xlu1 %v6679_v2, %s5497_s2  ;;  %1215 = vrot.lane.b32.xlu0 %v10041_v13, %s5496_s29  ;;  %v10047_v13 = vld [vmem:[#allocation21_spill] sm:$0xff] }
 0x18c   :  { %v1154_v3 = vpop.permute.xlu1 %1153  ;;  %v1108_v18 = vpop.permute.xlu0 %1107 }
 0x18d   :  { %v1393_v49 = vsel %vm782_vm6, %v1377_v40, %v1154_v3  ;;  %v1378_v30 = vsel %vm765_vm5, %v1362_v11, %v1108_v18  ;;  %v6949_v40 = vld [vmem:[%s9924_s0 + $0x311] sm:$0xff] }
 0x18e   :  { %1059 = vrot.lane.b32.xlu1 %v10042_v34, %s5493_s12  ;;  %901 = vrot.lane.b32.xlu0 %v10043_v45, %s5491_s18  ;;  %v5321_v34 = vld [vmem:[%s9924_s0 + $0x261] sm:$0xff]  ;;  %v10051_v11 = vld [vmem:[#allocation27_spill] sm:$0xff] }
 0x190   :  { %v6814_v2 = vpop.permute.xlu1 %997  ;;  %v6816_v58 = vpop.permute.xlu0 %951 }
 0x192   :  { %1279 = vrot.lane.b32.xlu1 %v4756_v25, %s5497_s2  ;;  %1121 = vrot.lane.b32.xlu0 %v4741_v51, %s5494_s19  ;;  %v10048_v51 = vld [vmem:[#allocation25_spill] sm:$0xff] }
 0x194   :  { %v1202_v36 = vpop.permute.xlu1 %1201  ;;  %v1156_v41 = vpop.permute.xlu0 %1155 }
 0x195   :  { %v1409_v6 = vsel %vm799_vm7, %v1393_v49, %v1202_v36  ;;  %v1394_v46 = vsel %vm782_vm6, %v1378_v30, %v1156_v41  ;;  %v10049_v36 = vld [vmem:[#allocation24_spill] sm:$0xff]  ;;  %v6981_v30 = vld [vmem:[%s9924_s0 + $0x300] sm:$0xff] }
 0x196   :  { %965 = vrot.lane.b32.xlu1 %v4727_v63, %s5490_s17  ;;  %903 = vrot.lane.b32.xlu0 %v10044_v9, %s5491_s18  ;;  %v4743_v41 = vld [vmem:[%s9924_s0 + $0x411] sm:$0xff] }
 0x198   :  { %v6838_v17 = vpop.permute.xlu1 %1045  ;;  %v6840_v38 = vpop.permute.xlu0 %999 }
 0x19a   :  { %v6844_v29 = vpop.f32.mrb[2].mxu0  ;;  %1169 = vrot.lane.b32.xlu1 %v6849_v39, %s5495_s11  ;;  %1123 = vrot.lane.b32.xlu0 %v4742_v24, %s5494_s19  ;;  %v1315_v24 = vsel %vm697_vm1, %v6932_v27, %v6782_v37 }
 0x19b   :  { %v6855_v60 = vpop.f32.mrb[3].mxu0 }
 0x19c   :  { %v1266_v26 = vpop.permute.xlu1 %1265  ;;  %v1204_v10 = vpop.permute.xlu0 %1203 }
 0x19d   :  { %v1425_v35 = vsel %vm816_vm8, %v1409_v6, %v1266_v26  ;;  %v1410_v12 = vsel %vm799_vm7, %v1394_v46, %v1204_v10 }
 0x19e   :  { %1013 = vrot.lane.b32.xlu1 %v10045_v15, %s5492_s27  ;;  %967 = vrot.lane.b32.xlu0 %v6860_v44, %s5490_s17 }
 0x19f   :  { %5069 = vmatprep.mubr.msk.f32.mxu0 %vm2600_vm9, %v1425_v35 }
 0x1a0   :  { %v6881_v20 = vpop.permute.xlu1 %1047  ;;  %v6883_v53 = vpop.permute.xlu0 %889 }
 0x1a2   :  { %1217 = vrot.lane.b32.xlu1 %v5319_v52, %s5496_s29  ;;  %1171 = vrot.lane.b32.xlu0 %v6894_v31, %s5495_s11 }
 0x1a4   :  { %v1268_v16 = vpop.permute.xlu1 %1267  ;;  %v1110_v7 = vpop.permute.xlu0 %1109 }
 0x1a5   :  { %v1426_v57 = vsel %vm816_vm8, %v1410_v12, %v1268_v16 }
 0x1a6   :  { %1061 = vrot.lane.b32.xlu1 %v10046_v48, %s5493_s12  ;;  %1015 = vrot.lane.b32.xlu0 %v10047_v13, %s5492_s27 }
 0x1a7   :  { %5070 = vmatmul.mubr.msk.f32.gmra.mrb[16].mxu0 %vm2600_vm9, %v1426_v57 }
 0x1a8   :  { %v6906_v3 = vpop.permute.xlu1 %953  ;;  %v6908_v18 = vpop.permute.xlu0 %891 }
 0x1aa   :  { %1281 = vrot.lane.b32.xlu1 %v6768_v62, %s5497_s2  ;;  %1219 = vrot.lane.b32.xlu0 %v5321_v34, %s5496_s29 }
 0x1ac   :  { %v1158_v45 = vpop.permute.xlu1 %1157  ;;  %v1112_v25 = vpop.permute.xlu0 %1111 }
 0x1ae   :  { %1063 = vrot.lane.b32.xlu1 %v10048_v51, %s5493_s12  ;;  %905 = vrot.lane.b32.xlu0 %v10049_v36, %s5491_s18  ;;  %v10053_v51 = vld [vmem:[#allocation22_spill] sm:$0xff] }
 0x1b0   :  { %v6923_v22 = vpop.permute.xlu1 %1001  ;;  %v6925_v62 = vpop.permute.xlu0 %955 }
 0x1b2   :  { %1283 = vrot.lane.b32.xlu1 %v4727_v63, %s5497_s2  ;;  %1125 = vrot.lane.b32.xlu0 %v4743_v41, %s5494_s19  ;;  %v1331_v63 = vsel %vm714_vm2, %v1315_v24, %v6796_v42  ;;  %v10054_v41 = vld [vmem:[#allocation30_spill] sm:$0xff] }
 0x1b3   :  { %v1347_v37 = vsel %vm731_vm3, %v1331_v63, %v6814_v2 }
 0x1b4   :  { %v1206_v1 = vpop.permute.xlu1 %1205  ;;  %v1160_v9 = vpop.permute.xlu0 %1159  ;;  %v1363_v6 = vsel %vm748_vm4, %v1347_v37, %v6838_v17  ;;  %v6971_v17 = vld [vmem:[%s9924_s0 + $0xc0] sm:$0xff] }
 0x1b5   :  { %v1379_v42 = vsel %vm765_vm5, %v1363_v6, %v1110_v7  ;;  %v1316_v5 = vsel %vm697_vm1, %v6971_v17, %v6798_v54  ;;  %v6991_v54 = vld [vmem:[%s9924_s0 + $0x321] sm:$0xff]  ;;  %v7037_v6 = vld [vmem:[%s9924_s0 + $0xd0] sm:$0xff] }
 0x1b6   :  { %907 = vrot.lane.b32.xlu1 %v6180_v33, %s5491_s18  ;;  %1515 = vrot.lane.b32.xlu0 %v10050_v43, %s5491_s18  ;;  %v1395_v10 = vsel %vm782_vm6, %v1379_v42, %v1158_v45  ;;  %v1332_v52 = vsel %vm714_vm2, %v1316_v5, %v6816_v58  ;;  %v10052_v58 = vld [vmem:[#allocation29_spill] sm:$0xff] }
 0x1b7   :  { %v1411_v2 = vsel %vm799_vm7, %v1395_v10, %v1206_v1  ;;  %v1348_v46 = vsel %vm731_vm3, %v1332_v52, %v6840_v38  ;;  %v5325_v1 = vld [vmem:[%s9924_s0 + $0x271] sm:$0xff]  ;;  %v7078_v52 = vld [vmem:[%s9924_s0 + $0xe0] sm:$0xff] }
 0x1b8   :  { %v1050_v49 = vpop.permute.xlu1 %1049  ;;  %v6953_v33 = vpop.permute.xlu0 %1003  ;;  %v1364_v7 = vsel %vm748_vm4, %v1348_v46, %v6881_v20  ;;  %v1318_v46 = vsel %vm697_vm1, %v7078_v52, %v6908_v18 }
 0x1b9   :  { %v1380_v57 = vsel %vm765_vm5, %v1364_v7, %v1112_v25  ;;  %v1334_v7 = vsel %vm714_vm2, %v1318_v46, %v6925_v62 }
 0x1ba   :  { %v6958_v26 = vpop.f32.mrb[4].mxu0  ;;  %1127 = vrot.lane.b32.xlu1 %v4744_v0, %s5494_s19  ;;  %969 = vrot.lane.b32.xlu0 %v6949_v40, %s5490_s17  ;;  %v1396_v48 = vsel %vm782_vm6, %v1380_v57, %v1160_v9  ;;  %v1350_v57 = vsel %vm731_vm3, %v1334_v7, %v6953_v33 }
 0x1bb   :  { %v6964_v35 = vpop.f32.mrb[5].mxu0 }
 0x1bc   :  { %v1270_v28 = vpop.permute.xlu1 %1269  ;;  %v1208_v15 = vpop.permute.xlu0 %1207 }
 0x1bd   :  { %v1427_v56 = vsel %vm816_vm8, %v1411_v2, %v1270_v28  ;;  %v1412_v13 = vsel %vm799_vm7, %v1396_v48, %v1208_v15 }
 0x1be   :  { %1517 = vrot.lane.b32.xlu1 %v10051_v11, %s5491_s18  ;;  %1173 = vrot.lane.b32.xlu0 %v6981_v30, %s5495_s11 }
 0x1bf   :  { %5072 = vmatprep.mubr.msk.f32.mxu0 %vm2600_vm9, %v1427_v56 }
 0x1c0   :  { %v1052_v12 = vpop.permute.xlu1 %1051  ;;  %v6995_v16 = vpop.permute.xlu0 %893 }
 0x1c2   :  { %971 = vrot.lane.b32.xlu1 %v6991_v54, %s5490_s17  ;;  %1563 = vrot.lane.b32.xlu0 %v10052_v58, %s5490_s17 }
 0x1c4   :  { %v1272_v34 = vpop.permute.xlu1 %1271  ;;  %v1114_v38 = vpop.permute.xlu0 %1113 }
 0x1c5   :  { %v1428_v45 = vsel %vm816_vm8, %v1412_v13, %v1272_v34  ;;  %v1366_v13 = vsel %vm748_vm4, %v1350_v57, %v1052_v12  ;;  %v10056_v34 = vld [vmem:[#allocation31_spill] sm:$0xff] }
 0x1c6   :  { %1175 = vrot.lane.b32.xlu1 %v10053_v51, %s5495_s11  ;;  %1017 = vrot.lane.b32.xlu0 %v10050_v43, %s5492_s27  ;;  %v5329_v12 = vld [vmem:[%s9924_s0 + $0x291] sm:$0xff] }
 0x1c7   :  { %5073 = vmatmul.mubr.msk.f32.gmra.mrb[18].mxu0 %vm2600_vm9, %v1428_v45 }
 0x1c8   :  { %v7012_v20 = vpop.permute.xlu1 %957  ;;  %v7014_v25 = vpop.permute.xlu0 %895 }
 0x1ca   :  { %1565 = vrot.lane.b32.xlu1 %v10054_v41, %s5490_s17  ;;  %1221 = vrot.lane.b32.xlu0 %v5325_v1, %s5496_s29 }
 0x1cc   :  { %v1162_v9 = vpop.permute.xlu1 %1161  ;;  %v1116_v24 = vpop.permute.xlu0 %1115 }
 0x1cd   :  { %v1382_v18 = vsel %vm765_vm5, %v1366_v13, %v1116_v24  ;;  %v4746_v24 = vld [vmem:[%s9924_s0 + $0x441] sm:$0xff] }
 0x1ce   :  { %1019 = vrot.lane.b32.xlu1 %v10051_v11, %s5492_s27  ;;  %1611 = vrot.lane.b32.xlu0 %v6283_v21, %s5492_s27  ;;  %v1317_v21 = vsel %vm697_vm1, %v7037_v6, %v6883_v53 }
 0x1d0   :  { %v7026_v43 = vpop.permute.xlu1 %1005  ;;  %v7028_v63 = vpop.permute.xlu0 %959 }
 0x1d2   :  { %1223 = vrot.lane.b32.xlu1 %v10049_v36, %s5496_s29  ;;  %1065 = vrot.lane.b32.xlu0 %v10052_v58, %s5493_s12  ;;  %v1333_v36 = vsel %vm714_vm2, %v1317_v21, %v6906_v3 }
 0x1d3   :  { %v1349_v42 = vsel %vm731_vm3, %v1333_v36, %v6923_v22  ;;  %v4745_v22 = vld [vmem:[%s9924_s0 + $0x431] sm:$0xff] }
 0x1d4   :  { %v1210_v0 = vpop.permute.xlu1 %1209  ;;  %v1164_v37 = vpop.permute.xlu0 %1163  ;;  %v1365_v28 = vsel %vm748_vm4, %v1349_v42, %v1050_v49  ;;  %v10058_v42 = vld [vmem:[#allocation32_spill] sm:$0xff] }
 0x1d5   :  { %v1381_v53 = vsel %vm765_vm5, %v1365_v28, %v1114_v38  ;;  %v1398_v62 = vsel %vm782_vm6, %v1382_v18, %v1164_v37  ;;  %v4777_v28 = vld [vmem:[%s9924_s0 + $0x3b0] sm:$0xff] }
 0x1d6   :  { %1613 = vrot.lane.b32.xlu1 %v6326_v14, %s5492_s27  ;;  %1285 = vrot.lane.b32.xlu0 %v6860_v44, %s5497_s2  ;;  %v7063_v14 = vld [vmem:[%s9924_s0 + $0x320] sm:$0xff]  ;;  %v1397_v44 = vsel %vm782_vm6, %v1381_v53, %v1162_v9 }
 0x1d7   :  { %v1413_v49 = vsel %vm799_vm7, %v1397_v44, %v1210_v0 }
 0x1d8   :  { %v7050_v10 = vpop.permute.xlu1 %1053  ;;  %v7052_v2 = vpop.permute.xlu0 %1007 }
 0x1da   :  { %v7056_v15 = vpop.f32.mrb[6].mxu0  ;;  %909 = vrot.lane.b32.xlu1 %v6264_v4, %s5491_s18  ;;  %1659 = vrot.lane.b32.xlu0 %v7063_v14, %s5493_s12 }
 0x1db   :  { %v7068_v3 = vpop.f32.mrb[7].mxu0 }
 0x1dc   :  { %10055 = vst [vmem:[#allocation7_spill] sm:$0xff] %v7068_v3  ;;  %v1274_v56 = vpop.permute.xlu1 %1273  ;;  %v1212_v5 = vpop.permute.xlu0 %1211 }
 0x1dd   :  { %v1429_v11 = vsel %vm816_vm8, %v1413_v49, %v1274_v56  ;;  %v1414_v38 = vsel %vm799_vm7, %v1398_v62, %v1212_v5  ;;  %v7157_v5 = vld [vmem:[%s9924_s0 + $0x341] sm:$0xff] }
 0x1de   :  { %1129 = vrot.lane.b32.xlu1 %v4745_v22, %s5494_s19  ;;  %1067 = vrot.lane.b32.xlu0 %v10054_v41, %s5493_s12  ;;  %v10057_v41 = vld [vmem:[#allocation28_spill] sm:$0xff] }
 0x1df   :  { %5075 = vmatprep.mubr.msk.f32.mxu0 %vm2600_vm9, %v1429_v11  ;;  %v7144_v22 = vld [vmem:[%s9924_s0 + $0xf0] sm:$0xff] }
 0x1e0   :  { %v7091_v58 = vpop.permute.xlu1 %1055  ;;  %v7093_v48 = vpop.permute.xlu0 %897  ;;  %v1319_v49 = vsel %vm697_vm1, %v7144_v22, %v6995_v16 }
 0x1e1   :  { %v1335_v56 = vsel %vm714_vm2, %v1319_v49, %v7012_v20 }
 0x1e2   :  { %1519 = vrot.lane.b32.xlu1 %v10056_v34, %s5491_s18  ;;  %1287 = vrot.lane.b32.xlu0 %v6949_v40, %s5497_s2  ;;  %v7114_v40 = vld [vmem:[%s9924_s0 + $0x331] sm:$0xff]  ;;  %v1351_v11 = vsel %vm731_vm3, %v1335_v56, %v7026_v43 }
 0x1e3   :  { %v1367_v16 = vsel %vm748_vm4, %v1351_v11, %v7050_v10 }
 0x1e4   :  { %v1276_v45 = vpop.permute.xlu1 %1275  ;;  %v1118_v33 = vpop.permute.xlu0 %1117 }
 0x1e5   :  { %v1430_v51 = vsel %vm816_vm8, %v1414_v38, %v1276_v45  ;;  %v7182_v38 = vld [vmem:[%s9924_s0 + $0x100] sm:$0xff]  ;;  %v7191_v45 = vld [vmem:[%s9924_s0 + $0x330] sm:$0xff] }
 0x1e6   :  { %1707 = vrot.lane.b32.xlu1 %v5329_v12, %s5494_s19  ;;  %1661 = vrot.lane.b32.xlu0 %v10057_v41, %s5493_s12  ;;  %10062 = vst [vmem:[#allocation11_spill] sm:$0xff] %v7182_v38 }
 0x1e7   :  { %5076 = vmatmul.mubr.msk.f32.gmra.mrb[20].mxu0 %vm2600_vm9, %v1430_v51 }
 0x1e8   :  { %v7116_v1 = vpop.permute.xlu1 %961  ;;  %v7118_v9 = vpop.permute.xlu0 %899 }
 0x1ea   :  { %973 = vrot.lane.b32.xlu1 %v7114_v40, %s5490_s17  ;;  %911 = vrot.lane.b32.xlu0 %v6310_v23, %s5491_s18  ;;  %v10059_v23 = vld [vmem:[#allocation33_spill] sm:$0xff] }
 0x1ec   :  { %v1166_v0 = vpop.permute.xlu1 %1165  ;;  %v1120_v37 = vpop.permute.xlu0 %1119 }
 0x1ee   :  { %1177 = vrot.lane.b32.xlu1 %v7063_v14, %s5495_s11  ;;  %1131 = vrot.lane.b32.xlu0 %v4746_v24, %s5494_s19 }
 0x1f0   :  { %v7130_v21 = vpop.permute.xlu1 %1009  ;;  %v7132_v36 = vpop.permute.xlu0 %963 }
 0x1f2   :  { %1567 = vrot.lane.b32.xlu1 %v10058_v42, %s5490_s17  ;;  %1521 = vrot.lane.b32.xlu0 %v10059_v23, %s5491_s18 }
 0x1f4   :  { %v1214_v53 = vpop.permute.xlu1 %1213  ;;  %v1168_v44 = vpop.permute.xlu0 %1167 }
 0x1f6   :  { %1771 = vrot.lane.b32.xlu1 %v4777_v28, %s5495_s11  ;;  %1709 = vrot.lane.b32.xlu0 %v6264_v4, %s5494_s19  ;;  %v1383_v4 = vsel %vm765_vm5, %v1367_v16, %v1118_v33  ;;  %v4778_v28 = vld [vmem:[%s9924_s0 + $0x3c0] sm:$0xff] }
 0x1f7   :  { %v1399_v20 = vsel %vm782_vm6, %v1383_v4, %v1166_v0  ;;  %v10063_v0 = vld [vmem:[#allocation34_spill] sm:$0xff] }
 0x1f8   :  { %v7161_v46 = vpop.permute.xlu1 %1057  ;;  %v7163_v7 = vpop.permute.xlu0 %1011  ;;  %v1415_v13 = vsel %vm799_vm7, %v1399_v20, %v1214_v53  ;;  %v5333_v16 = vld [vmem:[%s9924_s0 + $0x2a1] sm:$0xff] }
 0x1fa   :  { %v7168_v57 = vpop.f32.mrb[8].mxu0  ;;  %1021 = vrot.lane.b32.xlu1 %v10056_v34, %s5492_s27  ;;  %975 = vrot.lane.b32.xlu0 %v7157_v5, %s5490_s17  ;;  %v1320_v34 = vsel %vm697_vm1, %v7182_v38, %v7014_v25 }
 0x1fb   :  { %10060 = vst [vmem:[#allocation10_spill] sm:$0xff] %v7168_v57  ;;  %v7175_v43 = vpop.f32.mrb[9].mxu0  ;;  %v1336_v33 = vsel %vm714_vm2, %v1320_v34, %v7028_v63  ;;  %v4747_v34 = vld [vmem:[%s9924_s0 + $0x451] sm:$0xff] }
 0x1fc   :  { %10061 = vst [vmem:[#allocation9_spill] sm:$0xff] %v7175_v43  ;;  %v1278_v18 = vpop.permute.xlu1 %1277  ;;  %v1216_v62 = vpop.permute.xlu0 %1215  ;;  %v1352_v51 = vsel %vm731_vm3, %v1336_v33, %v7052_v2  ;;  %v4793_v2 = vld [vmem:[%s9924_s0 + $0x440] sm:$0xff] }
 0x1fd   :  { %v1431_v10 = vsel %vm816_vm8, %v1415_v13, %v1278_v18 }
 0x1fe   :  { %1225 = vrot.lane.b32.xlu1 %v5329_v12, %s5496_s29  ;;  %1179 = vrot.lane.b32.xlu0 %v7191_v45, %s5495_s11  ;;  %v1368_v12 = vsel %vm748_vm4, %v1352_v51, %v7091_v58 }
 0x1ff   :  { %5078 = vmatprep.mubr.msk.f32.mxu0 %vm2600_vm9, %v1431_v10  ;;  %v1384_v24 = vsel %vm765_vm5, %v1368_v12, %v1120_v37 }
 0x200   :  { %v7200_v41 = vpop.permute.xlu1 %1059  ;;  %v7202_v25 = vpop.permute.xlu0 %901  ;;  %v1400_v63 = vsel %vm782_vm6, %v1384_v24, %v1168_v44 }
 0x201   :  { %v1416_v58 = vsel %vm799_vm7, %v1400_v63, %v1216_v62  ;;  %v5335_v62 = vld [vmem:[%s9924_s0 + $0x2d0] sm:$0xff] }
 0x202   :  { %1615 = vrot.lane.b32.xlu1 %v6387_v59, %s5492_s27  ;;  %1569 = vrot.lane.b32.xlu0 %v10063_v0, %s5490_s17  ;;  %v1321_v10 = vsel %vm697_vm1, %v5335_v62, %v7093_v48  ;;  %v5339_v62 = vld [vmem:[%s9924_s0 + $0x121] sm:$0xff] }
 0x204   :  { %v1280_v53 = vpop.permute.xlu1 %1279  ;;  %v1122_v37 = vpop.permute.xlu0 %1121 }
 0x205   :  { %v1432_v49 = vsel %vm816_vm8, %v1416_v58, %v1280_v53  ;;  %v1322_v53 = vsel %vm697_vm1, %v6849_v39, %v7118_v9 }
 0x206   :  { %1835 = vrot.lane.b32.xlu1 %v4793_v2, %s5496_s29  ;;  %1773 = vrot.lane.b32.xlu0 %v4778_v28, %s5495_s11 }
 0x207   :  { %5079 = vmatmul.mubr.msk.f32.gmra.mrb[22].mxu0 %vm2600_vm9, %v1432_v49  ;;  %v1338_v49 = vsel %vm714_vm2, %v1322_v53, %v7132_v36 }
 0x208   :  { %v7223_v59 = vpop.permute.xlu1 %965  ;;  %v7225_v44 = vpop.permute.xlu0 %903 }
 0x20a   :  { %1069 = vrot.lane.b32.xlu1 %v10058_v42, %s5493_s12  ;;  %1023 = vrot.lane.b32.xlu0 %v10059_v23, %s5492_s27  ;;  %v7244_v42 = vld [vmem:[%s9924_s0 + $0x340] sm:$0xff]  ;;  %v4794_v23 = vld [vmem:[%s9924_s0 + $0x450] sm:$0xff] }
 0x20c   :  { %v1170_v56 = vpop.permute.xlu1 %1169  ;;  %v1124_v11 = vpop.permute.xlu0 %1123 }
 0x20e   :  { %1289 = vrot.lane.b32.xlu1 %v6991_v54, %s5497_s2  ;;  %1227 = vrot.lane.b32.xlu0 %v5333_v16, %s5496_s29  ;;  %v4809_v54 = vld [vmem:[%s9924_s0 + $0x3b1] sm:$0xff] }
 0x210   :  { %v7237_v4 = vpop.permute.xlu1 %1013  ;;  %v7239_v20 = vpop.permute.xlu0 %967 }
 0x212   :  { %1663 = vrot.lane.b32.xlu1 %v7244_v42, %s5493_s12  ;;  %1617 = vrot.lane.b32.xlu0 %v6420_v19, %s5492_s27  ;;  %v1337_v19 = vsel %vm714_vm2, %v1321_v10, %v7116_v1  ;;  %v5336_v1 = vld [vmem:[%s9924_s0 + $0x3d1] sm:$0xff] }
 0x213   :  { %v1353_v33 = vsel %vm731_vm3, %v1337_v19, %v7130_v21 }
 0x214   :  { %v1218_v13 = vpop.permute.xlu1 %1217  ;;  %v1172_v18 = vpop.permute.xlu0 %1171  ;;  %v1369_v48 = vsel %vm748_vm4, %v1353_v33, %v7161_v46  ;;  %v7349_v33 = vld [vmem:[%s9924_s0 + $0x1c0] sm:$0xff] }
 0x215   :  { %v1385_v24 = vsel %vm765_vm5, %v1369_v48, %v1122_v37  ;;  %v7295_v37 = vld [vmem:[%s9924_s0 + $0x1b0] sm:$0xff]  ;;  %10066 = vst [vmem:[#allocation13_spill] sm:$0xff] %v7349_v33 }
 0x216   :  { %1899 = vrot.lane.b32.xlu1 %v4809_v54, %s5497_s2  ;;  %1837 = vrot.lane.b32.xlu0 %v4794_v23, %s5496_s29  ;;  %v1401_v21 = vsel %vm782_vm6, %v1385_v24, %v1170_v56  ;;  %v1354_v56 = vsel %vm731_vm3, %v1338_v49, %v7163_v7  ;;  %v4810_v7 = vld [vmem:[%s9924_s0 + $0x3c1] sm:$0xff]  ;;  %v4779_v48 = vld [vmem:[%s9924_s0 + $0x3d0] sm:$0xff] }
 0x217   :  { %v1417_v2 = vsel %vm799_vm7, %v1401_v21, %v1218_v13  ;;  %v1370_v16 = vsel %vm748_vm4, %v1354_v56, %v7200_v41 }
 0x218   :  { %v7270_v51 = vpop.permute.xlu1 %1061  ;;  %v7272_v12 = vpop.permute.xlu0 %1015  ;;  %v1386_v54 = vsel %vm765_vm5, %v1370_v16, %v1124_v11  ;;  %v5343_v16 = vld [vmem:[%s9924_s0 + $0x10] sm:$0xff] }
 0x219   :  { %v1402_v36 = vsel %vm782_vm6, %v1386_v54, %v1172_v18  ;;  %v4795_v54 = vld [vmem:[%s9924_s0 + $0x460] sm:$0xff] }
 0x21a   :  { %v7277_v0 = vpop.f32.mrb[10].mxu0  ;;  %1133 = vrot.lane.b32.xlu1 %v4747_v34, %s5494_s19  ;;  %1071 = vrot.lane.b32.xlu0 %v5336_v1, %s5493_s12 }
 0x21b   :  { %10064 = vst [vmem:[#allocation6_spill] sm:$0xff] %v7277_v0  ;;  %v7285_v63 = vpop.f32.mrb[11].mxu0 }
 0x21c   :  { %10065 = vst [vmem:[#allocation12_spill] sm:$0xff] %v7285_v63  ;;  %v1282_v28 = vpop.permute.xlu1 %1281  ;;  %v1220_v46 = vpop.permute.xlu0 %1219  ;;  %v5357_v63 = vld [vmem:[%s9924_s0 + $0x30] sm:$0xff] }
 0x21d   :  { %v1433_v58 = vsel %vm816_vm8, %v1417_v2, %v1282_v28  ;;  %v1418_v23 = vsel %vm799_vm7, %v1402_v36, %v1220_v46  ;;  %v5341_v28 = vld [vmem:[%s9924_s0 + $0x131] sm:$0xff] }
 0x21e   :  { %1491 = vrot.lane.b32.xlu1 %v7295_v37, %s5491_s18  ;;  %1291 = vrot.lane.b32.xlu0 %v7114_v40, %s5497_s2  ;;  %v5338_v40 = vld [vmem:[%s9924_s0 + $0x2b1] sm:$0xff] }
 0x21f   :  { %5081 = vmatprep.mubr.msk.f32.mxu0 %vm2600_vm9, %v1433_v58 }
 0x220   :  { %v7306_v39 = vpop.permute.xlu1 %1063  ;;  %v7308_v9 = vpop.permute.xlu0 %905 }
 0x222   :  { %1711 = vrot.lane.b32.xlu1 %v5338_v40, %s5494_s19  ;;  %1665 = vrot.lane.b32.xlu0 %v6453_v47, %s5493_s12  ;;  %v4748_v47 = vld [vmem:[%s9924_s0 + $0x461] sm:$0xff] }
 0x224   :  { %v1284_v41 = vpop.permute.xlu1 %1283  ;;  %v1126_v13 = vpop.permute.xlu0 %1125 }
 0x225   :  { %v1434_v11 = vsel %vm816_vm8, %v1418_v23, %v1284_v41  ;;  %v1323_v23 = vsel %vm697_vm1, %v6894_v31, %v7202_v25  ;;  %v5344_v31 = vld [vmem:[%s9924_s0 + $0x1c1] sm:$0xff] }
 0x226   :  { %2067 = vrot.lane.b32.xlu1 %v5339_v62, %s5491_s18  ;;  %1901 = vrot.lane.b32.xlu0 %v4810_v7, %s5497_s2  ;;  %v1339_v41 = vsel %vm714_vm2, %v1323_v23, %v7223_v59 }
 0x227   :  { %5082 = vmatmul.mubr.msk.f32.gmra.mrb[24].mxu0 %vm2600_vm9, %v1434_v11  ;;  %v1355_v11 = vsel %vm731_vm3, %v1339_v41, %v7237_v4 }
 0x228   :  { %v7334_v18 = vpop.permute.xlu1 %907  ;;  %v7336_v10 = vpop.permute.xlu0 %1515 }
 0x22a   :  { %1181 = vrot.lane.b32.xlu1 %v7244_v42, %s5495_s11  ;;  %1135 = vrot.lane.b32.xlu0 %v4748_v47, %s5494_s19 }
 0x22c   :  { %v7341_v19 = vpop.permute.xlu1 %1127  ;;  %v7343_v34 = vpop.permute.xlu0 %969 }
 0x22e   :  { %1539 = vrot.lane.b32.xlu1 %v5339_v62, %s5490_s17  ;;  %1493 = vrot.lane.b32.xlu0 %v7349_v33, %s5491_s18 }
 0x230   :  { %v7356_v24 = vpop.permute.xlu1 %1517  ;;  %v1174_v1 = vpop.permute.xlu0 %1173 }
 0x232   :  { %1775 = vrot.lane.b32.xlu1 %v4779_v48, %s5495_s11  ;;  %1713 = vrot.lane.b32.xlu0 %v6473_v50, %s5494_s19  ;;  %v5342_v50 = vld [vmem:[%s9924_s0 + $0x350] sm:$0xff]  ;;  %v1371_v48 = vsel %vm748_vm4, %v1355_v11, %v7270_v51 }
 0x234   :  { %v7361_v21 = vpop.permute.xlu1 %971  ;;  %v7363_v2 = vpop.permute.xlu0 %1563 }
 0x236   :  { %2115 = vrot.lane.b32.xlu1 %v6482_v8, %s5490_s17  ;;  %2069 = vrot.lane.b32.xlu0 %v5341_v28, %s5491_s18 }
 0x238   :  { %v1176_v46 = vpop.permute.xlu1 %1175  ;;  %v7371_v58 = vpop.permute.xlu0 %1017 }
 0x23a   :  { %v7373_v53 = vpop.f32.mrb[12].mxu0  ;;  %1229 = vrot.lane.b32.xlu1 %v5338_v40, %s5496_s29  ;;  %1183 = vrot.lane.b32.xlu0 %v5342_v50, %s5495_s11  ;;  %v4780_v40 = vld [vmem:[%s9924_s0 + $0x3e0] sm:$0xff] }
 0x23b   :  { %10067 = vst [vmem:[#allocation16_spill] sm:$0xff] %v7373_v53  ;;  %v7380_v8 = vpop.f32.mrb[13].mxu0  ;;  %v5356_v53 = vld [vmem:[%s9924_s0 + $0x310] sm:$0xff] }
 0x23c   :  { %10068 = vst [vmem:[#allocation14_spill] sm:$0xff] %v7380_v8  ;;  %v7382_v49 = vpop.permute.xlu1 %1565  ;;  %v1222_v56 = vpop.permute.xlu0 %1221 }
 0x23e   :  { %1587 = vrot.lane.b32.xlu1 %v5343_v16, %s5492_s27  ;;  %1541 = vrot.lane.b32.xlu0 %v5341_v28, %s5490_s17  ;;  %v1387_v28 = vsel %vm765_vm5, %v1371_v48, %v1126_v13  ;;  %v5345_v13 = vld [vmem:[%s9924_s0 + $0x2c1] sm:$0xff] }
 0x23f   :  { %v1403_v25 = vsel %vm782_vm6, %v1387_v28, %v1174_v1 }
 0x240   :  { %v7395_v36 = vpop.permute.xlu1 %1019  ;;  %v7397_v7 = vpop.permute.xlu0 %1611  ;;  %v1419_v59 = vsel %vm799_vm7, %v1403_v25, %v1222_v56  ;;  %v1324_v56 = vsel %vm697_vm1, %v6981_v30, %v7225_v44  ;;  %v4796_v30 = vld [vmem:[%s9924_s0 + $0x470] sm:$0xff] }
 0x242   :  { %1839 = vrot.lane.b32.xlu1 %v4795_v54, %s5496_s29  ;;  %1777 = vrot.lane.b32.xlu0 %v4780_v40, %s5495_s11  ;;  %v1340_v54 = vsel %vm714_vm2, %v1324_v56, %v7239_v20  ;;  %v4811_v40 = vld [vmem:[%s9924_s0 + $0x3d1] sm:$0xff]  ;;  %v4812_v56 = vld [vmem:[%s9924_s0 + $0x3e1] sm:$0xff] }
 0x244   :  { %v1224_v62 = vpop.permute.xlu1 %1223  ;;  %v7408_v47 = vpop.permute.xlu0 %1065 }
 0x246   :  { %2163 = vrot.lane.b32.xlu1 %v6867_v55, %s5492_s27  ;;  %2117 = vrot.lane.b32.xlu0 %v5344_v31, %s5490_s17 }
 0x248   :  { %v7421_v4 = vpop.permute.xlu1 %1613  ;;  %v1286_v50 = vpop.permute.xlu0 %1285 }
 0x249   :  { %v1435_v51 = vsel %vm816_vm8, %v1419_v59, %v1286_v50  ;;  %v7490_v50 = vld [vmem:[%s9924_s0 + $0x1d0] sm:$0xff] }
 0x24a   :  { %1293 = vrot.lane.b32.xlu1 %v7157_v5, %s5497_s2  ;;  %1231 = vrot.lane.b32.xlu0 %v5345_v13, %s5496_s29  ;;  %v5346_v5 = vld [vmem:[%s9924_s0 + $0x20] sm:$0xff]  ;;  %10071 = vst [vmem:[#allocation17_spill] sm:$0xff] %v7490_v50 }
 0x24b   :  { %5084 = vmatprep.mubr.msk.f32.mxu0 %vm2600_vm9, %v1435_v51 }
 0x24c   :  { %v7431_v16 = vpop.permute.xlu1 %909  ;;  %v7433_v1 = vpop.permute.xlu0 %1659 }
 0x24e   :  { %1635 = vrot.lane.b32.xlu1 %v6867_v55, %s5493_s12  ;;  %1589 = vrot.lane.b32.xlu0 %v5346_v5, %s5492_s27  ;;  %v1356_v55 = vsel %vm731_vm3, %v1340_v54, %v7272_v12 }
 0x24f   :  { %v1372_v41 = vsel %vm748_vm4, %v1356_v55, %v7306_v39  ;;  %v5347_v39 = vld [vmem:[%s9924_s0 + $0x11] sm:$0xff] }
 0x250   :  { %v7454_v44 = vpop.permute.xlu1 %1129  ;;  %v7456_v23 = vpop.permute.xlu0 %1067  ;;  %v1388_v20 = vsel %vm765_vm5, %v1372_v41, %v7341_v19  ;;  %v5351_v41 = vld [vmem:[%s9924_s0 + $0x21] sm:$0xff] }
 0x251   :  { %v1404_v11 = vsel %vm782_vm6, %v1388_v20, %v1176_v46  ;;  %v4764_v46 = vld [vmem:[%s9924_s0 + $0x351] sm:$0xff] }
 0x252   :  { %1903 = vrot.lane.b32.xlu1 %v4811_v40, %s5497_s2  ;;  %1841 = vrot.lane.b32.xlu0 %v4796_v30, %s5496_s29  ;;  %v1420_v48 = vsel %vm799_vm7, %v1404_v11, %v1224_v62  ;;  %v5349_v40 = vld [vmem:[%s9924_s0 + $0x141] sm:$0xff] }
 0x254   :  { %v7466_v28 = vpop.permute.xlu1 %1519  ;;  %v1288_v12 = vpop.permute.xlu0 %1287 }
 0x255   :  { %v1436_v31 = vsel %vm816_vm8, %v1420_v48, %v1288_v12  ;;  %v7532_v48 = vld [vmem:[%s9924_s0 + $0x1e0] sm:$0xff]  ;;  %v4765_v12 = vld [vmem:[%s9924_s0 + $0x130] sm:$0xff] }
 0x256   :  { %v7469_v25 = vpop.f32.mrb[14].mxu0  ;;  %2211 = vrot.lane.b32.xlu1 %v5347_v39, %s5493_s12  ;;  %2165 = vrot.lane.b32.xlu0 %v6932_v27, %s5492_s27  ;;  %10072 = vst [vmem:[#allocation19_spill] sm:$0xff] %v7532_v48 }
 0x257   :  { %10069 = vst [vmem:[#allocation15_spill] sm:$0xff] %v7469_v25  ;;  %v7477_v19 = vpop.f32.mrb[15].mxu0  ;;  %5085 = vmatmul.mubr.msk.f32.gmra.mrb[26].mxu0 %vm2600_vm9, %v1436_v31 }
 0x258   :  { %10070 = vst [vmem:[#allocation18_spill] sm:$0xff] %v7477_v19  ;;  %v7483_v62 = vpop.permute.xlu1 %1707  ;;  %v7485_v59 = vpop.permute.xlu0 %1661 }
 0x25a   :  { %1495 = vrot.lane.b32.xlu1 %v7490_v50, %s5491_s18  ;;  %1295 = vrot.lane.b32.xlu0 %v4764_v46, %s5497_s2 }
 0x25c   :  { %v7495_v51 = vpop.permute.xlu1 %973  ;;  %v7497_v13 = vpop.permute.xlu0 %911 }
 0x25e   :  { %1683 = vrot.lane.b32.xlu1 %v5347_v39, %s5494_s19  ;;  %1637 = vrot.lane.b32.xlu0 %v6932_v27, %s5493_s12  ;;  %v5350_v27 = vld [vmem:[%s9924_s0 + $0xa1] sm:$0xff] }
 0x260   :  { %v1178_v5 = vpop.permute.xlu1 %1177  ;;  %v7505_v54 = vpop.permute.xlu0 %1131 }
 0x262   :  { %2071 = vrot.lane.b32.xlu1 %v5349_v40, %s5491_s18  ;;  %1905 = vrot.lane.b32.xlu0 %v4812_v56, %s5497_s2 }
 0x264   :  { %v7512_v30 = vpop.permute.xlu1 %1567  ;;  %v7514_v55 = vpop.permute.xlu0 %1521 }
 0x266   :  { %2259 = vrot.lane.b32.xlu1 %v5350_v27, %s5494_s19  ;;  %2213 = vrot.lane.b32.xlu0 %v5351_v41, %s5493_s12  ;;  %v5354_v27 = vld [vmem:[%s9924_s0 + $0x151] sm:$0xff] }
 0x268   :  { %v7524_v20 = vpop.permute.xlu1 %1771  ;;  %v7526_v11 = vpop.permute.xlu0 %1709 }
 0x26a   :  { %1543 = vrot.lane.b32.xlu1 %v5349_v40, %s5490_s17  ;;  %1497 = vrot.lane.b32.xlu0 %v7532_v48, %s5491_s18  ;;  %v5353_v40 = vld [vmem:[%s9924_s0 + $0x1d1] sm:$0xff]  ;;  %v1325_v48 = vsel %vm697_vm1, %v5356_v53, %v7308_v9  ;;  %v4766_v9 = vld [vmem:[%s9924_s0 + $0x140] sm:$0xff] }
 0x26c   :  { %v7539_v31 = vpop.permute.xlu1 %1021  ;;  %v7541_v39 = vpop.permute.xlu0 %975 }
 0x26e   :  { %1747 = vrot.lane.b32.xlu1 %v4765_v12, %s5495_s11  ;;  %1685 = vrot.lane.b32.xlu0 %v5351_v41, %s5494_s19  ;;  %v4781_v12 = vld [vmem:[%s9924_s0 + $0x1c0] sm:$0xff] }
 0x270   :  { %v1226_v46 = vpop.permute.xlu1 %1225  ;;  %v7545_v56 = vpop.permute.xlu0 %1179 }
 0x272   :  { %2119 = vrot.lane.b32.xlu1 %v5353_v40, %s5490_s17  ;;  %2073 = vrot.lane.b32.xlu0 %v5354_v27, %s5491_s18  ;;  %v5355_v40 = vld [vmem:[%s9924_s0 + $0xb1] sm:$0xff] }
 0x274   :  { %v7558_v41 = vpop.permute.xlu1 %1615  ;;  %v7560_v19 = vpop.permute.xlu0 %1569 }
 0x276   :  { %2307 = vrot.lane.b32.xlu1 %v4781_v12, %s5495_s11  ;;  %2261 = vrot.lane.b32.xlu0 %v5355_v40, %s5494_s19  ;;  %v1341_v40 = vsel %vm714_vm2, %v1325_v48, %v7343_v34 }
 0x277   :  { %v1357_v53 = vsel %vm731_vm3, %v1341_v40, %v7371_v58 }
 0x278   :  { %v1836_v25 = vpop.permute.xlu1 %1835  ;;  %v7567_v8 = vpop.permute.xlu0 %1773  ;;  %v1373_v34 = vsel %vm748_vm4, %v1357_v53, %v7408_v47  ;;  %v1935_v47 = vsel %vm697_vm1, %v5358_v32, %v7336_v10  ;;  %v4782_v32 = vld [vmem:[%s9924_s0 + $0x1d0] sm:$0xff] }
 0x279   :  { %v1389_v48 = vsel %vm765_vm5, %v1373_v34, %v7454_v44  ;;  %v5359_v44 = vld [vmem:[%s9924_s0 + $0x1e1] sm:$0xff] }
 0x27a   :  { %v7574_v50 = vpop.f32.mrb[16].mxu0  ;;  %1591 = vrot.lane.b32.xlu1 %v5357_v63, %s5492_s27  ;;  %1545 = vrot.lane.b32.xlu0 %v5354_v27, %s5490_s17  ;;  %v1405_v0 = vsel %vm782_vm6, %v1389_v48, %v1178_v5  ;;  %v4797_v5 = vld [vmem:[%s9924_s0 + $0x131] sm:$0xff] }
 0x27b   :  { %v7585_v33 = vpop.f32.mrb[17].mxu0  ;;  %v1421_v58 = vsel %vm799_vm7, %v1405_v0, %v1226_v46  ;;  %v1951_v0 = vsel %vm714_vm2, %v1935_v47, %v7363_v2 }
 0x27c   :  { %10073 = vst [vmem:[#allocation20_spill] sm:$0xff] %v7585_v33  ;;  %v7594_v38 = vpop.permute.xlu1 %1069  ;;  %v7596_v27 = vpop.permute.xlu0 %1023  ;;  %v1967_v10 = vsel %vm731_vm3, %v1951_v0, %v7397_v7  ;;  %v5362_v0 = vld [vmem:[%s9924_s0 + $0x31] sm:$0xff] }
 0x27d   :  { %v1983_v2 = vsel %vm748_vm4, %v1967_v10, %v7433_v1  ;;  %v1326_v1 = vsel %vm697_vm1, %v7063_v14, %v7334_v18 }
 0x27e   :  { %1811 = vrot.lane.b32.xlu1 %v4781_v12, %s5496_s29  ;;  %1749 = vrot.lane.b32.xlu0 %v4766_v9, %s5495_s11 }
 0x280   :  { %v1290_v40 = vpop.permute.xlu1 %1289  ;;  %v1228_v63 = vpop.permute.xlu0 %1227 }
 0x281   :  { %v1437_v33 = vsel %vm816_vm8, %v1421_v58, %v1290_v40 }
 0x282   :  { %2167 = vrot.lane.b32.xlu1 %v6971_v17, %s5492_s27  ;;  %2121 = vrot.lane.b32.xlu0 %v5359_v44, %s5490_s17 }
 0x283   :  { %5087 = vmatprep.mubr.msk.f32.mxu0 %vm2600_vm9, %v1437_v33  ;;  %v1999_v33 = vsel %vm765_vm5, %v1983_v2, %v7483_v62  ;;  %v5360_v62 = vld [vmem:[%s9924_s0 + $0x40] sm:$0xff] }
 0x284   :  { %v7629_v46 = vpop.permute.xlu1 %1663  ;;  %v7631_v12 = vpop.permute.xlu0 %1617  ;;  %v2015_v9 = vsel %vm782_vm6, %v1999_v33, %v7524_v20 }
 0x285   :  { %v2031_v53 = vsel %vm799_vm7, %v2015_v9, %v1836_v25  ;;  %v1342_v25 = vsel %vm714_vm2, %v1326_v1, %v7361_v21 }
 0x286   :  { %2355 = vrot.lane.b32.xlu1 %v4797_v5, %s5496_s29  ;;  %2309 = vrot.lane.b32.xlu0 %v4782_v32, %s5495_s11  ;;  %v1358_v20 = vsel %vm731_vm3, %v1342_v25, %v7395_v36 }
 0x288   :  { %v1900_v7 = vpop.permute.xlu1 %1899  ;;  %v1838_v34 = vpop.permute.xlu0 %1837 }
 0x289   :  { %v2047_v48 = vsel %vm816_vm8, %v2031_v53, %v1900_v7 }
 0x28a   :  { %1639 = vrot.lane.b32.xlu1 %v6971_v17, %s5493_s12  ;;  %1593 = vrot.lane.b32.xlu0 %v5360_v62, %s5492_s27  ;;  %v1374_v17 = vsel %vm748_vm4, %v1358_v20, %v7456_v23  ;;  %v5361_v23 = vld [vmem:[%s9924_s0 + $0x3b0] sm:$0xff]  ;;  %v5364_v20 = vld [vmem:[%s9924_s0 + $0x41] sm:$0xff] }
 0x28b   :  { %5111 = vmatprep.mubr.msk.f32.mxu1 %vm2600_vm9, %v2047_v48  ;;  %v1390_v18 = vsel %vm765_vm5, %v1374_v17, %v7505_v54  ;;  %v1936_v54 = vsel %vm697_vm1, %v5361_v23, %v7356_v24  ;;  %v4798_v24 = vld [vmem:[%s9924_s0 + $0x141] sm:$0xff] }
 0x28c   :  { %v7657_v58 = vpop.permute.xlu1 %1133  ;;  %v7659_v14 = vpop.permute.xlu0 %1071  ;;  %v1406_v21 = vsel %vm782_vm6, %v1390_v18, %v7545_v56  ;;  %v1952_v56 = vsel %vm714_vm2, %v1936_v54, %v7382_v49  ;;  %v5365_v17 = vld [vmem:[%s9924_s0 + $0x161] sm:$0xff]  ;;  %v4814_v18 = vld [vmem:[%s9924_s0 + $0x1d1] sm:$0xff] }
 0x28d   :  { %v1422_v40 = vsel %vm799_vm7, %v1406_v21, %v1228_v63  ;;  %v4813_v63 = vld [vmem:[%s9924_s0 + $0x1c1] sm:$0xff] }
 0x28e   :  { %1875 = vrot.lane.b32.xlu1 %v4797_v5, %s5497_s2  ;;  %1813 = vrot.lane.b32.xlu0 %v4782_v32, %s5496_s29  ;;  %v1968_v5 = vsel %vm731_vm3, %v1952_v56, %v7421_v4  ;;  %v7763_v54 = vld [vmem:[%s9924_s0 + $0x200] sm:$0xff] }
 0x28f   :  { %v1984_v49 = vsel %vm748_vm4, %v1968_v5, %v7485_v59  ;;  %v7718_v59 = vld [vmem:[%s9924_s0 + $0x1f0] sm:$0xff] }
 0x290   :  { %v7670_v36 = vpop.permute.xlu1 %1491  ;;  %v1292_v47 = vpop.permute.xlu0 %1291  ;;  %v2000_v2 = vsel %vm765_vm5, %v1984_v49, %v7526_v11  ;;  %v5368_v49 = vld [vmem:[%s9924_s0 + $0x1f1] sm:$0xff] }
 0x291   :  { %v1438_v44 = vsel %vm816_vm8, %v1422_v40, %v1292_v47  ;;  %v2016_v33 = vsel %vm782_vm6, %v2000_v2, %v7567_v8  ;;  %v5366_v47 = vld [vmem:[%s9924_s0 + $0xc1] sm:$0xff]  ;;  %v5369_v2 = vld [vmem:[%s9924_s0 + $0x171] sm:$0xff] }
 0x292   :  { %2215 = vrot.lane.b32.xlu1 %v5362_v0, %s5493_s12  ;;  %2169 = vrot.lane.b32.xlu0 %v7037_v6, %s5492_s27  ;;  %v2032_v9 = vsel %vm799_vm7, %v2016_v33, %v1838_v34  ;;  %v4783_v33 = vld [vmem:[%s9924_s0 + $0x1e0] sm:$0xff]  ;;  %v5386_v8 = vld [vmem:[%s9924_s0 + $0x70] sm:$0xff] }
 0x293   :  { %5088 = vmatmul.mubr.msk.f32.gmra.mrb[28].mxu0 %vm2600_vm9, %v1438_v44 }
 0x294   :  { %v7695_v32 = vpop.permute.xlu1 %1711  ;;  %v7697_v10 = vpop.permute.xlu0 %1665 }
 0x296   :  { %2419 = vrot.lane.b32.xlu1 %v4813_v63, %s5497_s2  ;;  %2357 = vrot.lane.b32.xlu0 %v4798_v24, %s5496_s29 }
 0x298   :  { %v7708_v4 = vpop.permute.xlu1 %2067  ;;  %v1902_v53 = vpop.permute.xlu0 %1901 }
 0x299   :  { %v2048_v7 = vsel %vm816_vm8, %v2032_v9, %v1902_v53  ;;  %v2467_v43 = vsel %vm697_vm1, %v7295_v37, %v7708_v4  ;;  %v4786_v37 = vld [vmem:[%s9924_s0 + $0x210] sm:$0xff] }
 0x29a   :  { %v7711_v48 = vpop.f32.mrb[18].mxu0  ;;  %1641 = vrot.lane.b32.xlu1 %v7037_v6, %s5493_s12  ;;  %1499 = vrot.lane.b32.xlu0 %v7718_v59, %s5491_s18 }
 0x29b   :  { %v7724_v11 = vpop.f32.mrb[19].mxu0  ;;  %5112 = vmatmul.mubr.msk.f32.vlgmr.msra.gmra.mrb[0].mxu1 %vm2600_vm9, %v2048_v7  ;;  %v1327_v7 = vsel %vm697_vm1, %v7191_v45, %v7431_v16 }
 0x29c   :  { %v1182_v1 = vpop.permute.xlu1 %1181  ;;  %v7729_v6 = vpop.permute.xlu0 %1135 }
 0x29e   :  { %1877 = vrot.lane.b32.xlu1 %v4798_v24, %s5497_s2  ;;  %1687 = vrot.lane.b32.xlu0 %v5362_v0, %s5494_s19  ;;  %v4767_v0 = vld [vmem:[%s9924_s0 + $0x150] sm:$0xff] }
 0x2a0   :  { %v7733_v62 = vpop.permute.xlu1 %1539  ;;  %v7735_v25 = vpop.permute.xlu0 %1493 }
 0x2a2   :  { %2217 = vrot.lane.b32.xlu1 %v5364_v20, %s5493_s12  ;;  %2075 = vrot.lane.b32.xlu0 %v5365_v17, %s5491_s18 }
 0x2a4   :  { %v1776_v21 = vpop.permute.xlu1 %1775  ;;  %v7748_v40 = vpop.permute.xlu0 %1713 }
 0x2a6   :  { %2421 = vrot.lane.b32.xlu1 %v4814_v18, %s5497_s2  ;;  %2263 = vrot.lane.b32.xlu0 %v5366_v47, %s5494_s19 }
 0x2a8   :  { %v7755_v44 = vpop.permute.xlu1 %2115  ;;  %v7757_v23 = vpop.permute.xlu0 %2069 }
 0x2aa   :  { %1547 = vrot.lane.b32.xlu1 %v5365_v17, %s5490_s17  ;;  %1501 = vrot.lane.b32.xlu0 %v7763_v54, %s5491_s18  ;;  %v1343_v17 = vsel %vm714_vm2, %v1327_v7, %v7495_v51 }
 0x2ab   :  { %v1359_v18 = vsel %vm731_vm3, %v1343_v17, %v7539_v31  ;;  %v5385_v17 = vld [vmem:[%s9924_s0 + $0x120] sm:$0xff] }
 0x2ac   :  { %v1230_v56 = vpop.permute.xlu1 %1229  ;;  %v7770_v63 = vpop.permute.xlu0 %1183  ;;  %v1375_v45 = vsel %vm748_vm4, %v1359_v18, %v7594_v38  ;;  %v4768_v38 = vld [vmem:[%s9924_s0 + $0x160] sm:$0xff]  ;;  %v1923_v31 = vsel %vm697_vm1, %v5385_v17, %v7670_v36 }
 0x2ad   :  { %v1391_v16 = vsel %vm765_vm5, %v1375_v45, %v7657_v58  ;;  %v4770_v36 = vld [vmem:[%s9924_s0 + $0x180] sm:$0xff] }
 0x2ae   :  { %1751 = vrot.lane.b32.xlu1 %v4767_v0, %s5495_s11  ;;  %1689 = vrot.lane.b32.xlu0 %v5364_v20, %s5494_s19  ;;  %v5370_v20 = vld [vmem:[%s9924_s0 + $0xd1] sm:$0xff]  ;;  %v1407_v51 = vsel %vm782_vm6, %v1391_v16, %v1182_v1  ;;  %v5372_v1 = vld [vmem:[%s9924_s0 + $0x3c0] sm:$0xff] }
 0x2af   :  { %v1423_v58 = vsel %vm799_vm7, %v1407_v51, %v1230_v56  ;;  %v1937_v16 = vsel %vm697_vm1, %v5372_v1, %v7466_v28 }
 0x2b0   :  { %v7774_v24 = vpop.permute.xlu1 %1587  ;;  %v7776_v5 = vpop.permute.xlu0 %1541  ;;  %v1953_v56 = vsel %vm714_vm2, %v1937_v16, %v7512_v30  ;;  %v5373_v30 = vld [vmem:[%s9924_s0 + $0x201] sm:$0xff]  ;;  %v1328_v16 = vsel %vm697_vm1, %v7244_v42, %v7497_v13 }
 0x2b1   :  { %v5374_v13 = vld [vmem:[%s9924_s0 + $0x60] sm:$0xff] }
 0x2b2   :  { %2123 = vrot.lane.b32.xlu1 %v5368_v49, %s5490_s17  ;;  %2077 = vrot.lane.b32.xlu0 %v5369_v2, %s5491_s18 }
 0x2b4   :  { %v1840_v9 = vpop.permute.xlu1 %1839  ;;  %v7789_v53 = vpop.permute.xlu0 %1777 }
 0x2b6   :  { %2311 = vrot.lane.b32.xlu1 %v4783_v33, %s5495_s11  ;;  %2265 = vrot.lane.b32.xlu0 %v5370_v20, %s5494_s19  ;;  %v5371_v20 = vld [vmem:[%s9924_s0 + $0x50] sm:$0xff] }
 0x2b8   :  { %v7803_v47 = vpop.permute.xlu1 %2163  ;;  %v7805_v0 = vpop.permute.xlu0 %2117 }
 0x2ba   :  { %v7811_v49 = vpop.f32.mrb[20].mxu0  ;;  %1595 = vrot.lane.b32.xlu1 %v5371_v20, %s5492_s27  ;;  %1549 = vrot.lane.b32.xlu0 %v5369_v2, %s5490_s17  ;;  %v1969_v20 = vsel %vm731_vm3, %v1953_v56, %v7558_v41 }
 0x2bb   :  { %v7821_v7 = vpop.f32.mrb[21].mxu0 }
 0x2bc   :  { %v1294_v18 = vpop.permute.xlu1 %1293  ;;  %v1232_v45 = vpop.permute.xlu0 %1231 }
 0x2bd   :  { %v1439_v2 = vsel %vm816_vm8, %v1423_v58, %v1294_v18  ;;  %v1985_v18 = vsel %vm748_vm4, %v1969_v20, %v7629_v46  ;;  %v4784_v46 = vld [vmem:[%s9924_s0 + $0x1f0] sm:$0xff] }
 0x2be   :  { %1815 = vrot.lane.b32.xlu1 %v4783_v33, %s5496_s29  ;;  %1753 = vrot.lane.b32.xlu0 %v4768_v38, %s5495_s11  ;;  %v2001_v28 = vsel %vm765_vm5, %v1985_v18, %v7695_v32  ;;  %v4799_v33 = vld [vmem:[%s9924_s0 + $0x151] sm:$0xff] }
 0x2bf   :  { %5090 = vmatprep.mubr.msk.f32.mxu0 %vm2600_vm9, %v1439_v2  ;;  %v2017_v41 = vsel %vm782_vm6, %v2001_v28, %v1776_v21  ;;  %v1344_v21 = vsel %vm714_vm2, %v1328_v16, %v7541_v39 }
 0x2c0   :  { %v7842_v51 = vpop.permute.xlu1 %1635  ;;  %v7844_v58 = vpop.permute.xlu0 %1589  ;;  %v2033_v32 = vsel %vm799_vm7, %v2017_v41, %v1840_v9  ;;  %v1360_v9 = vsel %vm731_vm3, %v1344_v21, %v7596_v27 }
 0x2c1   :  { %v1376_v18 = vsel %vm748_vm4, %v1360_v9, %v7659_v14 }
 0x2c2   :  { %2171 = vrot.lane.b32.xlu1 %v7078_v52, %s5492_s27  ;;  %2125 = vrot.lane.b32.xlu0 %v5373_v30, %s5490_s17  ;;  %v1392_v42 = vsel %vm765_vm5, %v1376_v18, %v7729_v6 }
 0x2c3   :  { %v1408_v39 = vsel %vm782_vm6, %v1392_v42, %v7770_v63 }
 0x2c4   :  { %v1904_v38 = vpop.permute.xlu1 %1903  ;;  %v1842_v2 = vpop.permute.xlu0 %1841  ;;  %v1424_v27 = vsel %vm799_vm7, %v1408_v39, %v1232_v45 }
 0x2c5   :  { %v2049_v1 = vsel %vm816_vm8, %v2033_v32, %v1904_v38 }
 0x2c6   :  { %2359 = vrot.lane.b32.xlu1 %v4799_v33, %s5496_s29  ;;  %2313 = vrot.lane.b32.xlu0 %v4784_v46, %s5495_s11 }
 0x2c7   :  { %5114 = vmatprep.mubr.msk.f32.mxu1 %vm2600_vm9, %v2049_v1 }
 0x2c8   :  { %v7875_v56 = vpop.permute.xlu1 %2211  ;;  %v7877_v20 = vpop.permute.xlu0 %2165 }
 0x2ca   :  { %1643 = vrot.lane.b32.xlu1 %v7078_v52, %s5493_s12  ;;  %1597 = vrot.lane.b32.xlu0 %v5374_v13, %s5492_s27  ;;  %v5375_v52 = vld [vmem:[%s9924_s0 + $0x3d0] sm:$0xff] }
 0x2cb   :  { %v1938_v6 = vsel %vm697_vm1, %v5375_v52, %v7514_v55  ;;  %v5379_v52 = vld [vmem:[%s9924_s0 + $0x181] sm:$0xff] }
 0x2cc   :  { %v7892_v28 = vpop.permute.xlu1 %1495  ;;  %v1296_v14 = vpop.permute.xlu0 %1295  ;;  %v1954_v63 = vsel %vm714_vm2, %v1938_v6, %v7560_v19  ;;  %v4816_v6 = vld [vmem:[%s9924_s0 + $0x1f1] sm:$0xff] }
 0x2cd   :  { %v1440_v30 = vsel %vm816_vm8, %v1424_v27, %v1296_v14  ;;  %v1970_v45 = vsel %vm731_vm3, %v1954_v63, %v7631_v12  ;;  %v4815_v12 = vld [vmem:[%s9924_s0 + $0x1e1] sm:$0xff] }
 0x2ce   :  { %1879 = vrot.lane.b32.xlu1 %v4799_v33, %s5497_s2  ;;  %1817 = vrot.lane.b32.xlu0 %v4784_v46, %s5496_s29  ;;  %v1986_v38 = vsel %vm748_vm4, %v1970_v45, %v7697_v10  ;;  %v5376_v33 = vld [vmem:[%s9924_s0 + $0x51] sm:$0xff]  ;;  %v4800_v10 = vld [vmem:[%s9924_s0 + $0x161] sm:$0xff] }
 0x2cf   :  { %5091 = vmatmul.mubr.msk.f32.gmra.mrb[30].mxu0 %vm2600_vm9, %v1440_v30  ;;  %v2002_v55 = vsel %vm765_vm5, %v1986_v38, %v7748_v40  ;;  %v5378_v30 = vld [vmem:[%s9924_s0 + $0x61] sm:$0xff] }
 0x2d0   :  { %v7907_v41 = vpop.permute.xlu1 %1683  ;;  %v7909_v32 = vpop.permute.xlu0 %1637  ;;  %v2018_v19 = vsel %vm782_vm6, %v2002_v55, %v7789_v53  ;;  %v5380_v38 = vld [vmem:[%s9924_s0 + $0xe1] sm:$0xff] }
 0x2d1   :  { %v2034_v40 = vsel %vm799_vm7, %v2018_v19, %v1842_v2  ;;  %v7947_v2 = vld [vmem:[%s9924_s0 + $0x210] sm:$0xff]  ;;  %v7993_v19 = vld [vmem:[%s9924_s0 + $0x220] sm:$0xff] }
 0x2d2   :  { %2219 = vrot.lane.b32.xlu1 %v5376_v33, %s5493_s12  ;;  %2173 = vrot.lane.b32.xlu0 %v7144_v22, %s5492_s27 }
 0x2d4   :  { %v7930_v46 = vpop.permute.xlu1 %2071  ;;  %v1906_v1 = vpop.permute.xlu0 %1905 }
 0x2d5   :  { %v2050_v16 = vsel %vm816_vm8, %v2034_v40, %v1906_v1 }
 0x2d6   :  { %2423 = vrot.lane.b32.xlu1 %v4815_v12, %s5497_s2  ;;  %2361 = vrot.lane.b32.xlu0 %v4800_v10, %s5496_s29  ;;  %v4769_v12 = vld [vmem:[%s9924_s0 + $0x170] sm:$0xff] }
 0x2d7   :  { %5115 = vmatmul.mubr.msk.f32.gmra.mrb[2].mxu1 %vm2600_vm9, %v2050_v16 }
 0x2d8   :  { %v7936_v53 = vpop.permute.xlu1 %2259  ;;  %v7938_v21 = vpop.permute.xlu0 %2213 }
 0x2da   :  { %v7940_v9 = vpop.f32.mrb[22].mxu0  ;;  %1645 = vrot.lane.b32.xlu1 %v7144_v22, %s5493_s12  ;;  %1503 = vrot.lane.b32.xlu0 %v7947_v2, %s5491_s18 }
 0x2db   :  { %10074 = vst [vmem:[#allocation23_spill] sm:$0xff] %v7940_v9  ;;  %v7953_v42 = vpop.f32.mrb[23].mxu0 }
 0x2dc   :  { %10075 = vst [vmem:[#allocation21_spill] sm:$0xff] %v7953_v42  ;;  %v7957_v39 = vpop.permute.xlu1 %1543  ;;  %v7959_v27 = vpop.permute.xlu0 %1497 }
 0x2de   :  { %1881 = vrot.lane.b32.xlu1 %v4800_v10, %s5497_s2  ;;  %1691 = vrot.lane.b32.xlu0 %v5376_v33, %s5494_s19 }
 0x2e0   :  { %v1748_v22 = vpop.permute.xlu1 %1747  ;;  %v7963_v14 = vpop.permute.xlu0 %1685 }
 0x2e2   :  { %2221 = vrot.lane.b32.xlu1 %v5378_v30, %s5493_s12  ;;  %2079 = vrot.lane.b32.xlu0 %v5379_v52, %s5491_s18 }
 0x2e4   :  { %v7976_v63 = vpop.permute.xlu1 %2119  ;;  %v7978_v45 = vpop.permute.xlu0 %2073 }
 0x2e6   :  { %2425 = vrot.lane.b32.xlu1 %v4816_v6, %s5497_s2  ;;  %2267 = vrot.lane.b32.xlu0 %v5380_v38, %s5494_s19  ;;  %v5383_v6 = vld [vmem:[%s9924_s0 + $0x191] sm:$0xff]  ;;  %v4785_v38 = vld [vmem:[%s9924_s0 + $0x200] sm:$0xff] }
 0x2e8   :  { %v7985_v55 = vpop.permute.xlu1 %2307  ;;  %v7987_v33 = vpop.permute.xlu0 %2261 }
 0x2ea   :  { %1551 = vrot.lane.b32.xlu1 %v5379_v52, %s5490_s17  ;;  %1505 = vrot.lane.b32.xlu0 %v7993_v19, %s5491_s18  ;;  %v5382_v52 = vld [vmem:[%s9924_s0 + $0x211] sm:$0xff] }
 0x2ec   :  { %v8000_v10 = vpop.permute.xlu1 %1591  ;;  %v8002_v40 = vpop.permute.xlu0 %1545 }
 0x2ee   :  { %1755 = vrot.lane.b32.xlu1 %v4769_v12, %s5495_s11  ;;  %1693 = vrot.lane.b32.xlu0 %v5378_v30, %s5494_s19 }
 0x2f0   :  { %v1812_v1 = vpop.permute.xlu1 %1811  ;;  %v8006_v16 = vpop.permute.xlu0 %1749 }
 0x2f2   :  { %2127 = vrot.lane.b32.xlu1 %v5382_v52, %s5490_s17  ;;  %2081 = vrot.lane.b32.xlu0 %v5383_v6, %s5491_s18  ;;  %v5384_v52 = vld [vmem:[%s9924_s0 + $0xf1] sm:$0xff] }
 0x2f4   :  { %v8019_v30 = vpop.permute.xlu1 %2167  ;;  %v8021_v12 = vpop.permute.xlu0 %2121 }
 0x2f6   :  { %2315 = vrot.lane.b32.xlu1 %v4785_v38, %s5495_s11  ;;  %2269 = vrot.lane.b32.xlu0 %v5384_v52, %s5494_s19  ;;  %v1939_v52 = vsel %vm714_vm2, %v1923_v31, %v7733_v62 }
 0x2f7   :  { %v1955_v17 = vsel %vm731_vm3, %v1939_v52, %v7774_v24 }
 0x2f8   :  { %v2356_v13 = vpop.permute.xlu1 %2355  ;;  %v8028_v18 = vpop.permute.xlu0 %2309  ;;  %v1971_v62 = vsel %vm748_vm4, %v1955_v17, %v7842_v51  ;;  %v10078_v51 = vld [vmem:[#allocation11_spill] sm:$0xff] }
 0x2f9   :  { %v1987_v31 = vsel %vm765_vm5, %v1971_v62, %v7907_v41  ;;  %v5387_v41 = vld [vmem:[%s9924_s0 + $0x221] sm:$0xff] }
 0x2fa   :  { %v8035_v34 = vpop.f32.mrb[24].mxu0  ;;  %1599 = vrot.lane.b32.xlu1 %v5386_v8, %s5492_s27  ;;  %1553 = vrot.lane.b32.xlu0 %v5383_v6, %s5490_s17  ;;  %v2003_v42 = vsel %vm782_vm6, %v1987_v31, %v1748_v22  ;;  %v4801_v22 = vld [vmem:[%s9924_s0 + $0x171] sm:$0xff] }
 0x2fb   :  { %10076 = vst [vmem:[#allocation25_spill] sm:$0xff] %v8035_v34  ;;  %v8046_v3 = vpop.f32.mrb[25].mxu0  ;;  %v2019_v24 = vsel %vm799_vm7, %v2003_v42, %v1812_v1  ;;  %v2483_v42 = vsel %vm714_vm2, %v2467_v43, %v7755_v44  ;;  %v10084_v34 = vld [vmem:[#allocation17_spill] sm:$0xff] }
 0x2fc   :  { %10077 = vst [vmem:[#allocation24_spill] sm:$0xff] %v8046_v3  ;;  %v8055_v9 = vpop.permute.xlu1 %1639  ;;  %v8057_v6 = vpop.permute.xlu0 %1593  ;;  %v2499_v4 = vsel %vm731_vm3, %v2483_v42, %v7803_v47  ;;  %v2469_v57 = vsel %vm697_vm1, %v10084_v34, %v7930_v46  ;;  %v4803_v34 = vld [vmem:[%s9924_s0 + $0x191] sm:$0xff] }
 0x2fd   :  { %v2515_v43 = vsel %vm748_vm4, %v2499_v4, %v7875_v56  ;;  %v5388_v56 = vld [vmem:[%s9924_s0 + $0x130] sm:$0xff] }
 0x2fe   :  { %1819 = vrot.lane.b32.xlu1 %v4785_v38, %s5496_s29  ;;  %1757 = vrot.lane.b32.xlu0 %v4770_v36, %s5495_s11  ;;  %v4788_v46 = vld [vmem:[%s9924_s0 + $0x230] sm:$0xff] }
 0x300   :  { %v1876_v52 = vpop.permute.xlu1 %1875  ;;  %v1814_v8 = vpop.permute.xlu0 %1813 }
 0x301   :  { %v2035_v3 = vsel %vm816_vm8, %v2019_v24, %v1876_v52 }
 0x302   :  { %2175 = vrot.lane.b32.xlu1 %v10078_v51, %s5492_s27  ;;  %2129 = vrot.lane.b32.xlu0 %v5387_v41, %s5490_s17 }
 0x303   :  { %5093 = vmatprep.mubr.msk.f32.mxu0 %vm2600_vm9, %v2035_v3  ;;  %v2531_v3 = vsel %vm765_vm5, %v2515_v43, %v7936_v53  ;;  %v1924_v53 = vsel %vm697_vm1, %v5388_v56, %v7735_v25  ;;  %v10079_v43 = vld [vmem:[#allocation13_spill] sm:$0xff] }
 0x304   :  { %v8088_v1 = vpop.permute.xlu1 %2215  ;;  %v8090_v38 = vpop.permute.xlu0 %2169  ;;  %v2547_v44 = vsel %vm782_vm6, %v2531_v3, %v7985_v55  ;;  %v5389_v55 = vld [vmem:[%s9924_s0 + $0x80] sm:$0xff] }
 0x305   :  { %v2563_v36 = vsel %vm799_vm7, %v2547_v44, %v2356_v13  ;;  %v1940_v13 = vsel %vm714_vm2, %v1924_v53, %v7776_v5 }
 0x306   :  { %2363 = vrot.lane.b32.xlu1 %v4801_v22, %s5496_s29  ;;  %2317 = vrot.lane.b32.xlu0 %v4786_v37, %s5495_s11  ;;  %v1956_v31 = vsel %vm731_vm3, %v1940_v13, %v7844_v58  ;;  %v5393_v13 = vld [vmem:[%s9924_s0 + $0x81] sm:$0xff] }
 0x307   :  { %v1972_v52 = vsel %vm748_vm4, %v1956_v31, %v7909_v32  ;;  %v2468_v32 = vsel %vm697_vm1, %v10079_v43, %v7757_v23  ;;  %v4817_v23 = vld [vmem:[%s9924_s0 + $0x201] sm:$0xff] }
 0x308   :  { %v2420_v47 = vpop.permute.xlu1 %2419  ;;  %v2358_v17 = vpop.permute.xlu0 %2357  ;;  %v5394_v31 = vld [vmem:[%s9924_s0 + $0x361] sm:$0xff] }
 0x309   :  { %v2579_v62 = vsel %vm816_vm8, %v2563_v36, %v2420_v47 }
 0x30a   :  { %1647 = vrot.lane.b32.xlu1 %v10078_v51, %s5493_s12  ;;  %1601 = vrot.lane.b32.xlu0 %v5389_v55, %s5492_s27  ;;  %v1988_v51 = vsel %vm765_vm5, %v1972_v52, %v7963_v14  ;;  %v5390_v14 = vld [vmem:[%s9924_s0 + $0x71] sm:$0xff] }
 0x30b   :  { %5117 = vmatprep.mubr.msk.f32.mxu1 %vm2600_vm9, %v2579_v62  ;;  %v2004_v5 = vsel %vm782_vm6, %v1988_v51, %v8006_v16  ;;  %v5391_v16 = vld [vmem:[%s9924_s0 + $0x110] sm:$0xff] }
 0x30c   :  { %v8118_v24 = vpop.permute.xlu1 %1641  ;;  %v8120_v25 = vpop.permute.xlu0 %1499  ;;  %v2020_v41 = vsel %vm799_vm7, %v2004_v5, %v1814_v8  ;;  %v2484_v8 = vsel %vm714_vm2, %v2468_v32, %v7805_v0  ;;  %v4818_v52 = vld [vmem:[%s9924_s0 + $0x211] sm:$0xff]  ;;  %v8219_v32 = vld [vmem:[%s9924_s0 + $0x400] sm:$0xff] }
 0x30e   :  { %1883 = vrot.lane.b32.xlu1 %v4801_v22, %s5497_s2  ;;  %1821 = vrot.lane.b32.xlu0 %v4786_v37, %s5496_s29  ;;  %v4802_v22 = vld [vmem:[%s9924_s0 + $0x181] sm:$0xff]  ;;  %v2500_v37 = vsel %vm731_vm3, %v2484_v8, %v7877_v20 }
 0x30f   :  { %v2516_v0 = vsel %vm748_vm4, %v2500_v37, %v7938_v21  ;;  %v8176_v21 = vld [vmem:[%s9924_s0 + $0x3f0] sm:$0xff]  ;;  %v5400_v37 = vld [vmem:[%s9924_s0 + $0x140] sm:$0xff] }
 0x310   :  { %v1878_v58 = vpop.permute.xlu1 %1877  ;;  %v8131_v42 = vpop.permute.xlu0 %1687  ;;  %v2532_v36 = vsel %vm765_vm5, %v2516_v0, %v7987_v33 }
 0x311   :  { %v2036_v4 = vsel %vm816_vm8, %v2020_v41, %v1878_v58  ;;  %v2548_v47 = vsel %vm782_vm6, %v2532_v36, %v8028_v18  ;;  %v5395_v41 = vld [vmem:[%s9924_s0 + $0x101] sm:$0xff] }
 0x312   :  { %2223 = vrot.lane.b32.xlu1 %v5390_v14, %s5493_s12  ;;  %2177 = vrot.lane.b32.xlu0 %v5391_v16, %s5492_s27  ;;  %v2564_v62 = vsel %vm799_vm7, %v2548_v47, %v2358_v17 }
 0x313   :  { %5094 = vmatmul.mubr.msk.f32.gmra.mrb[32].mxu0 %vm2600_vm9, %v2036_v4 }
 0x314   :  { %v8156_v3 = vpop.permute.xlu1 %2217  ;;  %v8158_v44 = vpop.permute.xlu0 %2075 }
 0x316   :  { %2427 = vrot.lane.b32.xlu1 %v4817_v23, %s5497_s2  ;;  %2365 = vrot.lane.b32.xlu0 %v4802_v22, %s5496_s29  ;;  %v4771_v23 = vld [vmem:[%s9924_s0 + $0x190] sm:$0xff] }
 0x318   :  { %v2422_v20 = vpop.permute.xlu1 %2421  ;;  %v8169_v56 = vpop.permute.xlu0 %2263 }
 0x319   :  { %v2580_v53 = vsel %vm816_vm8, %v2564_v62, %v2422_v20  ;;  %v5397_v20 = vld [vmem:[%s9924_s0 + $0x3f1] sm:$0xff] }
 0x31a   :  { %1649 = vrot.lane.b32.xlu1 %v5391_v16, %s5493_s12  ;;  %1507 = vrot.lane.b32.xlu0 %v8176_v21, %s5491_s18  ;;  %v1925_v16 = vsel %vm697_vm1, %v5400_v37, %v7892_v28 }
 0x31b   :  { %5118 = vmatmul.mubr.msk.f32.gmra.mrb[4].mxu1 %vm2600_vm9, %v2580_v53  ;;  %v5398_v53 = vld [vmem:[%s9924_s0 + $0x371] sm:$0xff] }
 0x31c   :  { %v8181_v18 = vpop.permute.xlu1 %1547  ;;  %v8183_v33 = vpop.permute.xlu0 %1501 }
 0x31e   :  { %1885 = vrot.lane.b32.xlu1 %v4802_v22, %s5497_s2  ;;  %1695 = vrot.lane.b32.xlu0 %v5390_v14, %s5494_s19  ;;  %v4772_v22 = vld [vmem:[%s9924_s0 + $0x1a0] sm:$0xff] }
 0x320   :  { %v1752_v17 = vpop.permute.xlu1 %1751  ;;  %v8187_v55 = vpop.permute.xlu0 %1689 }
 0x322   :  { %2225 = vrot.lane.b32.xlu1 %v5393_v13, %s5493_s12  ;;  %2083 = vrot.lane.b32.xlu0 %v5394_v31, %s5491_s18 }
 0x324   :  { %v8200_v51 = vpop.permute.xlu1 %2123  ;;  %v8202_v5 = vpop.permute.xlu0 %2077 }
 0x326   :  { %2429 = vrot.lane.b32.xlu1 %v4818_v52, %s5497_s2  ;;  %2271 = vrot.lane.b32.xlu0 %v5395_v41, %s5494_s19  ;;  %v5399_v41 = vld [vmem:[%s9924_s0 + $0x111] sm:$0xff] }
 0x328   :  { %v8209_v58 = vpop.permute.xlu1 %2311  ;;  %v8211_v4 = vpop.permute.xlu0 %2265 }
 0x32a   :  { %v8213_v43 = vpop.f32.mrb[26].mxu0  ;;  %1555 = vrot.lane.b32.xlu1 %v5394_v31, %s5490_s17  ;;  %1509 = vrot.lane.b32.xlu0 %v8219_v32, %s5491_s18  ;;  %v4787_v31 = vld [vmem:[%s9924_s0 + $0x220] sm:$0xff] }
 0x32b   :  { %10080 = vst [vmem:[#allocation26_spill] sm:$0xff] %v8213_v43  ;;  %v8225_v8 = vpop.f32.mrb[27].mxu0 }
 0x32c   :  { %10082 = vst [vmem:[#allocation27_spill] sm:$0xff] %v8225_v8  ;;  %v8232_v0 = vpop.permute.xlu1 %1595  ;;  %v8234_v36 = vpop.permute.xlu0 %1549  ;;  %v5401_v8 = vld [vmem:[%s9924_s0 + $0x250] sm:$0xff] }
 0x32e   :  { %1759 = vrot.lane.b32.xlu1 %v4771_v23, %s5495_s11  ;;  %1697 = vrot.lane.b32.xlu0 %v5393_v13, %s5494_s19 }
 0x330   :  { %v1816_v47 = vpop.permute.xlu1 %1815  ;;  %v8238_v62 = vpop.permute.xlu0 %1753 }
 0x332   :  { %2131 = vrot.lane.b32.xlu1 %v5397_v20, %s5490_s17  ;;  %2085 = vrot.lane.b32.xlu0 %v5398_v53, %s5491_s18 }
 0x334   :  { %v8251_v13 = vpop.permute.xlu1 %2171  ;;  %v8253_v52 = vpop.permute.xlu0 %2125 }
 0x336   :  { %2319 = vrot.lane.b32.xlu1 %v4787_v31, %s5495_s11  ;;  %2273 = vrot.lane.b32.xlu0 %v5399_v41, %s5494_s19  ;;  %v1941_v41 = vsel %vm714_vm2, %v1925_v16, %v7957_v39 }
 0x337   :  { %v1957_v43 = vsel %vm731_vm3, %v1941_v41, %v8000_v10 }
 0x338   :  { %v2360_v23 = vpop.permute.xlu1 %2359  ;;  %v8260_v20 = vpop.permute.xlu0 %2313  ;;  %v1973_v37 = vsel %vm748_vm4, %v1957_v43, %v8055_v9  ;;  %v5402_v9 = vld [vmem:[%s9924_s0 + $0x2e0] sm:$0xff] }
 0x33a   :  { %1603 = vrot.lane.b32.xlu1 %v5401_v8, %s5492_s27  ;;  %1557 = vrot.lane.b32.xlu0 %v5398_v53, %s5490_s17  ;;  %v1989_v8 = vsel %vm765_vm5, %v1973_v37, %v8131_v42  ;;  %v5403_v42 = vld [vmem:[%s9924_s0 + $0x401] sm:$0xff] }
 0x33b   :  { %v2005_v39 = vsel %vm782_vm6, %v1989_v8, %v1752_v17  ;;  %v2485_v17 = vsel %vm714_vm2, %v2469_v57, %v7976_v63 }
 0x33c   :  { %v8279_v14 = vpop.permute.xlu1 %1643  ;;  %v8281_v28 = vpop.permute.xlu0 %1597  ;;  %v2021_v16 = vsel %vm799_vm7, %v2005_v39, %v1816_v47  ;;  %v2501_v43 = vsel %vm731_vm3, %v2485_v17, %v8019_v30 }
 0x33d   :  { %v2517_v57 = vsel %vm748_vm4, %v2501_v43, %v8088_v1  ;;  %v5404_v1 = vld [vmem:[%s9924_s0 + $0x150] sm:$0xff] }
 0x33e   :  { %1823 = vrot.lane.b32.xlu1 %v4787_v31, %s5496_s29  ;;  %1761 = vrot.lane.b32.xlu0 %v4772_v22, %s5495_s11  ;;  %v2533_v63 = vsel %vm765_vm5, %v2517_v57, %v8169_v56  ;;  %v1926_v56 = vsel %vm697_vm1, %v5404_v1, %v7959_v27  ;;  %v10085_v57 = vld [vmem:[#allocation19_spill] sm:$0xff] }
 0x33f   :  { %v2549_v31 = vsel %vm782_vm6, %v2533_v63, %v8209_v58  ;;  %v1942_v58 = vsel %vm714_vm2, %v1926_v56, %v8002_v40 }
 0x340   :  { %v1880_v53 = vpop.permute.xlu1 %1879  ;;  %v1818_v10 = vpop.permute.xlu0 %1817  ;;  %v2565_v37 = vsel %vm799_vm7, %v2549_v31, %v2360_v23  ;;  %v1958_v23 = vsel %vm731_vm3, %v1942_v58, %v8057_v6  ;;  %v5409_v58 = vld [vmem:[%s9924_s0 + $0x261] sm:$0xff] }
 0x341   :  { %v2037_v41 = vsel %vm816_vm8, %v2021_v16, %v1880_v53  ;;  %v5405_v16 = vld [vmem:[%s9924_s0 + $0x260] sm:$0xff]  ;;  %v1974_v27 = vsel %vm748_vm4, %v1958_v23, %v8118_v24  ;;  %v2470_v24 = vsel %vm697_vm1, %v10085_v57, %v7978_v45 }
 0x342   :  { %2179 = vrot.lane.b32.xlu1 %v5402_v9, %s5492_s27  ;;  %2133 = vrot.lane.b32.xlu0 %v5403_v42, %s5490_s17  ;;  %v4819_v45 = vld [vmem:[%s9924_s0 + $0x221] sm:$0xff] }
 0x343   :  { %5096 = vmatprep.mubr.msk.f32.mxu0 %vm2600_vm9, %v2037_v41  ;;  %v5410_v23 = vld [vmem:[%s9924_s0 + $0x381] sm:$0xff] }
 0x344   :  { %v8314_v22 = vpop.permute.xlu1 %2219  ;;  %v8316_v47 = vpop.permute.xlu0 %2173 }
 0x346   :  { %2367 = vrot.lane.b32.xlu1 %v4803_v34, %s5496_s29  ;;  %2321 = vrot.lane.b32.xlu0 %v4788_v46, %s5495_s11 }
 0x348   :  { %v2424_v30 = vpop.permute.xlu1 %2423  ;;  %v2362_v8 = vpop.permute.xlu0 %2361 }
 0x349   :  { %v2581_v39 = vsel %vm816_vm8, %v2565_v37, %v2424_v30 }
 0x34a   :  { %1651 = vrot.lane.b32.xlu1 %v5402_v9, %s5493_s12  ;;  %1605 = vrot.lane.b32.xlu0 %v5405_v16, %s5492_s27  ;;  %v1990_v9 = vsel %vm765_vm5, %v1974_v27, %v8187_v55  ;;  %v5406_v55 = vld [vmem:[%s9924_s0 + $0x251] sm:$0xff] }
 0x34b   :  { %5120 = vmatprep.mubr.msk.f32.mxu1 %vm2600_vm9, %v2581_v39  ;;  %v2006_v40 = vsel %vm782_vm6, %v1990_v9, %v8238_v62  ;;  %v5407_v62 = vld [vmem:[%s9924_s0 + $0x2f0] sm:$0xff] }
 0x34c   :  { %v8343_v53 = vpop.permute.xlu1 %1645  ;;  %v8345_v41 = vpop.permute.xlu0 %1503  ;;  %v2022_v42 = vsel %vm799_vm7, %v2006_v40, %v1818_v10  ;;  %v2486_v10 = vsel %vm714_vm2, %v2470_v24, %v8021_v12  ;;  %v4820_v27 = vld [vmem:[%s9924_s0 + $0x231] sm:$0xff] }
 0x34e   :  { %1887 = vrot.lane.b32.xlu1 %v4803_v34, %s5497_s2  ;;  %1825 = vrot.lane.b32.xlu0 %v4788_v46, %s5496_s29  ;;  %v4804_v34 = vld [vmem:[%s9924_s0 + $0x1a1] sm:$0xff]  ;;  %v2502_v46 = vsel %vm731_vm3, %v2486_v10, %v8090_v38 }
 0x34f   :  { %v2518_v12 = vsel %vm748_vm4, %v2502_v46, %v8156_v3  ;;  %v8401_v3 = vld [vmem:[%s9924_s0 + $0x410] sm:$0xff] }
 0x350   :  { %v1882_v6 = vpop.permute.xlu1 %1881  ;;  %v8356_v17 = vpop.permute.xlu0 %1691  ;;  %v2534_v37 = vsel %vm765_vm5, %v2518_v12, %v8211_v4  ;;  %v4773_v46 = vld [vmem:[%s9924_s0 + $0x370] sm:$0xff] }
 0x351   :  { %v2038_v43 = vsel %vm816_vm8, %v2022_v42, %v1882_v6  ;;  %v2550_v30 = vsel %vm782_vm6, %v2534_v37, %v8260_v20  ;;  %v5411_v6 = vld [vmem:[%s9924_s0 + $0x2e1] sm:$0xff] }
 0x352   :  { %2227 = vrot.lane.b32.xlu1 %v5406_v55, %s5493_s12  ;;  %2181 = vrot.lane.b32.xlu0 %v5407_v62, %s5492_s27  ;;  %v2566_v39 = vsel %vm799_vm7, %v2550_v30, %v2362_v8 }
 0x353   :  { %5097 = vmatmul.mubr.msk.f32.gmra.mrb[34].mxu0 %vm2600_vm9, %v2038_v43 }
 0x354   :  { %v8381_v63 = vpop.permute.xlu1 %2221  ;;  %v8383_v31 = vpop.permute.xlu0 %2079 }
 0x356   :  { %2431 = vrot.lane.b32.xlu1 %v4819_v45, %s5497_s2  ;;  %2369 = vrot.lane.b32.xlu0 %v4804_v34, %s5496_s29 }
 0x358   :  { %v2426_v38 = vpop.permute.xlu1 %2425  ;;  %v8394_v1 = vpop.permute.xlu0 %2267 }
 0x359   :  { %v2582_v56 = vsel %vm816_vm8, %v2566_v39, %v2426_v38 }
 0x35a   :  { %1653 = vrot.lane.b32.xlu1 %v5407_v62, %s5493_s12  ;;  %1511 = vrot.lane.b32.xlu0 %v8401_v3, %s5491_s18  ;;  %v9996_v62 = vmov 0.0  }
 0x35b   :  { %5121 = vmatmul.mubr.msk.f32.gmra.mrb[6].mxu1 %vm2600_vm9, %v2582_v56  ;;  %3269 = vst.msk [vmem:[#allocation2] sm:$0xff] %vm714_vm2, %v9996_v62  ;;  %3272 = vst.msk [vmem:[#allocation2 + $0xa0] sm:$0xff] %vm714_vm2, %v9996_v62 }
 0x35c   :  { %v8406_v4 = vpop.permute.xlu1 %1551  ;;  %v8408_v20 = vpop.permute.xlu0 %1505  ;;  %3275 = vst.msk [vmem:[#allocation2 + $0x90] sm:$0xff] %vm714_vm2, %v9996_v62  ;;  %3277 = vst.msk [vmem:[#allocation2 + $0x130] sm:$0xff] %vm714_vm2, %v9996_v62 }
 0x35d   :  { %3281 = vst.msk [vmem:[#allocation2 + $0x10] sm:$0x1] %vm3279_vm10, %v9996_v62  ;;  %3282 = vst.msk [vmem:[#allocation2 + $0x20] sm:$0x1] %vm3279_vm10, %v9996_v62 }
 0x35e   :  { %1889 = vrot.lane.b32.xlu1 %v4804_v34, %s5497_s2  ;;  %1699 = vrot.lane.b32.xlu0 %v5406_v55, %s5494_s19  ;;  %v8452_v34 = vld [vmem:[%s9924_s0 + $0x420] sm:$0xff]  ;;  %3283 = vst.msk [vmem:[#allocation2 + $0x30] sm:$0x1] %vm3279_vm10, %v9996_v62  ;;  %3284 = vst.msk [vmem:[#allocation2 + $0x40] sm:$0x1] %vm3279_vm10, %v9996_v62 }
 0x35f   :  { %3285 = vst.msk [vmem:[#allocation2 + $0x50] sm:$0x1] %vm3279_vm10, %v9996_v62  ;;  %3286 = vst.msk [vmem:[#allocation2 + $0x60] sm:$0x1] %vm3279_vm10, %v9996_v62 }
 0x360   :  { %v8412_v8 = vpop.permute.xlu1 %1755  ;;  %v8414_v16 = vpop.permute.xlu0 %1693  ;;  %3287 = vst.msk [vmem:[#allocation2 + $0x70] sm:$0x1] %vm3279_vm10, %v9996_v62  ;;  %3288 = vst.msk [vmem:[#allocation2 + $0x80] sm:$0x1] %vm3279_vm10, %v9996_v62 }
 0x361   :  { %3291 = vst.msk [vmem:[#allocation2 + $0xb0] sm:$0x1] %vm3279_vm10, %v9996_v62  ;;  %3292 = vst.msk [vmem:[#allocation2 + $0xc0] sm:$0x1] %vm3279_vm10, %v9996_v62 }
 0x362   :  { %2229 = vrot.lane.b32.xlu1 %v5409_v58, %s5493_s12  ;;  %2087 = vrot.lane.b32.xlu0 %v5410_v23, %s5491_s18  ;;  %3293 = vst.msk [vmem:[#allocation2 + $0xd0] sm:$0x1] %vm3279_vm10, %v9996_v62  ;;  %3294 = vst.msk [vmem:[#allocation2 + $0xe0] sm:$0x1] %vm3279_vm10, %v9996_v62 }
 0x363   :  { %3295 = vst.msk [vmem:[#allocation2 + $0xf0] sm:$0x1] %vm3279_vm10, %v9996_v62  ;;  %3296 = vst.msk [vmem:[#allocation2 + $0x100] sm:$0x1] %vm3279_vm10, %v9996_v62 }
 0x364   :  { %v8427_v9 = vpop.permute.xlu1 %2127  ;;  %v8429_v40 = vpop.permute.xlu0 %2081  ;;  %3297 = vst.msk [vmem:[#allocation2 + $0x110] sm:$0x1] %vm3279_vm10, %v9996_v62  ;;  %3298 = vst.msk [vmem:[#allocation2 + $0x120] sm:$0x1] %vm3279_vm10, %v9996_v62 }
 0x365   :  { %3301 = vst.msk [vmem:[#allocation2 + $0x19] sm:$0x1] %vm3279_vm10, %v9996_v62  ;;  %3302 = vst.msk [vmem:[#allocation2 + $0x29] sm:$0x1] %vm3279_vm10, %v9996_v62 }
 0x366   :  { %v8431_v42 = vpop.f32.mrb[28].mxu0  ;;  %2433 = vrot.lane.b32.xlu1 %v4820_v27, %s5497_s2  ;;  %2275 = vrot.lane.b32.xlu0 %v5411_v6, %s5494_s19  ;;  %v5414_v27 = vld [vmem:[%s9924_s0 + $0x391] sm:$0xff]  ;;  %3303 = vst.msk [vmem:[#allocation2 + $0x39] sm:$0x1] %vm3279_vm10, %v9996_v62  ;;  %3304 = vst.msk [vmem:[#allocation2 + $0x49] sm:$0x1] %vm3279_vm10, %v9996_v62 }
 0x367   :  { %10086 = vst [vmem:[#allocation29_spill] sm:$0xff] %v8431_v42  ;;  %v8440_v24 = vpop.f32.mrb[29].mxu0  ;;  %3305 = vst.msk [vmem:[#allocation2 + $0x59] sm:$0x1] %vm3279_vm10, %v9996_v62  ;;  %v5417_v42 = vld [vmem:[%s9924_s0 + $0x270] sm:$0xff] }
 0x368   :  { %10088 = vst [vmem:[#allocation22_spill] sm:$0xff] %v8440_v24  ;;  %v8444_v10 = vpop.permute.xlu1 %2315  ;;  %v8446_v45 = vpop.permute.xlu0 %2269  ;;  %3306 = vst.msk [vmem:[#allocation2 + $0x69] sm:$0x1] %vm3279_vm10, %v9996_v62  ;;  %v5416_v24 = vld [vmem:[%s9924_s0 + $0x160] sm:$0xff] }
 0x369   :  { %3307 = vst.msk [vmem:[#allocation2 + $0x79] sm:$0x1] %vm3279_vm10, %v9996_v62  ;;  %3308 = vst.msk [vmem:[#allocation2 + $0x89] sm:$0x1] %vm3279_vm10, %v9996_v62  ;;  %v1927_v55 = vsel %vm697_vm1, %v5416_v24, %v8120_v25 }
 0x36a   :  { %1559 = vrot.lane.b32.xlu1 %v5410_v23, %s5490_s17  ;;  %1513 = vrot.lane.b32.xlu0 %v8452_v34, %s5491_s18  ;;  %v5413_v23 = vld [vmem:[%s9924_s0 + $0x411] sm:$0xff]  ;;  %3311 = vst.msk [vmem:[#allocation2 + $0xb9] sm:$0x1] %vm3279_vm10, %v9996_v62  ;;  %3312 = vst.msk [vmem:[#allocation2 + $0xc9] sm:$0x1] %vm3279_vm10, %v9996_v62  ;;  %v1943_v43 = vsel %vm714_vm2, %v1927_v55, %v8181_v18 }
 0x36b   :  { %3313 = vst.msk [vmem:[#allocation2 + $0xd9] sm:$0x1] %vm3279_vm10, %v9996_v62  ;;  %3314 = vst.msk [vmem:[#allocation2 + $0xe9] sm:$0x1] %vm3279_vm10, %v9996_v62  ;;  %v1959_v25 = vsel %vm731_vm3, %v1943_v43, %v8232_v0 }
 0x36c   :  { %v8459_v12 = vpop.permute.xlu1 %1599  ;;  %v8461_v37 = vpop.permute.xlu0 %1553  ;;  %3315 = vst.msk [vmem:[#allocation2 + $0xf9] sm:$0x1] %vm3279_vm10, %v9996_v62  ;;  %3316 = vst.msk [vmem:[#allocation2 + $0x109] sm:$0x1] %vm3279_vm10, %v9996_v62  ;;  %v1975_v18 = vsel %vm748_vm4, %v1959_v25, %v8279_v14  ;;  %v2471_v14 = vsel %vm697_vm1, %v7718_v59, %v8158_v44  ;;  %v4805_v59 = vld [vmem:[%s9924_s0 + $0x371] sm:$0xff] }
 0x36d   :  { %3317 = vst.msk [vmem:[#allocation2 + $0x119] sm:$0x1] %vm3279_vm10, %v9996_v62  ;;  %3318 = vst.msk [vmem:[#allocation2 + $0x129] sm:$0x1] %vm3279_vm10, %v9996_v62  ;;  %v1991_v0 = vsel %vm765_vm5, %v1975_v18, %v8356_v17  ;;  %v5418_v17 = vld [vmem:[%s9924_s0 + $0x300] sm:$0xff]  ;;  %v4790_v44 = vld [vmem:[%s9924_s0 + $0x410] sm:$0xff] }
 0x36e   :  { %v8463_v30 = vpop.f32.mrb[0].mxu1  ;;  %1763 = vrot.lane.b32.xlu1 %v4773_v46, %s5495_s11  ;;  %1701 = vrot.lane.b32.xlu0 %v5409_v58, %s5494_s19  ;;  %v8484_v58 = vld [vmem:[%s9924_s0 + $0x400] sm:$0xff]  ;;  %3280 = vst.msk [vmem:[#allocation2] sm:$0x1] %vm3279_vm10, %v9996_v62  ;;  %3289 = vst.msk [vmem:[#allocation2 + $0x90] sm:$0x1] %vm3279_vm10, %v9996_v62  ;;  %v2007_v43 = vsel %vm782_vm6, %v1991_v0, %v8412_v8 }
 0x36f   :  { %10090 = vst [vmem:[#allocation30_spill] sm:$0xff] %v8463_v30  ;;  %v8467_v39 = vpop.f32.mrb[1].mxu1  ;;  %3290 = vst.msk [vmem:[#allocation2 + $0xa0] sm:$0x1] %vm3279_vm10, %v9996_v62  ;;  %v5419_v8 = vld [vmem:[%s9924_s0 + $0x421] sm:$0xff] }
 0x370   :  { %10091 = vst [vmem:[#allocation31_spill] sm:$0xff] %v8467_v39  ;;  %v8469_v38 = vpop.permute.xlu1 %1819  ;;  %v8471_v56 = vpop.permute.xlu0 %1757  ;;  %3299 = vst.msk [vmem:[#allocation2 + $0x130] sm:$0x1] %vm3279_vm10, %v9996_v62  ;;  %v4774_v62 = vld [vmem:[%s9924_s0 + $0x380] sm:$0xff]  ;;  %v10092_v39 = vmov 0.0  }
 0x371   :  { %3271 = vst.msk [vmem:[#allocation2 + $0x8] sm:$0x3] %vm3270_vm11, %v10092_v39  ;;  %3273 = vst.msk [vmem:[#allocation2 + $0xa8] sm:$0x3] %vm3270_vm11, %v10092_v39  ;;  %v2023_v55 = vsel %vm799_vm7, %v2007_v43, %v8469_v38 }
 0x372   :  { %2135 = vrot.lane.b32.xlu1 %v5413_v23, %s5490_s17  ;;  %2089 = vrot.lane.b32.xlu0 %v5414_v27, %s5491_s18  ;;  %v5415_v23 = vld [vmem:[%s9924_s0 + $0x2f1] sm:$0xff]  ;;  %3276 = vst.msk [vmem:[#allocation2 + $0x98] sm:$0x3] %vm3270_vm11, %v10092_v39  ;;  %3278 = vst.msk [vmem:[#allocation2 + $0x138] sm:$0x3] %vm3270_vm11, %v10092_v39 }
 0x373   :  { %3300 = vst.msk [vmem:[#allocation2 + $0x9] sm:$0x1] %vm3279_vm10, %v10092_v39  ;;  %3309 = vst.msk [vmem:[#allocation2 + $0x99] sm:$0x1] %vm3279_vm10, %v10092_v39 }
 0x374   :  { %v8486_v6 = vpop.permute.xlu1 %2175  ;;  %v8488_v46 = vpop.permute.xlu0 %2129  ;;  %3310 = vst.msk [vmem:[#allocation2 + $0xa9] sm:$0x1] %vm3279_vm10, %v10092_v39  ;;  %3319 = vst.msk [vmem:[#allocation2 + $0x139] sm:$0x1] %vm3279_vm10, %v10092_v39 }
 0x376   :  { %2323 = vrot.lane.b32.xlu1 %v8484_v58, %s5495_s11  ;;  %2277 = vrot.lane.b32.xlu0 %v5415_v23, %s5494_s19 }
 0x378   :  { %v2364_v23 = vpop.permute.xlu1 %2363  ;;  %v8568_v57 = vpop.permute.xlu0 %2317 }
 0x37a   :  { %1607 = vrot.lane.b32.xlu1 %v5417_v42, %s5492_s27  ;;  %1561 = vrot.lane.b32.xlu0 %v5414_v27, %s5490_s17 }
 0x37c   :  { %v8599_v42 = vpop.permute.xlu1 %1647  ;;  %v8601_v24 = vpop.permute.xlu0 %1601 }
 0x37e   :  { %1827 = vrot.lane.b32.xlu1 %v8484_v58, %s5496_s29  ;;  %1765 = vrot.lane.b32.xlu0 %v4774_v62, %s5495_s11  ;;  %v2487_v62 = vsel %vm714_vm2, %v2471_v14, %v8200_v51 }
 0x37f   :  { %v2503_v38 = vsel %vm731_vm3, %v2487_v62, %v8251_v13 }
 0x380   :  { %v1884_v27 = vpop.permute.xlu1 %1883  ;;  %v1822_v30 = vpop.permute.xlu0 %1821  ;;  %v2519_v51 = vsel %vm748_vm4, %v2503_v38, %v8314_v22  ;;  %v5420_v22 = vld [vmem:[%s9924_s0 + $0x170] sm:$0xff] }
 0x381   :  { %v2039_v39 = vsel %vm816_vm8, %v2023_v55, %v1884_v27  ;;  %v5421_v27 = vld [vmem:[%s9924_s0 + $0x280] sm:$0xff] }
 0x382   :  { %2183 = vrot.lane.b32.xlu1 %v5418_v17, %s5492_s27  ;;  %2137 = vrot.lane.b32.xlu0 %v5419_v8, %s5490_s17 }
 0x383   :  { %5099 = vmatprep.mubr.msk.f32.mxu0 %vm2600_vm9, %v2039_v39  ;;  %v2535_v39 = vsel %vm765_vm5, %v2519_v51, %v8394_v1  ;;  %v1928_v1 = vsel %vm697_vm1, %v5420_v22, %v8183_v33 }
 0x384   :  { %v8645_v58 = vpop.permute.xlu1 %2223  ;;  %v8647_v25 = vpop.permute.xlu0 %2177  ;;  %v2551_v18 = vsel %vm782_vm6, %v2535_v39, %v8444_v10  ;;  %v1944_v10 = vsel %vm714_vm2, %v1928_v1, %v8234_v36 }
 0x385   :  { %v2567_v0 = vsel %vm799_vm7, %v2551_v18, %v2364_v23  ;;  %v1960_v23 = vsel %vm731_vm3, %v1944_v10, %v8281_v28  ;;  %v5425_v10 = vld [vmem:[%s9924_s0 + $0x301] sm:$0xff] }
 0x386   :  { %2371 = vrot.lane.b32.xlu1 %v4805_v59, %s5496_s29  ;;  %2325 = vrot.lane.b32.xlu0 %v4790_v44, %s5495_s11  ;;  %v1976_v33 = vsel %vm748_vm4, %v1960_v23, %v8343_v53  ;;  %v2472_v53 = vsel %vm697_vm1, %v7763_v54, %v8202_v5  ;;  %v4821_v54 = vld [vmem:[%s9924_s0 + $0x401] sm:$0xff] }
 0x387   :  { %v4806_v5 = vld [vmem:[%s9924_s0 + $0x381] sm:$0xff] }
 0x388   :  { %v2428_v13 = vpop.permute.xlu1 %2427  ;;  %v2366_v43 = vpop.permute.xlu0 %2365  ;;  %v5426_v23 = vld [vmem:[%s9924_s0 + $0x281] sm:$0xff] }
 0x389   :  { %v2583_v55 = vsel %vm816_vm8, %v2567_v0, %v2428_v13 }
 0x38a   :  { %1655 = vrot.lane.b32.xlu1 %v5418_v17, %s5493_s12  ;;  %1609 = vrot.lane.b32.xlu0 %v5421_v27, %s5492_s27  ;;  %v1992_v17 = vsel %vm765_vm5, %v1976_v33, %v8414_v16  ;;  %v5422_v16 = vld [vmem:[%s9924_s0 + $0x271] sm:$0xff] }
 0x38b   :  { %5123 = vmatprep.mubr.msk.f32.mxu1 %vm2600_vm9, %v2583_v55  ;;  %v2008_v36 = vsel %vm782_vm6, %v1992_v17, %v8471_v56  ;;  %v5423_v56 = vld [vmem:[%s9924_s0 + $0x310] sm:$0xff] }
 0x38c   :  { %v8674_v14 = vpop.permute.xlu1 %1649  ;;  %v8676_v8 = vpop.permute.xlu0 %1507  ;;  %v2024_v62 = vsel %vm799_vm7, %v2008_v36, %v1822_v30  ;;  %v2488_v30 = vsel %vm714_vm2, %v2472_v53, %v8253_v52 }
 0x38e   :  { %1891 = vrot.lane.b32.xlu1 %v4805_v59, %s5497_s2  ;;  %1829 = vrot.lane.b32.xlu0 %v4790_v44, %s5496_s29  ;;  %v2504_v59 = vsel %vm731_vm3, %v2488_v30, %v8316_v47 }
 0x38f   :  { %v2520_v52 = vsel %vm748_vm4, %v2504_v59, %v8381_v63  ;;  %v5427_v59 = vld [vmem:[%s9924_s0 + $0x3b1] sm:$0xff] }
 0x390   :  { %v1886_v28 = vpop.permute.xlu1 %1885  ;;  %v8687_v38 = vpop.permute.xlu0 %1695  ;;  %v2536_v18 = vsel %vm765_vm5, %v2520_v52, %v8446_v45 }
 0x391   :  { %v2040_v51 = vsel %vm816_vm8, %v2024_v62, %v1886_v28  ;;  %v2552_v0 = vsel %vm782_vm6, %v2536_v18, %v8568_v57  ;;  %v5424_v57 = vld [vmem:[%s9924_s0 + $0x3a1] sm:$0xff]  ;;  %v4822_v62 = vld [vmem:[%s9924_s0 + $0x411] sm:$0xff] }
 0x392   :  { %2231 = vrot.lane.b32.xlu1 %v5422_v16, %s5493_s12  ;;  %2185 = vrot.lane.b32.xlu0 %v5423_v56, %s5492_s27  ;;  %v2568_v13 = vsel %vm799_vm7, %v2552_v0, %v2366_v43 }
 0x393   :  { %5100 = vmatmul.mubr.msk.f32.gmra.mrb[36].mxu0 %vm2600_vm9, %v2040_v51  ;;  %v5431_v51 = vld [vmem:[%s9924_s0 + $0x180] sm:$0xff] }
 0x394   :  { %v8712_v44 = vpop.permute.xlu1 %2225  ;;  %v8714_v39 = vpop.permute.xlu0 %2083  ;;  %v1929_v17 = vsel %vm697_vm1, %v5431_v51, %v8345_v41 }
 0x396   :  { %2435 = vrot.lane.b32.xlu1 %v4821_v54, %s5497_s2  ;;  %2373 = vrot.lane.b32.xlu0 %v4806_v5, %s5496_s29 }
 0x398   :  { %v2430_v47 = vpop.permute.xlu1 %2429  ;;  %v8725_v55 = vpop.permute.xlu0 %2271 }
 0x399   :  { %v2584_v22 = vsel %vm816_vm8, %v2568_v13, %v2430_v47  ;;  %v5428_v13 = vld [vmem:[%s9924_s0 + $0x311] sm:$0xff] }
 0x39a   :  { %1703 = vrot.lane.b32.xlu1 %v5422_v16, %s5494_s19  ;;  %1657 = vrot.lane.b32.xlu0 %v5423_v56, %s5493_s12  ;;  %v4775_v56 = vld [vmem:[%s9924_s0 + $0x390] sm:$0xff] }
 0x39b   :  { %5124 = vmatmul.mubr.msk.f32.gmra.mrb[8].mxu1 %vm2600_vm9, %v2584_v22  ;;  %v5429_v47 = vld [vmem:[%s9924_s0 + $0x431] sm:$0xff]  ;;  %v4776_v22 = vld [vmem:[%s9924_s0 + $0x3a0] sm:$0xff] }
 0x39c   :  { %v8731_v63 = vpop.permute.xlu1 %1555  ;;  %v8733_v45 = vpop.permute.xlu0 %1509 }
 0x39e   :  { %2091 = vrot.lane.b32.xlu1 %v5424_v57, %s5491_s18  ;;  %1893 = vrot.lane.b32.xlu0 %v4806_v5, %s5497_s2  ;;  %v4791_v57 = vld [vmem:[%s9924_s0 + $0x420] sm:$0xff] }
 0x3a0   :  { %v1760_v43 = vpop.permute.xlu1 %1759  ;;  %v8740_v1 = vpop.permute.xlu0 %1697 }
 0x3a2   :  { %v8742_v27 = vpop.f32.mrb[30].mxu0  ;;  %2279 = vrot.lane.b32.xlu1 %v5425_v10, %s5494_s19  ;;  %2233 = vrot.lane.b32.xlu0 %v5426_v23, %s5493_s12 }
 0x3a3   :  { %10093 = vst [vmem:[#allocation28_spill] sm:$0xff] %v8742_v27  ;;  %v8754_v36 = vpop.f32.mrb[31].mxu0 }
 0x3a4   :  { %10095 = vst [vmem:[#allocation32_spill] sm:$0xff] %v8754_v36  ;;  %v8761_v53 = vpop.permute.xlu1 %2131  ;;  %v8763_v16 = vpop.permute.xlu0 %2085  ;;  %v4807_v36 = vld [vmem:[%s9924_s0 + $0x391] sm:$0xff] }
 0x3a6   :  { %1705 = vrot.lane.b32.xlu1 %v5426_v23, %s5494_s19  ;;  %2437 = vrot.lane.b32.xlu0 %v4822_v62, %s5497_s2 }
 0x3a8   :  { %v2320_v30 = vpop.permute.xlu1 %2319  ;;  %v8770_v54 = vpop.permute.xlu0 %2273 }
 0x3aa   :  { %v8772_v5 = vpop.f32.mrb[2].mxu1  ;;  %2093 = vrot.lane.b32.xlu1 %v5427_v59, %s5491_s18  ;;  %1767 = vrot.lane.b32.xlu0 %v4775_v56, %s5495_s11  ;;  %v5430_v59 = vld [vmem:[%s9924_s0 + $0x441] sm:$0xff] }
 0x3ab   :  { %v8779_v52 = vpop.f32.mrb[3].mxu1 }
 0x3ac   :  { %10097 = vst [vmem:[#allocation33_spill] sm:$0xff] %v8779_v52  ;;  %v8781_v18 = vpop.permute.xlu1 %1603  ;;  %v8783_v0 = vpop.permute.xlu0 %1557  ;;  %v2473_v52 = vsel %vm697_vm1, %v7947_v2, %v8383_v31 }
 0x3ae   :  { %2281 = vrot.lane.b32.xlu1 %v5428_v13, %s5494_s19  ;;  %2139 = vrot.lane.b32.xlu0 %v5429_v47, %s5490_s17  ;;  %v4792_v13 = vld [vmem:[%s9924_s0 + $0x430] sm:$0xff] }
 0x3b0   :  { %v1824_v10 = vpop.permute.xlu1 %1823  ;;  %v8799_v23 = vpop.permute.xlu0 %1761 }
 0x3b2   :  { %1769 = vrot.lane.b32.xlu1 %v4776_v22, %s5495_s11  ;;  %2327 = vrot.lane.b32.xlu0 %v4791_v57, %s5495_s11 }
 0x3b4   :  { %v8803_v62 = vpop.permute.xlu1 %2179  ;;  %v8805_v56 = vpop.permute.xlu0 %2133 }
 0x3b6   :  { %2141 = vrot.lane.b32.xlu1 %v5430_v59, %s5490_s17  ;;  %1831 = vrot.lane.b32.xlu0 %v4791_v57, %s5496_s29  ;;  %v5432_v57 = vld [vmem:[%s9924_s0 + $0x320] sm:$0xff]  ;;  %v1945_v59 = vsel %vm714_vm2, %v1929_v17, %v8406_v4 }
 0x3b7   :  { %v1961_v28 = vsel %vm731_vm3, %v1945_v59, %v8459_v12 }
 0x3b8   :  { %v2368_v47 = vpop.permute.xlu1 %2367  ;;  %v8815_v22 = vpop.permute.xlu0 %2321  ;;  %v1977_v51 = vsel %vm748_vm4, %v1961_v28, %v8599_v42  ;;  %v5433_v42 = vld [vmem:[%s9924_s0 + $0x330] sm:$0xff] }
 0x3ba   :  { %2329 = vrot.lane.b32.xlu1 %v4792_v13, %s5495_s11  ;;  %2187 = vrot.lane.b32.xlu0 %v5432_v57, %s5492_s27  ;;  %v1993_v57 = vsel %vm765_vm5, %v1977_v51, %v8687_v38  ;;  %v2489_v38 = vsel %vm714_vm2, %v2473_v52, %v8427_v9  ;;  %v5434_v9 = vld [vmem:[%s9924_s0 + $0x291] sm:$0xff]  ;;  %v4823_v52 = vld [vmem:[%s9924_s0 + $0x421] sm:$0xff] }
 0x3bb   :  { %v2009_v4 = vsel %vm782_vm6, %v1993_v57, %v1760_v43  ;;  %v4808_v43 = vld [vmem:[%s9924_s0 + $0x3a1] sm:$0xff]  ;;  %v2505_v2 = vsel %vm731_vm3, %v2489_v38, %v8486_v6  ;;  %v5435_v51 = vld [vmem:[%s9924_s0 + $0x190] sm:$0xff] }
 0x3bc   :  { %v8834_v27 = vpop.permute.xlu1 %1651  ;;  %v8836_v41 = vpop.permute.xlu0 %1605  ;;  %v2025_v17 = vsel %vm799_vm7, %v2009_v4, %v1824_v10  ;;  %v2521_v28 = vsel %vm748_vm4, %v2505_v2, %v8645_v58  ;;  %v1930_v57 = vsel %vm697_vm1, %v5435_v51, %v8408_v20  ;;  %v5442_v51 = vld [vmem:[%s9924_s0 + $0x331] sm:$0xff] }
 0x3be   :  { %1833 = vrot.lane.b32.xlu1 %v4792_v13, %s5496_s29  ;;  %2375 = vrot.lane.b32.xlu0 %v4807_v36, %s5496_s29 }
 0x3c0   :  { %v1888_v33 = vpop.permute.xlu1 %1887  ;;  %v1826_v12 = vpop.permute.xlu0 %1825 }
 0x3c1   :  { %v2041_v59 = vsel %vm816_vm8, %v2025_v17, %v1888_v33 }
 0x3c2   :  { %2189 = vrot.lane.b32.xlu1 %v5433_v42, %s5492_s27  ;;  %1895 = vrot.lane.b32.xlu0 %v4807_v36, %s5497_s2  ;;  %v2537_v36 = vsel %vm765_vm5, %v2521_v28, %v8725_v55  ;;  %v5436_v42 = vld [vmem:[%s9924_s0 + $0x2a1] sm:$0xff]  ;;  %v2474_v28 = vsel %vm697_vm1, %v7993_v19, %v8429_v40 }
 0x3c3   :  { %5102 = vmatprep.mubr.msk.f32.mxu0 %vm2600_vm9, %v2041_v59  ;;  %v2553_v6 = vsel %vm782_vm6, %v2537_v36, %v2320_v30  ;;  %v1946_v30 = vsel %vm714_vm2, %v1930_v57, %v8461_v37  ;;  %v5437_v37 = vld [vmem:[%s9924_s0 + $0x3c1] sm:$0xff] }
 0x3c4   :  { %v8863_v31 = vpop.permute.xlu1 %2227  ;;  %v8865_v33 = vpop.permute.xlu0 %2181  ;;  %v2569_v10 = vsel %vm799_vm7, %v2553_v6, %v2368_v47  ;;  %v1962_v47 = vsel %vm731_vm3, %v1946_v30, %v8601_v24  ;;  %v5443_v57 = vld [vmem:[%s9924_s0 + $0x340] sm:$0xff] }
 0x3c5   :  { %v1978_v59 = vsel %vm748_vm4, %v1962_v47, %v8674_v14  ;;  %v4824_v14 = vld [vmem:[%s9924_s0 + $0x431] sm:$0xff]  ;;  %v5444_v30 = vld [vmem:[%s9924_s0 + $0x461] sm:$0xff] }
 0x3c6   :  { %2377 = vrot.lane.b32.xlu1 %v4808_v43, %s5496_s29  ;;  %2235 = vrot.lane.b32.xlu0 %v5434_v9, %s5493_s12  ;;  %v1994_v20 = vsel %vm765_vm5, %v1978_v59, %v8740_v1 }
 0x3c7   :  { %v2010_v24 = vsel %vm782_vm6, %v1994_v20, %v8799_v23  ;;  %v5438_v23 = vld [vmem:[%s9924_s0 + $0x321] sm:$0xff]  ;;  %v5445_v20 = vld [vmem:[%s9924_s0 + $0x3b1] sm:$0xff] }
 0x3c8   :  { %v2432_v58 = vpop.permute.xlu1 %2431  ;;  %v2370_v13 = vpop.permute.xlu0 %2369  ;;  %v2026_v1 = vsel %vm799_vm7, %v2010_v24, %v1826_v12  ;;  %v2490_v12 = vsel %vm714_vm2, %v2474_v28, %v8488_v46  ;;  %v5440_v46 = vld [vmem:[%s9924_s0 + $0x3d1] sm:$0xff]  ;;  %v4825_v28 = vld [vmem:[%s9924_s0 + $0x441] sm:$0xff] }
 0x3c9   :  { %v2585_v55 = vsel %vm816_vm8, %v2569_v10, %v2432_v58  ;;  %v2506_v36 = vsel %vm731_vm3, %v2490_v12, %v8647_v25 }
 0x3ca   :  { %1897 = vrot.lane.b32.xlu1 %v4808_v43, %s5497_s2  ;;  %2439 = vrot.lane.b32.xlu0 %v4823_v52, %s5497_s2  ;;  %v2522_v19 = vsel %vm748_vm4, %v2506_v36, %v8712_v44  ;;  %v5439_v52 = vld [vmem:[%s9924_s0 + $0x451] sm:$0xff]  ;;  %v5449_v36 = vld [vmem:[%s9924_s0 + $0x3c1] sm:$0xff] }
 0x3cb   :  { %5126 = vmatprep.mubr.msk.f32.mxu1 %vm2600_vm9, %v2585_v55  ;;  %v2538_v40 = vsel %vm765_vm5, %v2522_v19, %v8770_v54  ;;  %v5441_v55 = vld [vmem:[%s9924_s0 + $0x440] sm:$0xff] }
 0x3cc   :  { %v8894_v4 = vpop.permute.xlu1 %1653  ;;  %v8896_v17 = vpop.permute.xlu0 %1511  ;;  %v2554_v25 = vsel %vm782_vm6, %v2538_v40, %v8815_v22 }
 0x3cd   :  { %v2570_v44 = vsel %vm799_vm7, %v2554_v25, %v2370_v13  ;;  %v5451_v25 = vld [vmem:[%s9924_s0 + $0x2c1] sm:$0xff] }
 0x3ce   :  { %2237 = vrot.lane.b32.xlu1 %v5436_v42, %s5493_s12  ;;  %2095 = vrot.lane.b32.xlu0 %v5437_v37, %s5491_s18  ;;  %v5446_v42 = vld [vmem:[%s9924_s0 + $0x450] sm:$0xff] }
 0x3d0   :  { %v1890_v38 = vpop.permute.xlu1 %1889  ;;  %v8916_v43 = vpop.permute.xlu0 %1699 }
 0x3d1   :  { %v2042_v2 = vsel %vm816_vm8, %v2026_v1, %v1890_v38  ;;  %v5447_v1 = vld [vmem:[%s9924_s0 + $0x2b1] sm:$0xff] }
 0x3d2   :  { %2441 = vrot.lane.b32.xlu1 %v4824_v14, %s5497_s2  ;;  %2283 = vrot.lane.b32.xlu0 %v5438_v23, %s5494_s19  ;;  %v5448_v38 = vld [vmem:[%s9924_s0 + $0x350] sm:$0xff] }
 0x3d3   :  { %5103 = vmatmul.mubr.msk.f32.gmra.mrb[38].mxu0 %vm2600_vm9, %v2042_v2 }
 0x3d4   :  { %v8932_v9 = vpop.permute.xlu1 %2229  ;;  %v8934_v6 = vpop.permute.xlu0 %2087 }
 0x3d6   :  { %2143 = vrot.lane.b32.xlu1 %v5439_v52, %s5490_s17  ;;  %2097 = vrot.lane.b32.xlu0 %v5440_v46, %s5491_s18  ;;  %v5450_v46 = vld [vmem:[%s9924_s0 + $0x341] sm:$0xff] }
 0x3d8   :  { %v2434_v10 = vpop.permute.xlu1 %2433  ;;  %v8951_v58 = vpop.permute.xlu0 %2275 }
 0x3d9   :  { %v2586_v54 = vsel %vm816_vm8, %v2570_v44, %v2434_v10 }
 0x3da   :  { %2331 = vrot.lane.b32.xlu1 %v5441_v55, %s5495_s11  ;;  %2285 = vrot.lane.b32.xlu0 %v5442_v51, %s5494_s19  ;;  %v9029_v55 = vld [vmem:[%s9927_s3] ss:$0 sm:$0xff] }
 0x3db   :  { %5127 = vmatmul.mubr.msk.f32.gmra.mrb[10].mxu1 %vm2600_vm9, %v2586_v54  ;;  %v4826_v54 = vld [vmem:[%s9924_s0 + $0x451] sm:$0xff] }
 0x3dc   :  { %v8963_v22 = vpop.permute.xlu1 %1559  ;;  %v8965_v13 = vpop.permute.xlu0 %1513 }
 0x3de   :  { %2191 = vrot.lane.b32.xlu1 %v5443_v57, %s5492_s27  ;;  %2145 = vrot.lane.b32.xlu0 %v5444_v30, %s5490_s17 }
 0x3e0   :  { %v8975_v47 = vpop.permute.xlu1 %1763  ;;  %v8977_v59 = vpop.permute.xlu0 %1701 }
 0x3e2   :  { %2379 = vrot.lane.b32.xlu1 %v5445_v20, %s5496_s29  ;;  %2333 = vrot.lane.b32.xlu0 %v5446_v42, %s5495_s11  ;;  %v10098_v20 = vmax.f32 %v6755_v61, %v7574_v50 }
 0x3e4   :  { %v8987_v37 = vpop.permute.xlu1 %2135  ;;  %v8989_v24 = vpop.permute.xlu0 %2089 }
 0x3e6   :  { %v5095_v14 = vpop.f32.mrb[32].mxu0  ;;  %2239 = vrot.lane.b32.xlu1 %v5447_v1, %s5493_s12  ;;  %2193 = vrot.lane.b32.xlu0 %v5448_v38, %s5492_s27  ;;  %v10099_v1 = vld [vmem:[#allocation8_spill] sm:$0xff]  ;;  %s5501_s27 = smov 56  }
 0x3e7   :  { %v3023_v2 = vpop.f32.mrb[33].mxu0 }
 0x3e8   :  { %v9002_v23 = vpop.permute.xlu1 %2323  ;;  %v9004_v12 = vpop.permute.xlu0 %2277 }
 0x3ea   :  { %2443 = vrot.lane.b32.xlu1 %v4825_v28, %s5497_s2  ;;  %2381 = vrot.lane.b32.xlu0 %v5449_v36, %s5496_s29  ;;  %v5452_v36 = vld [vmem:[%s9924_s0 + $0x351] sm:$0xff] }
 0x3ec   :  { %v9011_v19 = vpop.permute.xlu1 %1607  ;;  %v9013_v40 = vpop.permute.xlu0 %1561 }
 0x3ee   :  { %v5119_v52 = vpop.f32.mrb[4].mxu1  ;;  %2287 = vrot.lane.b32.xlu1 %v5450_v46, %s5494_s19  ;;  %2241 = vrot.lane.b32.xlu0 %v5451_v25, %s5493_s12 }
 0x3ef   :  { %v3199_v44 = vmax.f32 %v5095_v14, %v5119_v52  ;;  %v3103_v10 = vpop.f32.mrb[5].mxu1  ;;  %v10100_v14 = vld [vmem:[#allocation20_spill] sm:$0xff] }
 0x3f0   :  { %v3198_v51 = vmax.f32 %v3023_v2, %v3103_v10  ;;  %v1828_v57 = vpop.permute.xlu1 %1827  ;;  %v9031_v30 = vpop.permute.xlu0 %1765  ;;  %v10101_v38 = vmax.f32 %v10099_v1, %v10100_v14  ;;  %v5454_v10 = vld [vmem:[%s9924_s0 + $0x460] sm:$0xff]  ;;  %v5457_v14 = vld [vmem:[%s9924_s0 + $0x3d1] sm:$0xff] }
 0x3f1   :  { %v3215_v42 = vmax.f32 %v10098_v20, %v3199_v44  ;;  %v5453_v44 = vld [vmem:[%s9924_s0 + $0x470] sm:$0xff]  ;;  %v5455_v20 = vld [vmem:[%s9924_s0 + $0x360] sm:$0xff] }
 0x3f2   :  { %v3214_v28 = vmax.f32 %v10101_v38, %v3198_v51  ;;  %2289 = vrot.lane.b32.xlu1 %v5452_v36, %s5494_s19  ;;  %2445 = vrot.lane.b32.xlu0 %v4826_v54, %s5497_s2  ;;  %v5456_v1 = vld [vmem:[%s9924_s0 + $0x3e1] sm:$0xff] }
 0x3f3   :  { %v3238_v2 = vadd.f32 %v9029_v55, %v3215_v42  ;;  %v1931_v42 = vsel %vm697_vm1, %v5455_v20, %v8676_v8  ;;  %v4827_v8 = vld [vmem:[%s9924_s0 + $0x461] sm:$0xff] }
 0x3f4   :  { %v3237_v52 = vadd.f32 %v9029_v55, %v3214_v28  ;;  %v9046_v46 = vpop.permute.xlu1 %2183  ;;  %v9048_v61 = vpop.permute.xlu0 %2137  ;;  %v1947_v38 = vsel %vm714_vm2, %v1931_v42, %v8731_v63  ;;  %v4828_v28 = vld [vmem:[%s9924_s0 + $0x471] sm:$0xff] }
 0x3f5   :  { %v3254_v50 = vmax.f32 %v3238_v2, 0.0  ;;  %v1963_v36 = vsel %vm731_vm3, %v1947_v38, %v8781_v18 }
 0x3f6   :  { %v3253_v25 = vmax.f32 %v3237_v52, 0.0  ;;  %2337 = vrot.lane.b32.xlu1 %v5453_v44, %s5495_s11  ;;  %2335 = vrot.lane.b32.xlu0 %v5454_v10, %s5495_s11  ;;  %v3353_v44 = vld [vmem:[#allocation2 + $0x1] sm:$0xff] }
 0x3f7   :  { %3322 = vst.msk [vmem:[#allocation2 + $0x21] sm:$0xff] %vm714_vm2, %v3254_v50  ;;  %v1979_v50 = vsel %vm748_vm4, %v1963_v36, %v8834_v27  ;;  %v2475_v27 = vsel %vm697_vm1, %v8176_v21, %v8714_v39 }
 0x3f8   :  { %3321 = vst.msk [vmem:[#allocation2 + $0x11] sm:$0xff] %vm714_vm2, %v3253_v25  ;;  %v2372_v54 = vpop.permute.xlu1 %2371  ;;  %v9060_v51 = vpop.permute.xlu0 %2325  ;;  %v1995_v63 = vsel %vm765_vm5, %v1979_v50, %v8916_v43 }
 0x3f9   :  { %v2011_v25 = vsel %vm782_vm6, %v1995_v63, %v8975_v47  ;;  %v3369_v47 = vld [vmem:[#allocation2 + $0x2] sm:$0xff] }
 0x3fa   :  { %2385 = vrot.lane.b32.xlu1 %v5456_v1, %s5496_s29  ;;  %2383 = vrot.lane.b32.xlu0 %v5457_v14, %s5496_s29  ;;  %v2027_v18 = vsel %vm799_vm7, %v2011_v25, %v1828_v57  ;;  %v2491_v1 = vsel %vm714_vm2, %v2475_v27, %v8761_v53 }
 0x3fb   :  { %v2507_v57 = vsel %vm731_vm3, %v2491_v1, %v8803_v62 }
 0x3fc   :  { %v9085_v2 = vpop.permute.xlu1 %1655  ;;  %v9087_v52 = vpop.permute.xlu0 %1609  ;;  %v2523_v21 = vsel %vm748_vm4, %v2507_v57, %v8863_v31  ;;  %v5458_v31 = vld [vmem:[%s9924_s0 + $0x370] sm:$0xff] }
 0x3fd   :  { %v2539_v39 = vsel %vm765_vm5, %v2523_v21, %v8951_v58  ;;  %v1932_v58 = vsel %vm697_vm1, %v5458_v31, %v8733_v45 }
 0x3fe   :  { %2449 = vrot.lane.b32.xlu1 %v4828_v28, %s5497_s2  ;;  %2447 = vrot.lane.b32.xlu0 %v4827_v8, %s5497_s2  ;;  %v2555_v53 = vsel %vm782_vm6, %v2539_v39, %v9002_v23  ;;  %v9133_v23 = vld [vmem:[#allocation2 + $0x20] sm:$0xff] }
 0x3ff   :  { %v3354_v43 = vld [vmem:[#allocation2 + $0x11] sm:$0xff]  ;;  %v2571_v62 = vsel %vm799_vm7, %v2555_v53, %v2372_v54  ;;  %v1948_v54 = vsel %vm714_vm2, %v1932_v58, %v8783_v0  ;;  %v9177_v57 = vld [vmem:[#allocation2 + $0x22] sm:$0xff] }
 0x400   :  { %v1892_v10 = vpop.permute.xlu1 %1891  ;;  %v1830_v20 = vpop.permute.xlu0 %1829  ;;  %v3370_v28 = vld [vmem:[#allocation2 + $0x12] sm:$0xff]  ;;  %v1964_v25 = vsel %vm731_vm3, %v1948_v54, %v8836_v41 }
 0x401   :  { %v2043_v42 = vsel %vm816_vm8, %v2027_v18, %v1892_v10  ;;  %v9123_v63 = vld [vmem:[#allocation2 + $0x10] sm:$0xff]  ;;  %v1980_v45 = vsel %vm748_vm4, %v1964_v25, %v8894_v4 }
 0x402   :  { %3498 = vrot.lane.b32.xlu0 %v3353_v44, %s5490_s17  ;;  %5105 = vmatprep.mubr.msk.f32.mxu0 %vm2600_vm9, %v2043_v42  ;;  %v1996_v10 = vsel %vm765_vm5, %v1980_v45, %v8977_v59  ;;  %v9148_v42 = vld [vmem:[#allocation2 + $0x21] sm:$0xff]  ;;  %v2476_v59 = vsel %vm697_vm1, %v8219_v32, %v8763_v16 }
 0x403   :  { %3500 = vrot.lane.b32.xlu1 %v3354_v43, %s5490_s17  ;;  %v2012_v0 = vsel %vm782_vm6, %v1996_v10, %v9031_v30  ;;  %v2492_v30 = vsel %vm714_vm2, %v2476_v59, %v8805_v56  ;;  %v5459_v45 = vld [vmem:[%s9924_s0 + $0x380] sm:$0xff] }
 0x404   :  { %v9109_v14 = vpop.permute.xlu1 %2231  ;;  %v9111_v38 = vpop.permute.xlu0 %2185  ;;  %v2028_v41 = vsel %vm799_vm7, %v2012_v0, %v1830_v20  ;;  %v2508_v20 = vsel %vm731_vm3, %v2492_v30, %v8865_v33  ;;  %v1933_v10 = vsel %vm697_vm1, %v5459_v45, %v8896_v17 }
 0x405   :  { %v2524_v32 = vsel %vm748_vm4, %v2508_v20, %v8932_v9 }
 0x406   :  { %3562 = vrot.lane.b32.xlu0 %v3369_v47, %s5493_s12  ;;  %v2540_v16 = vsel %vm765_vm5, %v2524_v32, %v9004_v12 }
 0x407   :  { %3564 = vrot.lane.b32.xlu1 %v3370_v28, %s5493_s12  ;;  %v2556_v56 = vsel %vm782_vm6, %v2540_v16, %v9060_v51 }
 0x408   :  { %v2436_v8 = vpop.permute.xlu1 %2435  ;;  %v2374_v36 = vpop.permute.xlu0 %2373 }
 0x409   :  { %v2587_v50 = vsel %vm816_vm8, %v2571_v62, %v2436_v8  ;;  %v2572_v33 = vsel %vm799_vm7, %v2556_v56, %v2374_v36  ;;  %v10102_v56 = vmax.f32 %v6844_v29, %v7711_v48  ;;  %v4126_v29 = vld [vmem:[%s9928_s4] sm:$0xff] }
 0x40a   :  { %5129 = vmatprep.mubr.msk.f32.mxu1 %vm2600_vm9, %v2587_v50  ;;  %3626 = vrot.lane.b32.xlu0 %v9123_v63, %s5495_s11 }
 0x40b   :  { %3628 = vrot.lane.b32.xlu1 %v9133_v23, %s5495_s11 }
 0x40c   :  { %v1704_v44 = vpop.permute.xlu1 %1703  ;;  %v9141_v18 = vpop.permute.xlu0 %1657 }
 0x40e   :  { %3690 = vrot.lane.b32.xlu0 %v3354_v43, %s5497_s2 }
 0x40f   :  { %3502 = vrot.lane.b32.xlu1 %v9148_v42, %s5490_s17 }
 0x410   :  { %v9155_v27 = vpop.permute.xlu1 %2091  ;;  %v1894_v1 = vpop.permute.xlu0 %1893 }
 0x411   :  { %v2044_v4 = vsel %vm816_vm8, %v2028_v41, %v1894_v1  ;;  %v1949_v41 = vsel %vm714_vm2, %v1933_v10, %v8963_v22  ;;  %v10103_v22 = vmax.f32 %v6855_v60, %v7724_v11  ;;  %v4127_v60 = vld [vmem:[%s9928_s4 + $0x8] sm:$0xff] }
 0x412   :  { %5106 = vmatmul.mubr.msk.f32.gmra.mrb[40].mxu0 %vm2600_vm9, %v2044_v4  ;;  %3692 = vrot.lane.b32.xlu0 %v9148_v42, %s5497_s2  ;;  %v1965_v59 = vsel %vm731_vm3, %v1949_v41, %v9011_v19 }
 0x413   :  { %3754 = vrot.lane.b32.xlu1 %v3370_v28, %s5499_s13  ;;  %v1981_v16 = vsel %vm748_vm4, %v1965_v59, %v9085_v2 }
 0x414   :  { %v9169_v43 = vpop.permute.xlu1 %2279  ;;  %v9171_v47 = vpop.permute.xlu0 %2233  ;;  %v1997_v17 = vsel %vm765_vm5, %v1981_v16, %v1704_v44  ;;  %v5244_v44 = vpack.c.bf16 %v4127_v60, %v4126_v29 }
 0x416   :  { %5245 = vmatprep.subr.bf16.mxu1 %v5244_v44 }
 0x417   :  { %3566 = vrot.lane.b32.xlu1 %v9177_v57, %s5493_s12  ;;  %5247 = vmatpush3.bf16.msra.mxu1 %v5244_v44 }
 0x418   :  { %v9184_v21 = vpop.permute.xlu1 %1705  ;;  %v2438_v39 = vpop.permute.xlu0 %2437 }
 0x419   :  { %v2588_v28 = vsel %vm816_vm8, %v2572_v33, %v2438_v39 }
 0x41a   :  { %5130 = vmatmul.mubr.msk.f32.gmra.mrb[12].mxu1 %vm2600_vm9, %v2588_v28 }
 0x41b   :  { %3818 = vrot.lane.b32.xlu1 %v9133_v23, %s5500_s14 }
 0x41c   :  { %v9190_v9 = vpop.permute.xlu1 %2093  ;;  %v1768_v12 = vpop.permute.xlu0 %1767 }
 0x41d   :  { %v2013_v28 = vsel %vm782_vm6, %v1997_v17, %v1768_v12  ;;  %v2477_v12 = vsel %vm697_vm1, %v8401_v3, %v8934_v6 }
 0x41e   :  { %v2493_v41 = vsel %vm714_vm2, %v2477_v12, %v8987_v37  ;;  %v4128_v37 = vld [vmem:[%s9928_s4 + $0x10] sm:$0xff] }
 0x41f   :  { %v2509_v3 = vsel %vm731_vm3, %v2493_v41, %v9046_v46 }
 0x420   :  { %v9192_v51 = vpop.permute.xlu1 %2281  ;;  %v9194_v53 = vpop.permute.xlu0 %2139  ;;  %v2525_v46 = vsel %vm748_vm4, %v2509_v3, %v9109_v14 }
 0x424   :  { %v1770_v62 = vpop.permute.xlu1 %1769  ;;  %v2328_v8 = vpop.permute.xlu0 %2327 }
 0x426   :  { %v5098_v36 = vpop.f32.mrb[34].mxu0 }
 0x427   :  { %v3033_v50 = vpop.f32.mrb[35].mxu0 }
 0x428   :  { %v9196_v31 = vpop.permute.xlu1 %2141  ;;  %v1832_v58 = vpop.permute.xlu0 %1831 }
 0x42c   :  { %v9198_v54 = vpop.permute.xlu1 %2329  ;;  %v9200_v25 = vpop.permute.xlu0 %2187 }
 0x42e   :  { %v5122_v0 = vpop.f32.mrb[6].mxu1 }
 0x42f   :  { %v3201_v1 = vmax.f32 %v5098_v36, %v5122_v0  ;;  %v3113_v4 = vpop.f32.mrb[7].mxu1  ;;  %v2029_v36 = vsel %vm799_vm7, %v2013_v28, %v1832_v58  ;;  %v5460_v58 = vld [vmem:[%s9924_s0 + $0x390] sm:$0xff] }
 0x430   :  { %v3200_v30 = vmax.f32 %v3033_v50, %v3113_v4  ;;  %v1834_v20 = vpop.permute.xlu1 %1833  ;;  %v2376_v32 = vpop.permute.xlu0 %2375  ;;  %v1934_v10 = vsel %vm697_vm1, %v5460_v58, %v8965_v13 }
 0x431   :  { %v3217_v33 = vmax.f32 %v10102_v56, %v3201_v1  ;;  %v1950_v1 = vsel %vm714_vm2, %v1934_v10, %v9013_v40  ;;  %v4129_v40 = vld [vmem:[%s9928_s4 + $0x18] sm:$0xff] }
 0x432   :  { %v3216_v39 = vmax.f32 %v10103_v22, %v3200_v30  ;;  %v1966_v6 = vsel %vm731_vm3, %v1950_v1, %v9087_v52  ;;  %v5248_v59 = vpack.c.bf16 %v4129_v40, %v4128_v37  ;;  %v2541_v30 = vsel %vm765_vm5, %v2525_v46, %v9169_v43  ;;  %v4131_v43 = vld [vmem:[%s9928_s4 + $0x28] sm:$0xff] }
 0x433   :  { %v3240_v19 = vadd.f32 %v9029_v55, %v3217_v33  ;;  %v1982_v52 = vsel %vm748_vm4, %v1966_v6, %v9141_v18  ;;  %v2557_v33 = vsel %vm782_vm6, %v2541_v30, %v2328_v8  ;;  %v4130_v18 = vld [vmem:[%s9928_s4 + $0x20] sm:$0xff] }
 0x434   :  { %v3239_v50 = vadd.f32 %v9029_v55, %v3216_v39  ;;  %v9224_v45 = vpop.permute.xlu1 %2189  ;;  %v1896_v2 = vpop.permute.xlu0 %1895  ;;  %v1998_v16 = vsel %vm765_vm5, %v1982_v52, %v9184_v21  ;;  %5249 = vmatprep.subr.bf16.mxu1 %v5248_v59  ;;  %v2573_v22 = vsel %vm799_vm7, %v2557_v33, %v2376_v32  ;;  %v5252_v8 = vpack.c.bf16 %v4131_v43, %v4130_v18 }
 0x435   :  { %v3256_v48 = vmax.f32 %v3240_v19, 0.0  ;;  %v2045_v11 = vsel %vm816_vm8, %v2029_v36, %v1896_v2  ;;  %v2014_v56 = vsel %vm782_vm6, %v1998_v16, %v1770_v62  ;;  %5251 = vmatpush3.bf16.msra.mxu1 %v5248_v59 }
 0x436   :  { %v3255_v0 = vmax.f32 %v3239_v50, 0.0  ;;  %5108 = vmatprep.mubr.msk.f32.mxu0 %vm2600_vm9, %v2045_v11  ;;  %v2030_v17 = vsel %vm799_vm7, %v2014_v56, %v1834_v20  ;;  %v2478_v20 = vsel %vm697_vm1, %v8452_v34, %v8989_v24  ;;  %5253 = vmatprep.subr.bf16.mxu1 %v5252_v8 }
 0x437   :  { %3324 = vst.msk [vmem:[#allocation2 + $0x41] sm:$0xff] %vm714_vm2, %v3256_v48  ;;  %v2494_v32 = vsel %vm714_vm2, %v2478_v20, %v9048_v61  ;;  %v4132_v61 = vld [vmem:[%s9928_s4 + $0x30] sm:$0xff] }
 0x438   :  { %3323 = vst.msk [vmem:[#allocation2 + $0x31] sm:$0xff] %vm714_vm2, %v3255_v0  ;;  %v2378_v13 = vpop.permute.xlu1 %2377  ;;  %v9252_v4 = vpop.permute.xlu0 %2235  ;;  %v2510_v36 = vsel %vm731_vm3, %v2494_v32, %v9111_v38  ;;  %v4133_v38 = vld [vmem:[%s9928_s4 + $0x38] sm:$0xff] }
 0x439   :  { %v2526_v50 = vsel %vm748_vm4, %v2510_v36, %v9171_v47  ;;  %5255 = vmatpush3.bf16.msra.mxu1 %v5252_v8  ;;  %v5256_v29 = vpack.c.bf16 %v4133_v38, %v4132_v61  ;;  %v5464_v38 = vld [vmem:[%s9924_s0 + $0x460] sm:$0xff] }
 0x43a   :  { %v2542_v2 = vsel %vm765_vm5, %v2526_v50, %v9192_v51 }
 0x43b   :  { %v2558_v60 = vsel %vm782_vm6, %v2542_v2, %v9198_v54  ;;  %5257 = vmatprep.subr.bf16.mxu1 %v5256_v29  ;;  %v4134_v54 = vld [vmem:[%s9928_s4 + $0x40] sm:$0xff] }
 0x43c   :  { %v1898_v14 = vpop.permute.xlu1 %1897  ;;  %v2440_v39 = vpop.permute.xlu0 %2439  ;;  %v2574_v48 = vsel %vm799_vm7, %v2558_v60, %v2378_v13  ;;  %v5461_v13 = vld [vmem:[%s9924_s0 + $0x430] sm:$0xff] }
 0x43d   :  { %v2046_v21 = vsel %vm816_vm8, %v2030_v17, %v1898_v14  ;;  %v2589_v62 = vsel %vm816_vm8, %v2573_v22, %v2440_v39  ;;  %5259 = vmatpush3.bf16.msra.mxu1 %v5256_v29  ;;  %v2479_v37 = vsel %vm697_vm1, %v5461_v13, %v9155_v27  ;;  %v5462_v22 = vld [vmem:[%s9924_s0 + $0x440] sm:$0xff] }
 0x43e   :  { %5109 = vmatmul.mubr.msk.f32.gmra.mrb[42].mxu0 %vm2600_vm9, %v2046_v21  ;;  %5132 = vmatprep.mubr.msk.f32.mxu1 %vm2600_vm9, %v2589_v62  ;;  %v9326_v0 = vld [vmem:[#allocation2 + $0x41] sm:$0xff]  ;;  %v2495_v40 = vsel %vm714_vm2, %v2479_v37, %v9194_v53 }
 0x43f   :  { %v9287_v28 = vld [vmem:[#allocation2 + $0x30] sm:$0xff]  ;;  %5157 = vmatprep.subr.mxu1 %v4134_v54  ;;  %v9328_v41 = vld [vmem:[#allocation2 + $0x40] sm:$0xff]  ;;  %v2511_v52 = vsel %vm731_vm3, %v2495_v40, %v9200_v25 }
 0x440   :  { %v3356_v19 = vld [vmem:[#allocation2 + $0x31] sm:$0xff]  ;;  %3630 = vrot.lane.b32.xlu1 %v9287_v28, %s5495_s11  ;;  %v9294_v34 = vpop.permute.xlu1 %2237  ;;  %v9296_v24 = vpop.permute.xlu0 %2095  ;;  %v9343_v46 = vld [vmem:[#allocation2 + $0x42] sm:$0xff]  ;;  %v2527_v16 = vsel %vm748_vm4, %v2511_v52, %v9252_v4  ;;  %v2480_v4 = vsel %vm697_vm1, %v5462_v22, %v9190_v9  ;;  %v10104_v52 = vmax.f32 %v6958_v26, %v7811_v49 }
 0x441   :  { %3504 = vrot.lane.b32.xlu0 %v3356_v19, %s5490_s17  ;;  %v3372_v51 = vld [vmem:[#allocation2 + $0x32] sm:$0xff]  ;;  %5158 = vmatpush3.msra.mxu1 %v4134_v54  ;;  %v2496_v14 = vsel %vm714_vm2, %v2480_v4, %v9196_v31 }
 0x442   :  { %v2512_v39 = vsel %vm731_vm3, %v2496_v14, %v9224_v45 }
 0x443   :  { %v2528_v21 = vsel %vm748_vm4, %v2512_v39, %v9294_v34  ;;  %v5463_v34 = vld [vmem:[%s9924_s0 + $0x450] sm:$0xff] }
 0x444   :  { %3882 = vrot.lane.b32.xlu1 %v9148_v42, %s5501_s27  ;;  %v2442_v47 = vpop.permute.xlu1 %2441  ;;  %v2284_v11 = vpop.permute.xlu0 %2283  ;;  %v2481_v61 = vsel %vm697_vm1, %v5463_v34, %v9296_v24 }
 0x445   :  { %3756 = vrot.lane.b32.xlu0 %v9177_v57, %s5499_s13  ;;  %v2590_v44 = vsel %vm816_vm8, %v2574_v48, %v2442_v47  ;;  %v2543_v27 = vsel %vm765_vm5, %v2527_v16, %v2284_v11 }
 0x446   :  { %5133 = vmatmul.mubr.msk.f32.gmra.mrb[14].mxu1 %vm2600_vm9, %v2590_v44 }
 0x448   :  { %3694 = vrot.lane.b32.xlu1 %v3356_v19, %s5497_s2  ;;  %v2144_v42 = vpop.permute.xlu1 %2143  ;;  %v2098_v12 = vpop.permute.xlu0 %2097 }
 0x449   :  { %3568 = vrot.lane.b32.xlu0 %v3372_v51, %s5493_s12  ;;  %v2482_v2 = vsel %vm697_vm1, %v5464_v38, %v2098_v12  ;;  %v2497_v29 = vsel %vm714_vm2, %v2481_v61, %v2144_v42  ;;  %v3337_v61 = vld [vmem:[#allocation2] sm:$0xff]  ;;  %v10106_v38 = vld [vmem:[#allocation23_spill] sm:$0xff]  ;;  %vm5504_vm1 = vmmov 0  }
 0x44c   :  { %3946 = vrot.lane.b32.xlu1 %v9177_v57, %s5502_s23  ;;  %v2332_v58 = vpop.permute.xlu1 %2331  ;;  %v2286_v10 = vpop.permute.xlu0 %2285 }
 0x44d   :  { %3820 = vrot.lane.b32.xlu0 %v9287_v28, %s5500_s14  ;;  %v2559_v53 = vsel %vm782_vm6, %v2543_v27, %v2332_v58  ;;  %v2544_v62 = vsel %vm765_vm5, %v2528_v21, %v2286_v10  ;;  %v10105_v27 = vmax.f32 %v6964_v35, %v7821_v7 }
 0x450   :  { %3696 = vrot.lane.b32.xlu1 %v9326_v0, %s5497_s2  ;;  %v2192_v1 = vpop.permute.xlu1 %2191  ;;  %v2146_v3 = vpop.permute.xlu0 %2145 }
 0x451   :  { %3632 = vrot.lane.b32.xlu0 %v9328_v41, %s5495_s11  ;;  %v2498_v60 = vsel %vm714_vm2, %v2482_v2, %v2146_v3  ;;  %v2513_v48 = vsel %vm731_vm3, %v2497_v29, %v2192_v1  ;;  %v10107_v2 = vmax.f32 %v7056_v15, %v10106_v38 }
 0x454   :  { %3948 = vrot.lane.b32.xlu1 %v3372_v51, %s5502_s23  ;;  %v2380_v57 = vpop.permute.xlu1 %2379  ;;  %v2334_v6 = vpop.permute.xlu0 %2333 }
 0x455   :  { %3884 = vrot.lane.b32.xlu0 %v3356_v19, %s5501_s27  ;;  %v2575_v56 = vsel %vm799_vm7, %v2559_v53, %v2380_v57  ;;  %v2560_v8 = vsel %vm782_vm6, %v2544_v62, %v2334_v6 }
 0x458   :  { %3570 = vrot.lane.b32.xlu1 %v9343_v46, %s5493_s12  ;;  %v2240_v59 = vpop.permute.xlu1 %2239  ;;  %v2194_v30 = vpop.permute.xlu0 %2193 }
 0x459   :  { %3506 = vrot.lane.b32.xlu0 %v9326_v0, %s5490_s17  ;;  %v2514_v47 = vsel %vm731_vm3, %v2498_v60, %v2194_v30  ;;  %v10108_v60 = vld [vmem:[#allocation7_spill] sm:$0xff] }
 0x45c   :  { %3822 = vrot.lane.b32.xlu1 %v9328_v41, %s5500_s14  ;;  %v2444_v25 = vpop.permute.xlu1 %2443  ;;  %v2382_v33 = vpop.permute.xlu0 %2381 }
 0x45d   :  { %3758 = vrot.lane.b32.xlu0 %v3372_v51, %s5499_s13  ;;  %v2591_v17 = vsel %vm816_vm8, %v2575_v56, %v2444_v25  ;;  %v2576_v20 = vsel %vm799_vm7, %v2560_v8, %v2382_v33  ;;  %v2529_v51 = vsel %vm748_vm4, %v2513_v48, %v2240_v59  ;;  %v10109_v48 = vld [vmem:[#allocation21_spill] sm:$0xff] }
 0x45e   :  { %5135 = vmatprep.mubr.msk.f32.mxu1 %vm2600_vm9, %v2591_v17 }
 0x460   :  { %v2288_v18 = vpop.permute.xlu1 %2287  ;;  %v2242_v43 = vpop.permute.xlu0 %2241 }
 0x461   :  { %v2530_v24 = vsel %vm748_vm4, %v2514_v47, %v2242_v43  ;;  %v2545_v54 = vsel %vm765_vm5, %v2529_v51, %v2288_v18  ;;  %v10110_v47 = vmax.f32 %v10108_v60, %v10109_v48 }
 0x464   :  { %v2290_v9 = vpop.permute.xlu1 %2289  ;;  %v2446_v32 = vpop.permute.xlu0 %2445 }
 0x465   :  { %v2592_v19 = vsel %vm816_vm8, %v2576_v20, %v2446_v32  ;;  %v2546_v58 = vsel %vm765_vm5, %v2530_v24, %v2290_v9 }
 0x466   :  { %v5101_v36 = vpop.f32.mrb[36].mxu0  ;;  %5136 = vmatmul.mubr.msk.f32.gmra.mrb[16].mxu1 %vm2600_vm9, %v2592_v19 }
 0x467   :  { %v3043_v31 = vpop.f32.mrb[37].mxu0 }
 0x468   :  { %v2338_v45 = vpop.permute.xlu1 %2337  ;;  %v2336_v50 = vpop.permute.xlu0 %2335 }
 0x469   :  { %v2562_v12 = vsel %vm782_vm6, %v2546_v58, %v2338_v45  ;;  %v2561_v42 = vsel %vm782_vm6, %v2545_v54, %v2336_v50 }
 0x46c   :  { %v2386_v11 = vpop.permute.xlu1 %2385  ;;  %v2384_v44 = vpop.permute.xlu0 %2383 }
 0x46d   :  { %v2578_v1 = vsel %vm799_vm7, %v2562_v12, %v2386_v11  ;;  %v2577_v6 = vsel %vm799_vm7, %v2561_v42, %v2384_v44 }
 0x46e   :  { %v5125_v10 = vpop.f32.mrb[8].mxu1 }
 0x46f   :  { %v3203_v3 = vmax.f32 %v5101_v36, %v5125_v10  ;;  %v3123_v57 = vpop.f32.mrb[9].mxu1 }
 0x470   :  { %v3202_v13 = vmax.f32 %v3043_v31, %v3123_v57  ;;  %v2450_v37 = vpop.permute.xlu1 %2449  ;;  %v2448_v40 = vpop.permute.xlu0 %2447 }
 0x471   :  { %v3219_v59 = vmax.f32 %v10104_v52, %v3203_v3  ;;  %v2594_v30 = vsel %vm816_vm8, %v2578_v1, %v2450_v37  ;;  %v2593_v16 = vsel %vm816_vm8, %v2577_v6, %v2448_v40 }
 0x472   :  { %v3218_v53 = vmax.f32 %v10105_v27, %v3202_v13  ;;  %5138 = vmatprep.mubr.msk.f32.mxu1 %vm2600_vm9, %v2593_v16 }
 0x473   :  { %v3242_v56 = vadd.f32 %v9029_v55, %v3219_v59  ;;  %5139 = vmatmul.mubr.msk.f32.gmra.mrb[18].mxu1 %vm2600_vm9, %v2594_v30 }
 0x474   :  { %v3241_v25 = vadd.f32 %v9029_v55, %v3218_v53 }
 0x475   :  { %v3258_v33 = vmax.f32 %v3242_v56, 0.0  ;;  %v9423_v7 = vpop.permute.xlu1 %3500 }
 0x476   :  { %v3257_v17 = vmax.f32 %v3241_v25, 0.0  ;;  %v3995_v56 = vsel %vm714_vm2, %v9123_v63, %v9423_v7 }
 0x477   :  { %3326 = vst.msk [vmem:[#allocation2 + $0x61] sm:$0xff] %vm714_vm2, %v3258_v33 }
 0x478   :  { %3325 = vst.msk [vmem:[#allocation2 + $0x51] sm:$0xff] %vm714_vm2, %v3257_v17 }
 0x47e   :  { %v9429_v22 = vld [vmem:[#allocation2 + $0x61] sm:$0xff] }
 0x47f   :  { %v9412_v26 = vld [vmem:[#allocation2 + $0x50] sm:$0xff]  ;;  %v9431_v4 = vld [vmem:[#allocation2 + $0x60] sm:$0xff] }
 0x480   :  { %v3358_v49 = vld [vmem:[#allocation2 + $0x51] sm:$0xff]  ;;  %3634 = vrot.lane.b32.xlu1 %v9412_v26, %s5495_s11  ;;  %v9441_v39 = vld [vmem:[#allocation2 + $0x62] sm:$0xff] }
 0x481   :  { %3508 = vrot.lane.b32.xlu0 %v3358_v49, %s5490_s17  ;;  %v3374_v35 = vld [vmem:[#allocation2 + $0x52] sm:$0xff] }
 0x484   :  { %3886 = vrot.lane.b32.xlu1 %v9326_v0, %s5501_s27  ;;  %v9433_v0 = vpop.permute.xlu1 %3564 }
 0x485   :  { %3760 = vrot.lane.b32.xlu0 %v9343_v46, %s5499_s13  ;;  %v4011_v25 = vsel %vm748_vm4, %v3995_v56, %v9433_v0 }
 0x488   :  { %3698 = vrot.lane.b32.xlu1 %v3358_v49, %s5497_s2  ;;  %v3629_v14 = vpop.permute.xlu1 %3628 }
 0x489   :  { %3572 = vrot.lane.b32.xlu0 %v3374_v35, %s5493_s12 }
 0x48c   :  { %3950 = vrot.lane.b32.xlu1 %v9343_v46, %s5502_s23  ;;  %v3499_v46 = vpop.permute.xlu0 %3498  ;;  %v9447_v43 = vpop.permute.xlu1 %3502 }
 0x48d   :  { %3824 = vrot.lane.b32.xlu0 %v9412_v26, %s5500_s14  ;;  %v3994_v54 = vsel %vm714_vm2, %v3337_v61, %v3499_v46 }
 0x490   :  { %3700 = vrot.lane.b32.xlu1 %v9429_v22, %s5497_s2  ;;  %v3563_v18 = vpop.permute.xlu0 %3562  ;;  %v3755_v62 = vpop.permute.xlu1 %3754 }
 0x491   :  { %3636 = vrot.lane.b32.xlu0 %v9431_v4, %s5495_s11  ;;  %v4010_v15 = vsel %vm748_vm4, %v3994_v54, %v3563_v18 }
 0x494   :  { %3952 = vrot.lane.b32.xlu1 %v3374_v35, %s5502_s23  ;;  %v3627_v21 = vpop.permute.xlu0 %3626  ;;  %v9452_v32 = vpop.permute.xlu1 %3566 }
 0x495   :  { %3888 = vrot.lane.b32.xlu0 %v3358_v49, %s5501_s27  ;;  %v4026_v57 = vsel %vm782_vm6, %v4010_v15, %v3627_v21  ;;  %v4027_v49 = vsel %vm782_vm6, %v4011_v25, %v3629_v14 }
 0x498   :  { %3574 = vrot.lane.b32.xlu1 %v9441_v39, %s5493_s12  ;;  %v3691_v20 = vpop.permute.xlu0 %3690  ;;  %v3819_v36 = vpop.permute.xlu1 %3818 }
 0x499   :  { %3510 = vrot.lane.b32.xlu0 %v9429_v22, %s5490_s17  ;;  %v4042_v13 = vsel %vm816_vm8, %v4026_v57, %v3691_v20  ;;  %v3361_v20 = vld [vmem:[#allocation2 + $0xa1] sm:$0xff]  ;;  %v3996_v57 = vsel %vm714_vm2, %v9133_v23, %v9447_v43 }
 0x49a   :  { %v4059_v37 = vsel %vm4058_vm12, %v4042_v13, %v3755_v62 }
 0x49b   :  { %v4076_v40 = vsel %vm4075_vm13, %v4059_v37, %v3819_v36 }
 0x49c   :  { %3826 = vrot.lane.b32.xlu1 %v9431_v4, %s5500_s14  ;;  %v3693_v19 = vpop.permute.xlu0 %3692 }
 0x49d   :  { %3762 = vrot.lane.b32.xlu0 %v3374_v35, %s5499_s13  ;;  %v4043_v35 = vsel %vm816_vm8, %v4027_v49, %v3693_v19 }
 0x4a6   :  { %v5104_v8 = vpop.f32.mrb[38].mxu0 }
 0x4a7   :  { %v3053_v9 = vpop.f32.mrb[39].mxu0 }
 0x4ae   :  { %v5128_v31 = vpop.f32.mrb[10].mxu1 }
 0x4af   :  { %v3205_v45 = vmax.f32 %v5104_v8, %v5128_v31  ;;  %v3133_v50 = vpop.f32.mrb[11].mxu1  ;;  %v3377_v8 = vld [vmem:[#allocation2 + $0xa2] sm:$0xff] }
 0x4b0   :  { %v3204_v34 = vmax.f32 %v3053_v9, %v3133_v50 }
 0x4b1   :  { %v3221_v29 = vmax.f32 %v10107_v2, %v3205_v45  ;;  %v10111_v2 = vld [vmem:[#allocation10_spill] sm:$0xff] }
 0x4b2   :  { %v3220_v11 = vmax.f32 %v10110_v47, %v3204_v34  ;;  %v9460_v44 = vpop.permute.xlu1 %3630  ;;  %v10114_v47 = vld [vmem:[#allocation9_spill] sm:$0xff] }
 0x4b3   :  { %v9462_v51 = vpop.permute.xlu0 %3504  ;;  %v3244_v24 = vadd.f32 %v9029_v55, %v3221_v29  ;;  %v10112_v29 = vld [vmem:[#allocation25_spill] sm:$0xff] }
 0x4b4   :  { %v3243_v58 = vadd.f32 %v9029_v55, %v3220_v11  ;;  %v10113_v60 = vmax.f32 %v10111_v2, %v10112_v29  ;;  %v10115_v11 = vld [vmem:[#allocation24_spill] sm:$0xff] }
 0x4b5   :  { %v3260_v10 = vmax.f32 %v3244_v24, 0.0  ;;  %v10116_v24 = vmax.f32 %v10114_v47, %v10115_v11  ;;  %v3457_v2 = vld [vmem:[#allocation2 + $0x91] sm:$0xff] }
 0x4b6   :  { %v3259_v12 = vmax.f32 %v3243_v58, 0.0  ;;  %v3883_v42 = vpop.permute.xlu1 %3882 }
 0x4b7   :  { %v3757_v3 = vpop.permute.xlu0 %3756  ;;  %3328 = vst.msk [vmem:[#allocation2 + $0x81] sm:$0xff] %vm714_vm2, %v3260_v10  ;;  %v4093_v52 = vsel %vm4092_vm14, %v4076_v40, %v3883_v42 }
 0x4b8   :  { %3327 = vst.msk [vmem:[#allocation2 + $0x71] sm:$0xff] %vm714_vm2, %v3259_v12  ;;  %v4060_v46 = vsel %vm4058_vm12, %v4043_v35, %v3757_v3 }
 0x4ba   :  { %v9471_v1 = vpop.permute.xlu1 %3694 }
 0x4bb   :  { %v9473_v6 = vpop.permute.xlu0 %3568 }
 0x4be   :  { %v3947_v59 = vpop.permute.xlu1 %3946  ;;  %v3392_v62 = vld [vmem:[#allocation2 + $0x80] sm:$0xff] }
 0x4bf   :  { %v3821_v30 = vpop.permute.xlu0 %3820  ;;  %v4110_v16 = vsel %vm4109_vm15, %v4093_v52, %v3947_v59  ;;  %v9480_v27 = vld [vmem:[#allocation2 + $0x70] sm:$0xff]  ;;  %v4012_v52 = vsel %vm748_vm4, %v3996_v57, %v9452_v32 }
 0x4c0   :  { %v3360_v53 = vld [vmem:[#allocation2 + $0x71] sm:$0xff]  ;;  %5159 = vmatprep.mubr.msk.f32.mxu1 %vm4142_vm0, %v4110_v16  ;;  %3638 = vrot.lane.b32.xlu1 %v9480_v27, %s5495_s11  ;;  %v4077_v63 = vsel %vm4075_vm13, %v4060_v46, %v3821_v30  ;;  %v4028_v59 = vsel %vm782_vm6, %v4012_v52, %v9460_v44  ;;  %v3997_v46 = vsel %vm714_vm2, %v9287_v28, %v9462_v51 }
 0x4c1   :  { %3512 = vrot.lane.b32.xlu0 %v3360_v53, %s5490_s17  ;;  %v3376_v14 = vld [vmem:[#allocation2 + $0x72] sm:$0xff]  ;;  %v4044_v30 = vsel %vm816_vm8, %v4028_v59, %v9471_v1  ;;  %v5503_v59 = vmov 0.0|0.0  }
 0x4c2   :  { %v9491_v33 = vpop.permute.xlu1 %3696  ;;  %5260 = vmatprep.subr.bf16.mxu1 %v5503_v59 }
 0x4c3   :  { %v9493_v17 = vpop.permute.xlu0 %3632 }
 0x4c4   :  { %3890 = vrot.lane.b32.xlu1 %v9429_v22, %s5501_s27  ;;  %v9512_v22 = vld [vmem:[#allocation2 + $0x81] sm:$0xff] }
 0x4c5   :  { %3764 = vrot.lane.b32.xlu0 %v9441_v39, %s5499_s13 }
 0x4c6   :  { %v3949_v7 = vpop.permute.xlu1 %3948 }
 0x4c7   :  { %v3885_v0 = vpop.permute.xlu0 %3884 }
 0x4c8   :  { %v4094_v18 = vsel %vm4092_vm14, %v4077_v63, %v3885_v0  ;;  %3702 = vrot.lane.b32.xlu1 %v3360_v53, %s5497_s2 }
 0x4c9   :  { %v4111_v21 = vsel %vm4109_vm15, %v4094_v18, %v3949_v7  ;;  %3576 = vrot.lane.b32.xlu0 %v3376_v14, %s5493_s12  ;;  %v4013_v7 = vsel %vm748_vm4, %v3997_v46, %v9473_v6  ;;  %v10123_v46 = vld [vmem:[#allocation30_spill] sm:$0xff] }
 0x4ca   :  { %5160 = vmatmul.mubr.msk.f32.vlgmr.msra.gmra.mrb[20].mxu1 %vm4142_vm0, %v4111_v21  ;;  %v3571_v19 = vpop.permute.xlu1 %3570  ;;  %v4029_v0 = vsel %vm782_vm6, %v4013_v7, %v9493_v17 }
 0x4cb   :  { %v3507_v36 = vpop.permute.xlu0 %3506  ;;  %v4045_v6 = vsel %vm816_vm8, %v4029_v0, %v9491_v33 }
 0x4cc   :  { %3954 = vrot.lane.b32.xlu1 %v9441_v39, %s5502_s23  ;;  %v3998_v13 = vsel %vm714_vm2, %v9328_v41, %v3507_v36  ;;  %v3441_v36 = vld [vmem:[#allocation2 + $0x90] sm:$0xff] }
 0x4cd   :  { %3828 = vrot.lane.b32.xlu0 %v9480_v27, %s5500_s14  ;;  %v4014_v23 = vsel %vm748_vm4, %v3998_v13, %v3571_v19 }
 0x4ce   :  { %v3823_v31 = vpop.permute.xlu1 %3822 }
 0x4cf   :  { %v3759_v50 = vpop.permute.xlu0 %3758 }
 0x4d0   :  { %3704 = vrot.lane.b32.xlu1 %v9512_v22, %s5497_s2  ;;  %v4061_v43 = vsel %vm4058_vm12, %v4044_v30, %v3759_v50 }
 0x4d1   :  { %3640 = vrot.lane.b32.xlu0 %v3392_v62, %s5495_s11  ;;  %v4078_v32 = vsel %vm4075_vm13, %v4061_v43, %v3823_v31 }
 0x4d4   :  { %3956 = vrot.lane.b32.xlu1 %v3376_v14, %s5502_s23 }
 0x4d5   :  { %3892 = vrot.lane.b32.xlu0 %v3360_v53, %s5501_s27 }
 0x4d8   :  { %3578 = vrot.lane.b32.xlu1 %v3377_v8, %s5493_s12 }
 0x4d9   :  { %3514 = vrot.lane.b32.xlu0 %v3361_v20, %s5490_s17 }
 0x4dc   :  { %3830 = vrot.lane.b32.xlu1 %v3392_v62, %s5500_s14 }
 0x4dd   :  { %3766 = vrot.lane.b32.xlu0 %v3376_v14, %s5499_s13  ;;  %v3424_v14 = vld [vmem:[#allocation2 + $0x82] sm:$0xff] }
 0x4e5   :  { %v5107_v39 = vpop.f32.mrb[40].mxu0 }
 0x4e6   :  { %v3063_v9 = vpop.f32.mrb[41].mxu0 }
 0x4ed   :  { %v5131_v45 = vpop.f32.mrb[12].mxu1 }
 0x4ee   :  { %v3207_v34 = vmax.f32 %v5107_v39, %v5131_v45  ;;  %v3143_v61 = vpop.f32.mrb[13].mxu1 }
 0x4ef   :  { %v3206_v38 = vmax.f32 %v3063_v9, %v3143_v61 }
 0x4f0   :  { %v3223_v48 = vmax.f32 %v10113_v60, %v3207_v34 }
 0x4f1   :  { %v3222_v54 = vmax.f32 %v10116_v24, %v3206_v38  ;;  %v3473_v38 = vld [vmem:[#allocation2 + $0x92] sm:$0xff] }
 0x4f2   :  { %v3246_v58 = vadd.f32 %v9029_v55, %v3223_v48  ;;  %v3635_v10 = vpop.permute.xlu1 %3634 }
 0x4f3   :  { %v3509_v12 = vpop.permute.xlu0 %3508  ;;  %v3245_v42 = vadd.f32 %v9029_v55, %v3222_v54  ;;  %v4030_v41 = vsel %vm782_vm6, %v4014_v23, %v3635_v10  ;;  %v10117_v54 = vld [vmem:[#allocation6_spill] sm:$0xff] }
 0x4f4   :  { %v3262_v3 = vmax.f32 %v3246_v58, 0.0  ;;  %v3999_v18 = vsel %vm714_vm2, %v9412_v26, %v3509_v12  ;;  %v10118_v58 = vld [vmem:[#allocation26_spill] sm:$0xff] }
 0x4f5   :  { %v3261_v15 = vmax.f32 %v3245_v42, 0.0  ;;  %v10119_v10 = vmax.f32 %v10117_v54, %v10118_v58  ;;  %v10120_v42 = vld [vmem:[#allocation12_spill] sm:$0xff] }
 0x4f6   :  { %3330 = vst.msk [vmem:[#allocation2 + $0xc1] sm:$0xff] %vm714_vm2, %v3262_v3  ;;  %v3887_v37 = vpop.permute.xlu1 %3886  ;;  %v10121_v3 = vld [vmem:[#allocation27_spill] sm:$0xff] }
 0x4f7   :  { %v3761_v40 = vpop.permute.xlu0 %3760  ;;  %3329 = vst.msk [vmem:[#allocation2 + $0xb1] sm:$0xff] %vm714_vm2, %v3261_v15  ;;  %v4095_v25 = vsel %vm4092_vm14, %v4078_v32, %v3887_v37  ;;  %v10122_v15 = vmax.f32 %v10120_v42, %v10121_v3  ;;  %v10131_v3 = vld [vmem:[#allocation33_spill] sm:$0xff] }
 0x4f8   :  { %v4062_v26 = vsel %vm4058_vm12, %v4045_v6, %v3761_v40  ;;  %v10126_v6 = vld [vmem:[#allocation29_spill] sm:$0xff] }
 0x4fa   :  { %v3699_v16 = vpop.permute.xlu1 %3698 }
 0x4fb   :  { %v3573_v53 = vpop.permute.xlu0 %3572  ;;  %v9548_v56 = vsel %vm816_vm8, %v4030_v41, %v3699_v16 }
 0x4fc   :  { %v4015_v28 = vsel %vm748_vm4, %v3999_v18, %v3573_v53 }
 0x4fd   :  { %v3410_v34 = vld [vmem:[#allocation2 + $0xc1] sm:$0xff] }
 0x4fe   :  { %v3951_v49 = vpop.permute.xlu1 %3950  ;;  %v9552_v35 = vld [vmem:[#allocation2 + $0xb0] sm:$0xff]  ;;  %v9590_v61 = vld [vmem:[#allocation2 + $0xc0] sm:$0xff] }
 0x4ff   :  { %v3825_v44 = vpop.permute.xlu0 %3824  ;;  %v3362_v1 = vld [vmem:[#allocation2 + $0xb1] sm:$0xff]  ;;  %v4112_v63 = vsel %vm4109_vm15, %v4095_v25, %v3951_v49  ;;  %3642 = vrot.lane.b32.xlu1 %v9552_v35, %s5495_s11 }
 0x500   :  { %3516 = vrot.lane.b32.xlu0 %v3362_v1, %s5490_s17  ;;  %5162 = vmatprep.mubr.msk.f32.mxu1 %vm4142_vm0, %v4112_v63  ;;  %v4079_v8 = vsel %vm4075_vm13, %v4062_v26, %v3825_v44  ;;  %v3378_v9 = vld [vmem:[#allocation2 + $0xb2] sm:$0xff] }
 0x502   :  { %v3701_v51 = vpop.permute.xlu1 %3700 }
 0x503   :  { %v3637_v21 = vpop.permute.xlu0 %3636  ;;  %3894 = vrot.lane.b32.xlu1 %v9512_v22, %s5501_s27 }
 0x504   :  { %v4031_v62 = vsel %vm782_vm6, %v4015_v28, %v3637_v21  ;;  %3768 = vrot.lane.b32.xlu0 %v3424_v14, %s5499_s13 }
 0x505   :  { %v9576_v17 = vsel %vm816_vm8, %v4031_v62, %v3701_v51 }
 0x506   :  { %v3953_v20 = vpop.permute.xlu1 %3952 }
 0x507   :  { %v3889_v39 = vpop.permute.xlu0 %3888  ;;  %3706 = vrot.lane.b32.xlu1 %v3362_v1, %s5497_s2 }
 0x508   :  { %v4096_v19 = vsel %vm4092_vm14, %v4079_v8, %v3889_v39  ;;  %3580 = vrot.lane.b32.xlu0 %v3378_v9, %s5493_s12 }
 0x509   :  { %v4113_v22 = vsel %vm4109_vm15, %v4096_v19, %v3953_v20  ;;  %v10129_v19 = vld [vmem:[#allocation22_spill] sm:$0xff] }
 0x50a   :  { %5163 = vmatmul.mubr.msk.f32.gmra.mrb[22].mxu1 %vm4142_vm0, %v4113_v22  ;;  %v3575_v33 = vpop.permute.xlu1 %3574 }
 0x50b   :  { %v3511_v31 = vpop.permute.xlu0 %3510  ;;  %3958 = vrot.lane.b32.xlu1 %v3424_v14, %s5502_s23  ;;  %v10124_v14 = vld [vmem:[#allocation31_spill] sm:$0xff] }
 0x50c   :  { %v4000_v45 = vsel %vm714_vm2, %v9431_v4, %v3511_v31  ;;  %3832 = vrot.lane.b32.xlu0 %v3441_v36, %s5500_s14  ;;  %v3379_v4 = vld [vmem:[#allocation2 + $0xc2] sm:$0xff] }
 0x50d   :  { %v4016_v50 = vsel %vm748_vm4, %v4000_v45, %v3575_v33  ;;  %v5465_v33 = vld [vmem:[%s9927_s3] ss:$0 sm:$0xff] }
 0x50e   :  { %v3827_v43 = vpop.permute.xlu1 %3826 }
 0x50f   :  { %3708 = vrot.lane.b32.xlu1 %v3410_v34, %s5497_s2  ;;  %v3763_v41 = vpop.permute.xlu0 %3762 }
 0x510   :  { %3644 = vrot.lane.b32.xlu0 %v9590_v61, %s5495_s11  ;;  %v4063_v1 = vsel %vm4058_vm12, %v9548_v56, %v3763_v41  ;;  %v10125_v56 = vld [vmem:[#allocation16_spill] sm:$0xff] }
 0x511   :  { %v5110_v29 = vpop.f32.mrb[42].mxu0  ;;  %v10127_v26 = vmax.f32 %v10125_v56, %v10126_v6  ;;  %v4080_v39 = vsel %vm4075_vm13, %v4063_v1, %v3827_v43 }
 0x512   :  { %v3073_v60 = vpop.f32.mrb[43].mxu0 }
 0x513   :  { %3960 = vrot.lane.b32.xlu1 %v3473_v38, %s5502_s23 }
 0x514   :  { %3896 = vrot.lane.b32.xlu0 %v3457_v2, %s5501_s27 }
 0x517   :  { %3582 = vrot.lane.b32.xlu1 %v3379_v4, %s5493_s12 }
 0x518   :  { %3518 = vrot.lane.b32.xlu0 %v3410_v34, %s5490_s17 }
 0x519   :  { %v5134_v48 = vpop.f32.mrb[14].mxu1 }
 0x51a   :  { %v3209_v47 = vmax.f32 %v5110_v29, %v5134_v48  ;;  %v3153_v11 = vpop.f32.mrb[15].mxu1 }
 0x51b   :  { %v3208_v24 = vmax.f32 %v3073_v60, %v3153_v11  ;;  %3834 = vrot.lane.b32.xlu1 %v9590_v61, %s5500_s14 }
 0x51c   :  { %3770 = vrot.lane.b32.xlu0 %v3378_v9, %s5499_s13  ;;  %v3225_v12 = vmax.f32 %v10119_v10, %v3209_v47  ;;  %v10128_v9 = vld [vmem:[#allocation14_spill] sm:$0xff] }
 0x51d   :  { %v3224_v57 = vmax.f32 %v10122_v15, %v3208_v24 }
 0x51e   :  { %v3248_v13 = vadd.f32 %v9029_v55, %v3225_v12 }
 0x51f   :  { %v3247_v37 = vadd.f32 %v9029_v55, %v3224_v57  ;;  %v10132_v57 = vld [vmem:[#allocation15_spill] sm:$0xff] }
 0x520   :  { %v3264_v40 = vmax.f32 %v3248_v13, 0.0  ;;  %v10133_v13 = vld [vmem:[#allocation28_spill] sm:$0xff] }
 0x521   :  { %v3263_v52 = vmax.f32 %v3247_v37, 0.0 }
 0x522   :  { %3332 = vst.msk [vmem:[#allocation2 + $0xe1] sm:$0xff] %vm714_vm2, %v3264_v40 }
 0x523   :  { %3331 = vst.msk [vmem:[#allocation2 + $0xd1] sm:$0xff] %vm714_vm2, %v3263_v52  ;;  %v10135_v52 = vld [vmem:[#allocation18_spill] sm:$0xff] }
 0x529   :  { %v3412_v18 = vld [vmem:[#allocation2 + $0xe1] sm:$0xff] }
 0x52a   :  { %v9613_v30 = vld [vmem:[#allocation2 + $0xd0] sm:$0xff]  ;;  %v9633_v28 = vld [vmem:[#allocation2 + $0xe0] sm:$0xff] }
 0x52b   :  { %v3364_v23 = vld [vmem:[#allocation2 + $0xd1] sm:$0xff]  ;;  %3646 = vrot.lane.b32.xlu1 %v9613_v30, %s5495_s11 }
 0x52c   :  { %3520 = vrot.lane.b32.xlu0 %v3364_v23, %s5490_s17  ;;  %v3380_v16 = vld [vmem:[#allocation2 + $0xd2] sm:$0xff] }
 0x52f   :  { %3898 = vrot.lane.b32.xlu1 %v3410_v34, %s5501_s27 }
 0x530   :  { %3772 = vrot.lane.b32.xlu0 %v3379_v4, %s5499_s13 }
 0x532   :  { %v3639_v55 = vpop.permute.xlu1 %3638 }
 0x533   :  { %v9621_v53 = vsel %vm782_vm6, %v4016_v50, %v3639_v55  ;;  %v3513_v32 = vpop.permute.xlu0 %3512  ;;  %3710 = vrot.lane.b32.xlu1 %v3364_v23, %s5497_s2 }
 0x534   :  { %3584 = vrot.lane.b32.xlu0 %v3380_v16, %s5493_s12  ;;  %v4001_v51 = vsel %vm714_vm2, %v9480_v27, %v3513_v32  ;;  %v10130_v27 = vmax.f32 %v10128_v9, %v10129_v19 }
 0x536   :  { %v3891_v25 = vpop.permute.xlu1 %3890 }
 0x537   :  { %v3765_v49 = vpop.permute.xlu0 %3764  ;;  %3962 = vrot.lane.b32.xlu1 %v3379_v4, %s5502_s23  ;;  %v4097_v36 = vsel %vm4092_vm14, %v4080_v39, %v3891_v25  ;;  %v3381_v4 = vld [vmem:[#allocation2 + $0xe2] sm:$0xff] }
 0x538   :  { %3836 = vrot.lane.b32.xlu0 %v9613_v30, %s5500_s14  ;;  %v4064_v47 = vsel %vm4058_vm12, %v9576_v17, %v3765_v49  ;;  %v10134_v17 = vmax.f32 %v10132_v57, %v10133_v13  ;;  %v9765_v13 = vld [vmem:[%s9929_s5] ss:$0 sm:$0xff] }
 0x539   :  { %v5137_v44 = vpop.f32.mrb[16].mxu1 }
 0x53a   :  { %v3211_v63 = vmax.f32 %v10123_v46, %v5137_v44  ;;  %v9631_v7 = vpop.permute.xlu1 %3702  ;;  %v3163_v0 = vpop.f32.mrb[17].mxu1 }
 0x53b   :  { %v3577_v21 = vpop.permute.xlu0 %3576  ;;  %v3210_v62 = vmax.f32 %v10124_v14, %v3163_v0  ;;  %3712 = vrot.lane.b32.xlu1 %v3412_v18, %s5497_s2  ;;  %v4048_v9 = vsel %vm816_vm8, %v9621_v53, %v9631_v7  ;;  %v3449_v7 = vld [vmem:[#allocation2 + $0x130] sm:$0xff] }
 0x53c   :  { %3648 = vrot.lane.b32.xlu0 %v9633_v28, %s5495_s11  ;;  %v3227_v8 = vmax.f32 %v10127_v26, %v3211_v63  ;;  %v9645_v20 = vsel %vm748_vm4, %v4001_v51, %v3577_v21 }
 0x53d   :  { %v3226_v22 = vmax.f32 %v10130_v27, %v3210_v62 }
 0x53e   :  { %v3250_v31 = vadd.f32 %v5465_v33, %v3227_v8  ;;  %v3955_v45 = vpop.permute.xlu1 %3954 }
 0x53f   :  { %v3249_v50 = vadd.f32 %v5465_v33, %v3226_v22  ;;  %v4114_v34 = vsel %vm4109_vm15, %v4097_v36, %v3955_v45  ;;  %v3829_v38 = vpop.permute.xlu0 %3828  ;;  %3964 = vrot.lane.b32.xlu1 %v3380_v16, %s5502_s23 }
 0x540   :  { %3900 = vrot.lane.b32.xlu0 %v3364_v23, %s5501_s27  ;;  %v3266_v2 = vmax.f32 %v3250_v31, 0.0  ;;  %5165 = vmatprep.mubr.msk.f32.mxu1 %vm4142_vm0, %v4114_v34  ;;  %v4081_v54 = vsel %vm4075_vm13, %v4064_v47, %v3829_v38  ;;  %v10136_v23 = vld [vmem:[#allocation32_spill] sm:$0xff] }
 0x541   :  { %v3265_v29 = vmax.f32 %v3249_v50, 0.0  ;;  %v10137_v43 = vmax.f32 %v10135_v52, %v10136_v23 }
 0x542   :  { %3334 = vst.msk [vmem:[#allocation2 + $0x101] sm:$0xff] %vm714_vm2, %v3266_v2  ;;  %v9660_v60 = vpop.permute.xlu1 %3704 }
 0x543   :  { %3333 = vst.msk [vmem:[#allocation2 + $0xf1] sm:$0xff] %vm714_vm2, %v3265_v29  ;;  %v9663_v48 = vpop.permute.xlu0 %3640  ;;  %3586 = vrot.lane.b32.xlu1 %v3381_v4, %s5493_s12 }
 0x544   :  { %3522 = vrot.lane.b32.xlu0 %v3412_v18, %s5490_s17  ;;  %v4033_v53 = vsel %vm782_vm6, %v9645_v20, %v9663_v48 }
 0x546   :  { %v3957_v11 = vpop.permute.xlu1 %3956  ;;  %v5140_v24 = vpop.f32.mrb[18].mxu1 }
 0x547   :  { %v3893_v58 = vpop.permute.xlu0 %3892  ;;  %v3213_v10 = vmax.f32 %v8772_v5, %v5140_v24  ;;  %v3173_v12 = vpop.f32.mrb[19].mxu1  ;;  %3838 = vrot.lane.b32.xlu1 %v9633_v28, %s5500_s14  ;;  %v3465_v24 = vld [vmem:[#allocation2 + $0x131] sm:$0xff] }
 0x548   :  { %3774 = vrot.lane.b32.xlu0 %v3380_v16, %s5499_s13  ;;  %v4098_v42 = vsel %vm4092_vm14, %v4081_v54, %v3893_v58  ;;  %v3212_v15 = vmax.f32 %v10131_v3, %v3173_v12 }
 0x549   :  { %v3229_v37 = vmax.f32 %v10134_v17, %v3213_v10  ;;  %v4115_v40 = vsel %vm4109_vm15, %v4098_v42, %v3957_v11  ;;  %v3414_v1 = vld [vmem:[#allocation2 + $0x101] sm:$0xff] }
 0x54a   :  { %v3228_v5 = vmax.f32 %v10137_v43, %v3212_v15  ;;  %5166 = vmatmul.mubr.msk.f32.gmra.mrb[24].mxu1 %vm4142_vm0, %v4115_v40  ;;  %v9684_v41 = vld [vmem:[#allocation2 + $0xf0] sm:$0xff]  ;;  %v9698_v46 = vld [vmem:[#allocation2 + $0x100] sm:$0xff]  ;;  %v9707_v0 = vpop.permute.xlu1 %3578 }
 0x54b   :  { %v3366_v55 = vld [vmem:[#allocation2 + $0xf1] sm:$0xff]  ;;  %v3252_v16 = vadd.f32 %v5465_v33, %v3229_v37  ;;  %3650 = vrot.lane.b32.xlu1 %v9684_v41, %s5495_s11  ;;  %v3383_v63 = vld [vmem:[#allocation2 + $0x102] sm:$0xff] }
 0x54c   :  { %3524 = vrot.lane.b32.xlu0 %v3366_v55, %s5490_s17  ;;  %v3251_v32 = vadd.f32 %v5465_v33, %v3228_v5  ;;  %v3382_v44 = vld [vmem:[#allocation2 + $0xf2] sm:$0xff]  ;;  %v3345_v15 = vld [vmem:[#allocation2 + $0xa0] sm:$0xff] }
 0x54d   :  { %v3268_v25 = vmax.f32 %v3252_v16, 0.0 }
 0x54e   :  { %v3267_v49 = vmax.f32 %v3251_v32, 0.0  ;;  %v3831_v14 = vpop.permute.xlu1 %3830 }
 0x54f   :  { %3336 = vst.msk [vmem:[#allocation2 + $0x121] sm:$0xff] %vm714_vm2, %v3268_v25  ;;  %3902 = vrot.lane.b32.xlu1 %v3412_v18, %s5501_s27  ;;  %v9709_v18 = vpop.permute.xlu0 %3514 }
 0x550   :  { %3776 = vrot.lane.b32.xlu0 %v3381_v4, %s5499_s13  ;;  %3335 = vst.msk [vmem:[#allocation2 + $0x111] sm:$0xff] %vm714_vm2, %v3267_v49  ;;  %v4002_v37 = vsel %vm714_vm2, %v3345_v15, %v9709_v18 }
 0x551   :  { %v4018_v16 = vsel %vm748_vm4, %v4002_v37, %v9707_v0 }
 0x553   :  { %3714 = vrot.lane.b32.xlu1 %v3366_v55, %s5497_s2  ;;  %v3767_v62 = vpop.permute.xlu0 %3766 }
 0x554   :  { %3588 = vrot.lane.b32.xlu0 %v3382_v44, %s5493_s12  ;;  %v4065_v19 = vsel %vm4058_vm12, %v4048_v9, %v3767_v62 }
 0x555   :  { %v4082_v33 = vsel %vm4075_vm13, %v4065_v19, %v3831_v14 }
 0x556   :  { %v3400_v36 = vld [vmem:[#allocation2 + $0x120] sm:$0xff] }
 0x557   :  { %3966 = vrot.lane.b32.xlu1 %v3381_v4, %s5502_s23  ;;  %v9714_v51 = vld [vmem:[#allocation2 + $0x110] sm:$0xff]  ;;  %v3432_v38 = vld [vmem:[#allocation2 + $0x122] sm:$0xff]  ;;  %v4049_v4 = vsel %vm816_vm8, %v4033_v53, %v9660_v60 }
 0x558   :  { %3840 = vrot.lane.b32.xlu0 %v9684_v41, %s5500_s14  ;;  %v3368_v21 = vld [vmem:[#allocation2 + $0x111] sm:$0xff]  ;;  %v3416_v47 = vld [vmem:[#allocation2 + $0x121] sm:$0xff] }
 0x559   :  { %v3384_v26 = vld [vmem:[#allocation2 + $0x112] sm:$0xff] }
 0x55a   :  { %v3481_v60 = vld [vmem:[#allocation2 + $0x132] sm:$0xff] }
 0x55b   :  { %3716 = vrot.lane.b32.xlu1 %v3414_v1, %s5497_s2 }
 0x55c   :  { %3652 = vrot.lane.b32.xlu0 %v9698_v46, %s5495_s11 }
 0x55f   :  { %3968 = vrot.lane.b32.xlu1 %v3382_v44, %s5502_s23 }
 0x560   :  { %3904 = vrot.lane.b32.xlu0 %v3366_v55, %s5501_s27 }
 0x563   :  { %3590 = vrot.lane.b32.xlu1 %v3383_v63, %s5493_s12 }
 0x564   :  { %3526 = vrot.lane.b32.xlu0 %v3414_v1, %s5490_s17 }
 0x567   :  { %3842 = vrot.lane.b32.xlu1 %v9698_v46, %s5500_s14 }
 0x568   :  { %3778 = vrot.lane.b32.xlu0 %v3382_v44, %s5499_s13 }
 0x56b   :  { %3654 = vrot.lane.b32.xlu1 %v9714_v51, %s5495_s11 }
 0x56c   :  { %3528 = vrot.lane.b32.xlu0 %v3368_v21, %s5490_s17 }
 0x56f   :  { %3906 = vrot.lane.b32.xlu1 %v3414_v1, %s5501_s27 }
 0x570   :  { %3780 = vrot.lane.b32.xlu0 %v3383_v63, %s5499_s13 }
 0x571   :  { %v9721_v56 = vpop.permute.xlu1 %3642 }
 0x572   :  { %v9723_v6 = vpop.permute.xlu0 %3516  ;;  %v4034_v1 = vsel %vm782_vm6, %v4018_v16, %v9721_v56 }
 0x573   :  { %3718 = vrot.lane.b32.xlu1 %v3368_v21, %s5497_s2  ;;  %v4003_v56 = vsel %vm714_vm2, %v9552_v35, %v9723_v6 }
 0x574   :  { %3592 = vrot.lane.b32.xlu0 %v3384_v26, %s5493_s12 }
 0x575   :  { %v3895_v8 = vpop.permute.xlu1 %3894 }
 0x576   :  { %v3769_v39 = vpop.permute.xlu0 %3768  ;;  %v4099_v31 = vsel %vm4092_vm14, %v4082_v33, %v3895_v8 }
 0x577   :  { %3970 = vrot.lane.b32.xlu1 %v3383_v63, %s5502_s23  ;;  %v4066_v11 = vsel %vm4058_vm12, %v4049_v4, %v3769_v39 }
 0x578   :  { %3844 = vrot.lane.b32.xlu0 %v9714_v51, %s5500_s14 }
 0x579   :  { %v3707_v27 = vpop.permute.xlu1 %3706 }
 0x57a   :  { %v9734_v22 = vpop.permute.xlu0 %3580  ;;  %v4050_v63 = vsel %vm816_vm8, %v4034_v1, %v3707_v27 }
 0x57b   :  { %3782 = vrot.lane.b32.xlu1 %v3384_v26, %s5499_s13  ;;  %v4019_v9 = vsel %vm748_vm4, %v4003_v56, %v9734_v22 }
 0x57c   :  { %3656 = vrot.lane.b32.xlu0 %v3400_v36, %s5495_s11 }
 0x57d   :  { %v3959_v45 = vpop.permute.xlu1 %3958 }
 0x57e   :  { %v3833_v50 = vpop.permute.xlu0 %3832  ;;  %v4116_v34 = vsel %vm4109_vm15, %v4099_v31, %v3959_v45 }
 0x57f   :  { %5168 = vmatprep.mubr.msk.f32.mxu1 %vm4142_vm0, %v4116_v34  ;;  %3784 = vrot.lane.b32.xlu1 %v3432_v38, %s5499_s13  ;;  %v4083_v54 = vsel %vm4075_vm13, %v4066_v11, %v3833_v50 }
 0x580   :  { %3908 = vrot.lane.b32.xlu0 %v3368_v21, %s5501_s27 }
 0x581   :  { %v3709_v2 = vpop.permute.xlu1 %3708 }
 0x582   :  { %v3645_v29 = vpop.permute.xlu0 %3644 }
 0x583   :  { %3848 = vrot.lane.b32.xlu1 %v3449_v7, %s5500_s14  ;;  %v4035_v19 = vsel %vm782_vm6, %v4019_v9, %v3645_v29 }
 0x584   :  { %3720 = vrot.lane.b32.xlu0 %v3416_v47, %s5497_s2  ;;  %v4051_v33 = vsel %vm816_vm8, %v4035_v19, %v3709_v2 }
 0x585   :  { %v3961_v58 = vpop.permute.xlu1 %3960 }
 0x586   :  { %v3897_v20 = vpop.permute.xlu0 %3896 }
 0x587   :  { %v4100_v48 = vsel %vm4092_vm14, %v4083_v54, %v3897_v20  ;;  %3912 = vrot.lane.b32.xlu1 %v3465_v24, %s5501_s27 }
 0x588   :  { %v4117_v10 = vsel %vm4109_vm15, %v4100_v48, %v3961_v58  ;;  %3972 = vrot.lane.b32.xlu0 %v3384_v26, %s5502_s23 }
 0x589   :  { %5169 = vmatmul.mubr.msk.f32.gmra.mrb[26].mxu1 %vm4142_vm0, %v4117_v10  ;;  %v3583_v12 = vpop.permute.xlu1 %3582 }
 0x58a   :  { %v3519_v42 = vpop.permute.xlu0 %3518 }
 0x58b   :  { %3976 = vrot.lane.b32.xlu1 %v3481_v60, %s5502_s23  ;;  %v4004_v2 = vsel %vm714_vm2, %v9590_v61, %v3519_v42 }
 0x58c   :  { %3846 = vrot.lane.b32.xlu0 %v3400_v36, %s5500_s14  ;;  %v4020_v11 = vsel %vm748_vm4, %v4004_v2, %v3583_v12 }
 0x58d   :  { %v3835_v3 = vpop.permute.xlu1 %3834 }
 0x58e   :  { %v3771_v57 = vpop.permute.xlu0 %3770 }
 0x58f   :  { %v4067_v18 = vsel %vm4058_vm12, %v4050_v63, %v3771_v57 }
 0x590   :  { %3910 = vrot.lane.b32.xlu0 %v3416_v47, %s5501_s27  ;;  %v4084_v62 = vsel %vm4075_vm13, %v4067_v18, %v3835_v3 }
 0x594   :  { %3974 = vrot.lane.b32.xlu0 %v3432_v38, %s5502_s23 }
 0x59d   :  { %v5161_v17 = vpop.f32.mrb[20].mxu1  ;;  %v3647_v23 = vpop.permute.xlu1 %3646 }
 0x59e   :  { %v4263_v40 = vadd.f32 %v5161_v17, %v9765_v13  ;;  %v4257_v52 = vpop.f32.mrb[21].mxu1  ;;  %v3521_v5 = vpop.permute.xlu0 %3520  ;;  %v4036_v54 = vsel %vm782_vm6, %v4020_v11, %v3647_v23 }
 0x59f   :  { %v4258_v43 = vadd.f32 %v9765_v13, %v4257_v52  ;;  %v4005_v12 = vsel %vm714_vm2, %v9613_v30, %v3521_v5 }
 0x5a0   :  { %v4337_v55 = vmax.f32 %v4263_v40, 0.0 }
 0x5a1   :  { %v4336_v32 = vmax.f32 %v4258_v43, 0.0  ;;  %v3899_v25 = vpop.permute.xlu1 %3898 }
 0x5a2   :  { %v3773_v44 = vpop.permute.xlu0 %3772  ;;  %v4101_v0 = vsel %vm4092_vm14, %v4084_v62, %v3899_v25 }
 0x5a3   :  { %v5261_v49 = vpack.c.bf16 %v4337_v55, %v4336_v32  ;;  %v4068_v31 = vsel %vm4058_vm12, %v4051_v33, %v3773_v44 }
 0x5a5   :  { %5262 = vmatpush3.bf16.msra.mxu1 %v5261_v49  ;;  %v3711_v21 = vpop.permute.xlu1 %3710 }
 0x5a6   :  { %5263 = vmatprep.subr.bf16.mxu1 %v5503_v59  ;;  %v3585_v14 = vpop.permute.xlu0 %3584  ;;  %v4052_v58 = vsel %vm816_vm8, %v4036_v54, %v3711_v21 }
 0x5a7   :  { %v4021_v42 = vsel %vm748_vm4, %v4005_v12, %v3585_v14 }
 0x5a9   :  { %v3963_v26 = vpop.permute.xlu1 %3962 }
 0x5aa   :  { %v4118_v8 = vsel %vm4109_vm15, %v4101_v0, %v3963_v26  ;;  %v3837_v39 = vpop.permute.xlu0 %3836 }
 0x5ab   :  { %5171 = vmatprep.mubr.msk.f32.mxu1 %vm4142_vm0, %v4118_v8  ;;  %v4085_v50 = vsel %vm4075_vm13, %v4068_v31, %v3837_v39 }
 0x5ad   :  { %v3713_v27 = vpop.permute.xlu1 %3712 }
 0x5ae   :  { %v3649_v36 = vpop.permute.xlu0 %3648 }
 0x5af   :  { %v4037_v17 = vsel %vm782_vm6, %v4021_v42, %v3649_v36 }
 0x5b0   :  { %v4053_v52 = vsel %vm816_vm8, %v4037_v17, %v3713_v27 }
 0x5b1   :  { %v3965_v45 = vpop.permute.xlu1 %3964 }
 0x5b2   :  { %v3901_v34 = vpop.permute.xlu0 %3900 }
 0x5b3   :  { %v4102_v38 = vsel %vm4092_vm14, %v4085_v50, %v3901_v34 }
 0x5b4   :  { %v4119_v35 = vsel %vm4109_vm15, %v4102_v38, %v3965_v45 }
 0x5b5   :  { %5172 = vmatmul.mubr.msk.f32.gmra.mrb[28].mxu1 %vm4142_vm0, %v4119_v35  ;;  %v3587_v6 = vpop.permute.xlu1 %3586 }
 0x5b6   :  { %v3523_v22 = vpop.permute.xlu0 %3522 }
 0x5b7   :  { %v4006_v0 = vsel %vm714_vm2, %v9633_v28, %v3523_v22 }
 0x5b8   :  { %v4022_v56 = vsel %vm748_vm4, %v4006_v0, %v3587_v6 }
 0x5b9   :  { %v3839_v53 = vpop.permute.xlu1 %3838 }
 0x5ba   :  { %v3775_v7 = vpop.permute.xlu0 %3774 }
 0x5bb   :  { %v4069_v20 = vsel %vm4058_vm12, %v4052_v58, %v3775_v7 }
 0x5bc   :  { %v4086_v60 = vsel %vm4075_vm13, %v4069_v20, %v3839_v53 }
 0x5bd   :  { %v3651_v29 = vpop.permute.xlu1 %3650 }
 0x5be   :  { %v3525_v4 = vpop.permute.xlu0 %3524  ;;  %v4038_v27 = vsel %vm782_vm6, %v4022_v56, %v3651_v29 }
 0x5bf   :  { %v4007_v53 = vsel %vm714_vm2, %v9684_v41, %v3525_v4 }
 0x5c1   :  { %v3903_v47 = vpop.permute.xlu1 %3902 }
 0x5c2   :  { %v3777_v24 = vpop.permute.xlu0 %3776  ;;  %v4103_v3 = vsel %vm4092_vm14, %v4086_v60, %v3903_v47 }
 0x5c3   :  { %v4070_v23 = vsel %vm4058_vm12, %v4053_v52, %v3777_v24 }
 0x5c5   :  { %v3715_v48 = vpop.permute.xlu1 %3714 }
 0x5c6   :  { %v3589_v10 = vpop.permute.xlu0 %3588  ;;  %v4054_v36 = vsel %vm816_vm8, %v4038_v27, %v3715_v48 }
 0x5c7   :  { %v4023_v29 = vsel %vm748_vm4, %v4007_v53, %v3589_v10 }
 0x5c9   :  { %v3967_v15 = vpop.permute.xlu1 %3966 }
 0x5ca   :  { %v4120_v57 = vsel %vm4109_vm15, %v4103_v3, %v3967_v15  ;;  %v3841_v61 = vpop.permute.xlu0 %3840 }
 0x5cb   :  { %5174 = vmatprep.mubr.msk.f32.mxu1 %vm4142_vm0, %v4120_v57  ;;  %v4087_v55 = vsel %vm4075_vm13, %v4070_v23, %v3841_v61 }
 0x5cd   :  { %v3717_v37 = vpop.permute.xlu1 %3716 }
 0x5ce   :  { %v3653_v40 = vpop.permute.xlu0 %3652 }
 0x5cf   :  { %v4039_v47 = vsel %vm782_vm6, %v4023_v29, %v3653_v40 }
 0x5d0   :  { %v4055_v24 = vsel %vm816_vm8, %v4039_v47, %v3717_v37 }
 0x5d1   :  { %v3969_v43 = vpop.permute.xlu1 %3968 }
 0x5d2   :  { %v3905_v16 = vpop.permute.xlu0 %3904 }
 0x5d3   :  { %v4104_v32 = vsel %vm4092_vm14, %v4087_v55, %v3905_v16 }
 0x5d4   :  { %v4121_v30 = vsel %vm4109_vm15, %v4104_v32, %v3969_v43 }
 0x5d5   :  { %5175 = vmatmul.mubr.msk.f32.gmra.mrb[30].mxu1 %vm4142_vm0, %v4121_v30  ;;  %v3591_v5 = vpop.permute.xlu1 %3590 }
 0x5d6   :  { %v3527_v25 = vpop.permute.xlu0 %3526 }
 0x5d7   :  { %v4008_v15 = vsel %vm714_vm2, %v9698_v46, %v3527_v25 }
 0x5d8   :  { %v4024_v42 = vsel %vm748_vm4, %v4008_v15, %v3591_v5 }
 0x5d9   :  { %v3843_v49 = vpop.permute.xlu1 %3842 }
 0x5da   :  { %v3779_v44 = vpop.permute.xlu0 %3778 }
 0x5db   :  { %v4071_v33 = vsel %vm4058_vm12, %v4054_v36, %v3779_v44 }
 0x5dc   :  { %v4088_v28 = vsel %vm4075_vm13, %v4071_v33, %v3843_v49 }
 0x5dd   :  { %v5164_v1 = vpop.f32.mrb[22].mxu1  ;;  %v3655_v21 = vpop.permute.xlu1 %3654 }
 0x5de   :  { %v4273_v63 = vadd.f32 %v5164_v1, %v9765_v13  ;;  %v4267_v18 = vpop.f32.mrb[23].mxu1  ;;  %v3529_v62 = vpop.permute.xlu0 %3528 }
 0x5df   :  { %v4268_v14 = vadd.f32 %v9765_v13, %v4267_v18  ;;  %v4009_v41 = vsel %vm714_vm2, %v9714_v51, %v3529_v62  ;;  %v4040_v51 = vsel %vm782_vm6, %v4024_v42, %v3655_v21 }
 0x5e0   :  { %v4339_v26 = vmax.f32 %v4273_v63, 0.0 }
 0x5e1   :  { %v4338_v8 = vmax.f32 %v4268_v14, 0.0  ;;  %v3907_v39 = vpop.permute.xlu1 %3906 }
 0x5e2   :  { %v3781_v19 = vpop.permute.xlu0 %3780  ;;  %v4105_v50 = vsel %vm4092_vm14, %v4088_v28, %v3907_v39 }
 0x5e3   :  { %v5264_v9 = vpack.c.bf16 %v4339_v26, %v4338_v8  ;;  %v4072_v54 = vsel %vm4058_vm12, %v4055_v24, %v3781_v19 }
 0x5e5   :  { %5265 = vmatpush3.bf16.msra.mxu1 %v5264_v9  ;;  %v3719_v31 = vpop.permute.xlu1 %3718  ;;  %v10138_v9 = vmov 0.0  }
 0x5e6   :  { %5266 = vmatprep.subr.bf16.mxu1 %v5503_v59  ;;  %v3593_v45 = vpop.permute.xlu0 %3592  ;;  %v4056_v40 = vsel %vm816_vm8, %v4040_v51, %v3719_v31 }
 0x5e7   :  { %v4025_v10 = vsel %vm748_vm4, %v4009_v41, %v3593_v45 }
 0x5e9   :  { %v3971_v34 = vpop.permute.xlu1 %3970 }
 0x5ea   :  { %v4122_v38 = vsel %vm4109_vm15, %v4105_v50, %v3971_v34  ;;  %v3845_v35 = vpop.permute.xlu0 %3844 }
 0x5eb   :  { %5177 = vmatprep.mubr.msk.f32.mxu1 %vm4142_vm0, %v4122_v38  ;;  %v4089_v58 = vsel %vm4075_vm13, %v4072_v54, %v3845_v35 }
 0x5ed   :  { %v3783_v6 = vpop.permute.xlu1 %3782 }
 0x5ee   :  { %v3657_v22 = vpop.permute.xlu0 %3656  ;;  %v4073_v52 = vsel %vm4058_vm12, %v4056_v40, %v3783_v6  ;;  %v4509_v40 = vld [vmem:[%s9932_s8 + $0x18] sm:$0xff] }
 0x5ef   :  { %v4041_v3 = vsel %vm782_vm6, %v4025_v10, %v3657_v22  ;;  %v4423_v10 = vld [vmem:[%s9930_s6] sm:$0xff] }
 0x5f1   :  { %v3785_v2 = vpop.permute.xlu1 %3784 }
 0x5f2   :  { %v3909_v7 = vpop.permute.xlu0 %3908 }
 0x5f3   :  { %v4106_v48 = vsel %vm4092_vm14, %v4089_v58, %v3909_v7 }
 0x5f5   :  { %v3849_v20 = vpop.permute.xlu1 %3848 }
 0x5f6   :  { %v3721_v11 = vpop.permute.xlu0 %3720 }
 0x5f7   :  { %v4057_v57 = vsel %vm816_vm8, %v4041_v3, %v3721_v11  ;;  %v4424_v3 = vld [vmem:[%s9930_s6 + $0x8] sm:$0xff] }
 0x5f8   :  { %v4074_v17 = vsel %vm4058_vm12, %v4057_v57, %v3785_v2  ;;  %v4352_v57 = vld [vmem:[%s9925_s1] sm:$0x3] }
 0x5f9   :  { %v3913_v12 = vpop.permute.xlu1 %3912  ;;  %v4091_v23 = vsel %vm4075_vm13, %v4074_v17, %v3849_v20 }
 0x5fa   :  { %v3973_v60 = vpop.permute.xlu0 %3972  ;;  %v4108_v32 = vsel %vm4092_vm14, %v4091_v23, %v3913_v12  ;;  %v4507_v12 = vld [vmem:[%s9932_s8 + $0x8] sm:$0xff]  ;;  %v4912_v23 = vld [vmem:[%s9931_s7] ss:$0 sm:$0xff] }
 0x5fb   :  { %v4123_v4 = vsel %vm4109_vm15, %v4106_v48, %v3973_v60 }
 0x5fc   :  { %5178 = vmatmul.mubr.msk.f32.gmra.mrb[32].mxu1 %vm4142_vm0, %v4123_v4 }
 0x5fd   :  { %v3977_v43 = vpop.permute.xlu1 %3976 }
 0x5fe   :  { %v3847_v61 = vpop.permute.xlu0 %3846  ;;  %v4125_v5 = vsel %vm4109_vm15, %v4108_v32, %v3977_v43 }
 0x5ff   :  { %v4090_v46 = vsel %vm4075_vm13, %v4073_v52, %v3847_v61  ;;  %v5285_v61 = vpack.c.bf16 %v4424_v3, %v4423_v10 }
 0x602   :  { %v3911_v37 = vpop.permute.xlu0 %3910 }
 0x603   :  { %v4107_v55 = vsel %vm4092_vm14, %v4090_v46, %v3911_v37  ;;  %v4508_v37 = vld [vmem:[%s9932_s8 + $0x10] sm:$0xff] }
 0x604   :  { %v5291_v52 = vpack.c.bf16 %v4509_v40, %v4508_v37 }
 0x606   :  { %v3975_v16 = vpop.permute.xlu0 %3974 }
 0x607   :  { %v4124_v30 = vsel %vm4109_vm15, %v4107_v55, %v3975_v16 }
 0x608   :  { %5180 = vmatprep.mubr.msk.f32.mxu1 %vm4142_vm0, %v4124_v30 }
 0x609   :  { %5181 = vmatmul.mubr.msk.f32.gmra.mrb[34].mxu1 %vm4142_vm0, %v4125_v5 }
 0x60a   :  { %5215 = vmatprep.mubr.msk.f32.mxu1 %vm5504_vm1, %v10138_v9 }
 0x61d   :  { %v5167_v25 = vpop.f32.mrb[24].mxu1 }
 0x61e   :  { %v4283_v49 = vadd.f32 %v5167_v25, %v9765_v13  ;;  %v4277_v44 = vpop.f32.mrb[25].mxu1 }
 0x61f   :  { %v4278_v1 = vadd.f32 %v9765_v13, %v4277_v44 }
 0x620   :  { %v4341_v63 = vmax.f32 %v4283_v49, 0.0 }
 0x621   :  { %v4340_v18 = vmax.f32 %v4278_v1, 0.0 }
 0x623   :  { %v5267_v21 = vpack.c.bf16 %v4341_v63, %v4340_v18 }
 0x625   :  { %5268 = vmatpush3.bf16.msra.mxu1 %v5267_v21 }
 0x626   :  { %5269 = vmatprep.subr.bf16.mxu1 %v5503_v59 }
 0x65c   :  { %v5170_v14 = vpop.f32.mrb[26].mxu1 }
 0x65d   :  { %v4293_v62 = vadd.f32 %v5170_v14, %v9765_v13  ;;  %v4287_v0 = vpop.f32.mrb[27].mxu1 }
 0x65e   :  { %v4288_v26 = vadd.f32 %v9765_v13, %v4287_v0 }
 0x65f   :  { %v4343_v8 = vmax.f32 %v4293_v62, 0.0 }
 0x660   :  { %v4342_v39 = vmax.f32 %v4288_v26, 0.0 }
 0x662   :  { %v5270_v56 = vpack.c.bf16 %v4343_v8, %v4342_v39 }
 0x664   :  { %5271 = vmatpush3.bf16.msra.mxu1 %v5270_v56 }
 0x665   :  { %5272 = vmatprep.subr.bf16.mxu1 %v5503_v59 }
 0x688   :  { %v5173_v19 = vpop.f32.mrb[28].mxu1 }
 0x689   :  { %v4303_v27 = vadd.f32 %v5173_v19, %v9765_v13  ;;  %v4297_v36 = vpop.f32.mrb[29].mxu1 }
 0x68a   :  { %v4298_v33 = vadd.f32 %v9765_v13, %v4297_v36 }
 0x68b   :  { %v4345_v31 = vmax.f32 %v4303_v27, 0.0 }
 0x68c   :  { %v4344_v45 = vmax.f32 %v4298_v33, 0.0 }
 0x68e   :  { %v5273_v28 = vpack.c.bf16 %v4345_v31, %v4344_v45 }
 0x690   :  { %5274 = vmatpush3.bf16.msra.mxu1 %v5273_v28 }
 0x691   :  { %5275 = vmatprep.subr.bf16.mxu1 %v5503_v59 }
 0x6a8   :  { %v5176_v50 = vpop.f32.mrb[30].mxu1 }
 0x6a9   :  { %v4313_v34 = vadd.f32 %v5176_v50, %v9765_v13  ;;  %v4307_v38 = vpop.f32.mrb[31].mxu1 }
 0x6aa   :  { %v4308_v35 = vadd.f32 %v9765_v13, %v4307_v38 }
 0x6ab   :  { %v4347_v6 = vmax.f32 %v4313_v34, 0.0 }
 0x6ac   :  { %v4346_v22 = vmax.f32 %v4308_v35, 0.0 }
 0x6ae   :  { %v5276_v53 = vpack.c.bf16 %v4347_v6, %v4346_v22 }
 0x6b0   :  { %5277 = vmatpush3.bf16.msra.mxu1 %v5276_v53 }
 0x6b1   :  { %5278 = vmatprep.subr.bf16.mxu1 %v5503_v59 }
 0x6cf   :  { %v5179_v7 = vpop.f32.mrb[32].mxu1 }
 0x6d0   :  { %v4323_v29 = vadd.f32 %v5179_v7, %v9765_v13  ;;  %v4317_v2 = vpop.f32.mrb[33].mxu1 }
 0x6d1   :  { %v4318_v47 = vadd.f32 %v9765_v13, %v4317_v2 }
 0x6d2   :  { %v4349_v11 = vmax.f32 %v4323_v29, 0.0 }
 0x6d3   :  { %v4348_v24 = vmax.f32 %v4318_v47, 0.0 }
 0x6d5   :  { %v5279_v54 = vpack.c.bf16 %v4349_v11, %v4348_v24 }
 0x6d7   :  { %5280 = vmatpush3.bf16.msra.mxu1 %v5279_v54 }
 0x6d8   :  { %5281 = vmatprep.subr.bf16.mxu1 %v5503_v59 }
 0x6dc   :  { %v5182_v58 = vpop.f32.mrb[34].mxu1 }
 0x6dd   :  { %v4333_v20 = vadd.f32 %v5182_v58, %v9765_v13  ;;  %v4327_v48 = vpop.f32.mrb[35].mxu1 }
 0x6de   :  { %v4328_v60 = vadd.f32 %v9765_v13, %v4327_v48  ;;  %v4506_v13 = vld [vmem:[%s9932_s8] sm:$0xff]  ;;  %s5466_s8 = scalar_lea.vmem %s4598_s28, 32 }
 0x6df   :  { %v4351_v41 = vmax.f32 %v4333_v20, 0.0  ;;  %v5288_v42 = vpack.c.bf16 %v4507_v12, %v4506_v13  ;;  %p5467_p0 = scmp.ne.s32.totalorder %s4598_s28, %s5466_s8  ;;  %p5472_p2 = scmp.lt.s32.totalorder %s5466_s8, %s5466_s8 }
 0x6e0   :  { %v4350_v4 = vmax.f32 %v4328_v60, 0.0 }
 0x6e1   :  { %p5473_p3 = por %p5472_p2, %p5471_p1 }
 0x6e2   :  { %v5282_v15 = vpack.c.bf16 %v4351_v41, %v4350_v4 }
 0x6e3   :  { %p5474_p4 = pnand %p5473_p3, %p5467_p0 }
 0x6e4   :  { %5283 = vmatpush3.bf16.msra.mxu1 %v5282_v15 }
 0x6e5   :  { %5284 = vmatprep.subr.bf16.mxu1 %v5503_v59 }
 0x6e7   :  { %5216 = vmatmul.mubr.f32.vlgmr.msra.gmra.mrb[36].mxu1 %v4352_v57 }
 0x6e8   :  { %5286 = vmatpush3.bf16.msra.mxu1 %v5285_v61  ;;  %5222 = vmatprep.mubr.msk.f32.mxu1 %vm5504_vm1, %v10138_v9 }
 0x6e9   :  { %5287 = vmatprep.subr.bf16.mxu1 %v5503_v59 }
 0x7ba   :  { %v4419_v17 = vpop.f32.mrb[36].mxu1 }
 0x7bb   :  { %v5217_v51 = vpop.f32.mrb[37].mxu1  ;;  %5223 = vmatmul.mubr.msk.f32.vlgmr.msra.gmra.mrb[38].mxu1 %vm748_vm4, %v4419_v17 }
 0x7bc   :  { %5289 = vmatpush3.bf16.msra.mxu1 %v5288_v42  ;;  %5233 = vmatprep.mubr.msk.f32.mxu1 %vm5504_vm1, %v10138_v9 }
 0x7bd   :  { %5290 = vmatprep.subr.bf16.mxu1 %v5503_v59  ;;  %v4914_v59 = vld [vmem:[%s9933_s9] ss:$0 sm:$0xff] }
 0x7c0   :  { %5292 = vmatpush3.bf16.msra.mxu1 %v5291_v52 }
 0x88e   :  { %v4501_v43 = vpop.f32.mrb[38].mxu1 }
 0x88f   :  { %v4502_v46 = vadd.f32 %v4912_v23, %v4501_v43  ;;  %v5224_v55 = vpop.f32.mrb[39].mxu1 }
 0x891   :  { %v4505_v16 = vmax.f32 %v4502_v46, 0.0 }
 0x893   :  { %5234 = vmatmul.mubr.msk.f32.vlgmr.msra.gmra.mrb[40].mxu1 %vm816_vm8, %v4505_v16 }
 0x966   :  { %v4586_v32 = vpop.f32.mrb[40].mxu1 }
 0x967   :  { %v4587_v30 = vadd.f32 %v4914_v59, %v4586_v32  ;;  %v5235_v5 = vpop.f32.mrb[41].mxu1 }
 0x969   :  { %4590 = vst [vmem:[#allocation3] sm:$0x3] %v4587_v30 }
 0x96a   :  { %5477 = shalt.err (!%p5474_p4)
}
 0x96b   :  { %s5478_s30 = scalar_lea.hbm %s9934_s10, 32 }
 0x96c   :  { %p5479_p5 = scmp.ne.s32.totalorder %s9934_s10, %s5478_s30  ;;  %p5482_p6 = scmp.lt.u32.totalorder %s5478_s30, %s9934_s10 }
 0x96e   :  { %p5484_p7 = pnand %p5482_p6, %p5479_p5 }
 0x970   :  { %5487 = shalt.err (!%p5484_p7)
}
 0x971   :  { %4600 = dma.vmem_to_hbm [thread:$0]  %s4598_s28, 32, %s9934_s10, [#allocation4]  }
 0x972   :  { %5488 = dma.done.wait [#allocation4], 32  }
 0x973   :  { %5489 = vsyncadd [#allocation4], 4294967264 }
 0x974   :  { %4604 = vsyncpa [#allocation4], 1 }

</bundles_post_ra>
